<compile_context>
chip_gen: v7x
topology: tpu7x:2x2x1
jax: 0.10.0
libtpu: 0.0.40
codegen_flags: <defaults>
</compile_context>

<pallas_src>
import functools
import math

import jax
import jax.numpy as jnp
from jax.experimental import pallas as pl
from jax.experimental.pallas import tpu as pltpu

_SQRT2 = math.sqrt(2.0)


def _epilogue(acc_f32, bias_row):
    """bias add + LeakyReLU(0.2) with the sqrt(2) gain folded into the select."""
    y = acc_f32 + bias_row                               # (M, tile) + (1, tile)
    return y * jnp.where(y >= 0.0, jnp.float32(_SQRT2), jnp.float32(0.2 * _SQRT2))


def _conv_flrelu_im2col_kernel(x_ref, w_ref, b_ref, o_ref, col_ref, *, kh, kw):
    """Path A: Cin % 128 == 0.  One im2col matmul per Cout tile.

    x_ref  : (1, H, W, Cin)            bf16  input image (NHWC)
    w_ref  : (n_co, kh*kw*Cin, tile)   bf16  VMEM-resident weights
    b_ref  : (n_co, 1, tile)           f32   VMEM-resident fused bias
    o_ref  : (1, Ho*Wo, tile)          f32   flat output tile (lane-dense)
    col_ref: (Ho*Wo, kh*kw*Cin)        bf16  im2col scratch, reused across co
    """
    _, H, W, Cin = x_ref.shape
    Ho, Wo = H - kh + 1, W - kw + 1
    co = pl.program_id(1)

    # Build the im2col buffer once per image; co is the inner ("arbitrary")
    # axis so the scratch persists and is reused for every Cout tile.
    @pl.when(co == 0)
    def _build_im2col():
        x = x_ref[0]                                     # (H, W, Cin) bf16
        for ky in range(kh):                             # static taps, unrolled
            for kx in range(kw):
                tap = ky * kw + kx
                # Cin is a multiple of 128 -> lane-dense, unmasked stores.
                col_ref[:, tap * Cin:(tap + 1) * Cin] = (
                    x[ky:ky + Ho, kx:kx + Wo, :].reshape(Ho * Wo, Cin))

    acc = jnp.dot(col_ref[...], w_ref[co],
                  preferred_element_type=jnp.float32)    # (Ho*Wo, tile) f32
    o_ref[0] = _epilogue(acc, b_ref[co]).astype(o_ref.dtype)


def _conv_flrelu_small_cin_kernel(x_ref, w_ref, b_ref, o_ref, *, kh, kw):
    """Path B: Cin < 128.  Accumulate kh*kw shallow dots in f32 (no im2col
    scratch -> avoids masked lane-sparse vst.msk tap stores)."""
    _, H, W, Cin = x_ref.shape
    Ho, Wo = H - kh + 1, W - kw + 1
    co = pl.program_id(1)

    x = x_ref[0]                                         # (H, W, Cin) bf16
    w_tile = w_ref[co]                                   # (kh*kw*Cin, tile) bf16

    acc = jnp.zeros((Ho * Wo, o_ref.shape[-1]), jnp.float32)
    for ky in range(kh):                                 # static taps, unrolled
        for kx in range(kw):
            tap = ky * kw + kx
            patch = x[ky:ky + Ho, kx:kx + Wo, :].reshape(Ho * Wo, Cin)
            acc = acc + jnp.dot(patch, w_tile[tap * Cin:(tap + 1) * Cin, :],
                                preferred_element_type=jnp.float32)

    o_ref[0] = _epilogue(acc, b_ref[co]).astype(o_ref.dtype)


def _pick_cout_tile(cout):
    """128 on v5e (4x128^2 MXU); 256 on v6e/v7x (2x256^2 MXU) when Cout is big
    enough to fill a 256-wide tile."""
    if cout < 256:
        return 128
    try:
        kind = jax.devices()[0].device_kind.lower()
    except Exception:
        return 128
    return 256 if ("v6" in kind or "v7" in kind) else 128


def offsets_feature_shift_conv(x_nchw, weight_oihw, conv_bias, flr_bias):
    """x_nchw: (N, Cin, H, W) f32.  Returns (N, Cout, Ho, Wo) f32 (PyTorch contract)."""
    N, Cin, H, W = x_nchw.shape
    Cout, _, KH, KW = weight_oihw.shape
    Ho, Wo = H - KH + 1, W - KW + 1
    Kdim = KH * KW * Cin

    cout_tile = _pick_cout_tile(Cout)
    n_co = (Cout + cout_tile - 1) // cout_tile
    Cout_p = n_co * cout_tile

    # ---- layout glue (plain JAX, each a single fused XLA op) -----------------
    # NCHW f32 -> NHWC bf16 in one op: halves input HBM bytes into the kernel.
    x_nhwc = jnp.transpose(x_nchw, (0, 2, 3, 1)).astype(jnp.bfloat16)

    # Weights: OIHW -> (ky,kx,cin)xCout -> (n_co, Kdim, cout_tile) bf16.
    w_flat = jnp.transpose(weight_oihw, (2, 3, 1, 0)).reshape(Kdim, Cout)
    w_flat = jnp.pad(w_flat, ((0, 0), (0, Cout_p - Cout))).astype(jnp.bfloat16)
    w_tiles = jnp.transpose(w_flat.reshape(Kdim, n_co, cout_tile), (1, 0, 2))

    # conv bias + FusedLeakyReLU bias fused into one f32 vector.
    bias = jnp.pad((conv_bias + flr_bias).astype(jnp.float32), (0, Cout_p - Cout))
    bias = bias.reshape(n_co, 1, cout_tile)

    # ---- path selection -------------------------------------------------------
    use_im2col = (Cin % 128 == 0)
    if use_im2col:
        kernel = functools.partial(_conv_flrelu_im2col_kernel, kh=KH, kw=KW)
        scratch = [pltpu.VMEM((Ho * Wo, Kdim), jnp.bfloat16)]
        dims = ("parallel", "arbitrary")      # col scratch reused across co tiles
    else:
        kernel = functools.partial(_conv_flrelu_small_cin_kernel, kh=KH, kw=KW)
        scratch = []
        dims = ("parallel", "parallel")

    # ---- explicit VMEM budget -------------------------------------------------
    x_blk = H * W * Cin * 2                         # bf16
    o_blk = Ho * Wo * cout_tile * 4                 # f32
    wb = Kdim * Cout_p * 2 + Cout_p * 4             # resident weights + bias
    col = Ho * Wo * Kdim * 2 if use_im2col else 0
    vmem_needed = 2 * (x_blk + o_blk) + 2 * wb + col
    # generous headroom, but never above v7x's 64 MiB/TC physical VMEM.
    vmem_limit = int(min(max(4 * vmem_needed, 32 << 20), 64 << 20))

    out_flat = pl.pallas_call(
        kernel,
        out_shape=jax.ShapeDtypeStruct((N, Ho * Wo, Cout_p), jnp.float32),
        grid_spec=pltpu.PrefetchScalarGridSpec(
            num_scalar_prefetch=0,
            grid=(N, n_co),
            in_specs=[
                pl.BlockSpec((1, H, W, Cin), lambda n, co: (n, 0, 0, 0)),
                # constant index_map -> fetched once, VMEM-resident for the call
                pl.BlockSpec((n_co, Kdim, cout_tile), lambda n, co: (0, 0, 0)),
                pl.BlockSpec((n_co, 1, cout_tile), lambda n, co: (0, 0, 0)),
            ],
            out_specs=pl.BlockSpec((1, Ho * Wo, cout_tile),
                                   lambda n, co: (n, 0, co)),
            scratch_shapes=scratch,
        ),
        compiler_params=pltpu.CompilerParams(
            dimension_semantics=dims,
            vmem_limit_bytes=vmem_limit),
    )(x_nhwc, w_tiles, bias)

    # TODO(synk): for full-resolution StyleGAN feature maps (e.g. 64x64x512) the
    # whole-image x block and the (Ho*Wo, Kdim) im2col scratch must be tiled over
    # output rows with a (KH-1)-row halo and block sizes re-derived against
    # v7x's 64 MiB/TC budget; at these shapes whole-image blocks fit easily.
    out = out_flat[:, :, :Cout].reshape(N, Ho, Wo, Cout)   # drop lane padding first
    # TODO(synk): drop this NHWC->NCHW transpose (an extra HBM round trip) if the
    # consumer accepts NHWC; kept only to match the PyTorch NCHW contract.
    return jnp.transpose(out, (0, 3, 1, 2))


def _reference(x_nchw, weight_oihw, conv_bias, flr_bias):
    y = jax.lax.conv_general_dilated(
        x_nchw, weight_oihw, window_strides=(1, 1), padding="VALID",
        dimension_numbers=("NCHW", "OIHW", "NCHW"))
    y = y + conv_bias.reshape(1, -1, 1, 1) + flr_bias.reshape(1, -1, 1, 1)
    return jnp.where(y >= 0.0, y, 0.2 * y) * jnp.float32(math.sqrt(2.0))


if __name__ == "__main__":
    # Small, deterministic synthetic setup consistent with the module's __init__.
    N, Cin, H, W = 2, 4, 16, 16
    Cout, K = 8, 3

    key = jax.random.PRNGKey(0)
    kx_, kw_, kb_, kf_ = jax.random.split(key, 4)

    x = jax.random.normal(kx_, (N, Cin, H, W), dtype=jnp.float32)
    weight = jax.random.normal(kw_, (Cout, Cin, K, K), dtype=jnp.float32) * 0.1
    conv_bias = jax.random.normal(kb_, (Cout,), dtype=jnp.float32) * 0.1
    flr_bias = jax.random.normal(kf_, (Cout,), dtype=jnp.float32) * 0.1

    out = offsets_feature_shift_conv(x, weight, conv_bias, flr_bias)
    out = jax.block_until_ready(out)

    ref = _reference(x, weight, conv_bias, flr_bias)
    assert out.shape == (N, Cout, H - K + 1, W - K + 1), out.shape
    # bf16 MXU operands / bf16 input vs f32 reference -> loosened tolerance.
    max_err = float(jnp.max(jnp.abs(out - ref)))
    assert jnp.allclose(out, ref, atol=5e-2, rtol=5e-2), max_err

    print("KERNEL_OK")
</pallas_src>

<mosaic_0001>
module attributes {stable_mosaic.version = 11 : i64} {
  func.func @_conv_flrelu_small_cin_kernel(%arg0: i32, %arg1: i32, %arg2: memref<1x16x16x4xbf16, #tpu.memory_space<vmem>>, %arg3: memref<1x36x128xbf16, #tpu.memory_space<vmem>>, %arg4: memref<1x1x128xf32, #tpu.memory_space<vmem>>, %arg5: memref<1x196x128xf32, #tpu.memory_space<vmem>>) attributes {dimension_semantics = [#tpu.dimension_semantics<parallel>, #tpu.dimension_semantics<parallel>], iteration_bounds = array<i64: 2, 1>, scalar_prefetch = 0 : i64, scratch_operands = 0 : i64, tpu.core_type = #tpu.core_type<tc>, window_params = [{transform_indices = @transform_0, window_bounds = array<i64: 1, 16, 16, 4>}, {pipeline_mode = #tpu.pipeline_mode<synchronous>, transform_indices = @transform_1, window_bounds = array<i64: 1, 36, 128>}, {pipeline_mode = #tpu.pipeline_mode<synchronous>, transform_indices = @transform_2, window_bounds = array<i64: 1, 1, 128>}, {transform_indices = @transform_3, window_bounds = array<i64: 1, 196, 128>}]} {
    %c0 = arith.constant 0 : index
    %c0_0 = arith.constant 0 : index
    %c0_1 = arith.constant 0 : index
    %c0_2 = arith.constant 0 : index
    %0 = vector.load %arg2[%c0, %c0_0, %c0_1, %c0_2] : memref<1x16x16x4xbf16, #tpu.memory_space<vmem>>, vector<1x16x16x4xbf16>
    %1 = vector.shape_cast %0 : vector<1x16x16x4xbf16> to vector<16x16x4xbf16>
    %2 = arith.index_cast %arg1 : i32 to index
    %c0_3 = arith.constant 0 : index
    %c0_4 = arith.constant 0 : index
    %3 = vector.load %arg3[%2, %c0_3, %c0_4] : memref<1x36x128xbf16, #tpu.memory_space<vmem>>, vector<1x36x128xbf16>
    %4 = vector.shape_cast %3 : vector<1x36x128xbf16> to vector<36x128xbf16>
    %cst = arith.constant 0.000000e+00 : f32
    %5 = vector.broadcast %cst : f32 to vector<196x128xf32>
    %6 = vector.extract_strided_slice %1 {offsets = [0, 0, 0], sizes = [14, 14, 4], strides = [1, 1, 1]} : vector<16x16x4xbf16> to vector<14x14x4xbf16>
    %7 = vector.shape_cast %6 : vector<14x14x4xbf16> to vector<196x4xbf16>
    %8 = vector.extract_strided_slice %4 {offsets = [0, 0], sizes = [4, 128], strides = [1, 1]} : vector<36x128xbf16> to vector<4x128xbf16>
    %cst_5 = arith.constant dense<0.000000e+00> : vector<196x128xf32>
    %9 = tpu.matmul %7, %8, %cst_5 {dimension_numbers = #tpu.dot_dimension_numbers<[1], [0], [0], [1], [0, 0, 1, 1], [], []>} : vector<196x4xbf16>, vector<4x128xbf16>, vector<196x128xf32> -> vector<196x128xf32>
    %10 = arith.addf %5, %9 : vector<196x128xf32>
    %11 = vector.extract_strided_slice %1 {offsets = [0, 1, 0], sizes = [14, 14, 4], strides = [1, 1, 1]} : vector<16x16x4xbf16> to vector<14x14x4xbf16>
    %12 = vector.shape_cast %11 : vector<14x14x4xbf16> to vector<196x4xbf16>
    %13 = vector.extract_strided_slice %4 {offsets = [4, 0], sizes = [4, 128], strides = [1, 1]} : vector<36x128xbf16> to vector<4x128xbf16>
    %cst_6 = arith.constant dense<0.000000e+00> : vector<196x128xf32>
    %14 = tpu.matmul %12, %13, %cst_6 {dimension_numbers = #tpu.dot_dimension_numbers<[1], [0], [0], [1], [0, 0, 1, 1], [], []>} : vector<196x4xbf16>, vector<4x128xbf16>, vector<196x128xf32> -> vector<196x128xf32>
    %15 = arith.addf %10, %14 : vector<196x128xf32>
    %16 = vector.extract_strided_slice %1 {offsets = [0, 2, 0], sizes = [14, 14, 4], strides = [1, 1, 1]} : vector<16x16x4xbf16> to vector<14x14x4xbf16>
    %17 = vector.shape_cast %16 : vector<14x14x4xbf16> to vector<196x4xbf16>
    %18 = vector.extract_strided_slice %4 {offsets = [8, 0], sizes = [4, 128], strides = [1, 1]} : vector<36x128xbf16> to vector<4x128xbf16>
    %cst_7 = arith.constant dense<0.000000e+00> : vector<196x128xf32>
    %19 = tpu.matmul %17, %18, %cst_7 {dimension_numbers = #tpu.dot_dimension_numbers<[1], [0], [0], [1], [0, 0, 1, 1], [], []>} : vector<196x4xbf16>, vector<4x128xbf16>, vector<196x128xf32> -> vector<196x128xf32>
    %20 = arith.addf %15, %19 : vector<196x128xf32>
    %21 = vector.extract_strided_slice %1 {offsets = [1, 0, 0], sizes = [14, 14, 4], strides = [1, 1, 1]} : vector<16x16x4xbf16> to vector<14x14x4xbf16>
    %22 = vector.shape_cast %21 : vector<14x14x4xbf16> to vector<196x4xbf16>
    %23 = vector.extract_strided_slice %4 {offsets = [12, 0], sizes = [4, 128], strides = [1, 1]} : vector<36x128xbf16> to vector<4x128xbf16>
    %cst_8 = arith.constant dense<0.000000e+00> : vector<196x128xf32>
    %24 = tpu.matmul %22, %23, %cst_8 {dimension_numbers = #tpu.dot_dimension_numbers<[1], [0], [0], [1], [0, 0, 1, 1], [], []>} : vector<196x4xbf16>, vector<4x128xbf16>, vector<196x128xf32> -> vector<196x128xf32>
    %25 = arith.addf %20, %24 : vector<196x128xf32>
    %26 = vector.extract_strided_slice %1 {offsets = [1, 1, 0], sizes = [14, 14, 4], strides = [1, 1, 1]} : vector<16x16x4xbf16> to vector<14x14x4xbf16>
    %27 = vector.shape_cast %26 : vector<14x14x4xbf16> to vector<196x4xbf16>
    %28 = vector.extract_strided_slice %4 {offsets = [16, 0], sizes = [4, 128], strides = [1, 1]} : vector<36x128xbf16> to vector<4x128xbf16>
    %cst_9 = arith.constant dense<0.000000e+00> : vector<196x128xf32>
    %29 = tpu.matmul %27, %28, %cst_9 {dimension_numbers = #tpu.dot_dimension_numbers<[1], [0], [0], [1], [0, 0, 1, 1], [], []>} : vector<196x4xbf16>, vector<4x128xbf16>, vector<196x128xf32> -> vector<196x128xf32>
    %30 = arith.addf %25, %29 : vector<196x128xf32>
    %31 = vector.extract_strided_slice %1 {offsets = [1, 2, 0], sizes = [14, 14, 4], strides = [1, 1, 1]} : vector<16x16x4xbf16> to vector<14x14x4xbf16>
    %32 = vector.shape_cast %31 : vector<14x14x4xbf16> to vector<196x4xbf16>
    %33 = vector.extract_strided_slice %4 {offsets = [20, 0], sizes = [4, 128], strides = [1, 1]} : vector<36x128xbf16> to vector<4x128xbf16>
    %cst_10 = arith.constant dense<0.000000e+00> : vector<196x128xf32>
    %34 = tpu.matmul %32, %33, %cst_10 {dimension_numbers = #tpu.dot_dimension_numbers<[1], [0], [0], [1], [0, 0, 1, 1], [], []>} : vector<196x4xbf16>, vector<4x128xbf16>, vector<196x128xf32> -> vector<196x128xf32>
    %35 = arith.addf %30, %34 : vector<196x128xf32>
    %36 = vector.extract_strided_slice %1 {offsets = [2, 0, 0], sizes = [14, 14, 4], strides = [1, 1, 1]} : vector<16x16x4xbf16> to vector<14x14x4xbf16>
    %37 = vector.shape_cast %36 : vector<14x14x4xbf16> to vector<196x4xbf16>
    %38 = vector.extract_strided_slice %4 {offsets = [24, 0], sizes = [4, 128], strides = [1, 1]} : vector<36x128xbf16> to vector<4x128xbf16>
    %cst_11 = arith.constant dense<0.000000e+00> : vector<196x128xf32>
    %39 = tpu.matmul %37, %38, %cst_11 {dimension_numbers = #tpu.dot_dimension_numbers<[1], [0], [0], [1], [0, 0, 1, 1], [], []>} : vector<196x4xbf16>, vector<4x128xbf16>, vector<196x128xf32> -> vector<196x128xf32>
    %40 = arith.addf %35, %39 : vector<196x128xf32>
    %41 = vector.extract_strided_slice %1 {offsets = [2, 1, 0], sizes = [14, 14, 4], strides = [1, 1, 1]} : vector<16x16x4xbf16> to vector<14x14x4xbf16>
    %42 = vector.shape_cast %41 : vector<14x14x4xbf16> to vector<196x4xbf16>
    %43 = vector.extract_strided_slice %4 {offsets = [28, 0], sizes = [4, 128], strides = [1, 1]} : vector<36x128xbf16> to vector<4x128xbf16>
    %cst_12 = arith.constant dense<0.000000e+00> : vector<196x128xf32>
    %44 = tpu.matmul %42, %43, %cst_12 {dimension_numbers = #tpu.dot_dimension_numbers<[1], [0], [0], [1], [0, 0, 1, 1], [], []>} : vector<196x4xbf16>, vector<4x128xbf16>, vector<196x128xf32> -> vector<196x128xf32>
    %45 = arith.addf %40, %44 : vector<196x128xf32>
    %46 = vector.extract_strided_slice %1 {offsets = [2, 2, 0], sizes = [14, 14, 4], strides = [1, 1, 1]} : vector<16x16x4xbf16> to vector<14x14x4xbf16>
    %47 = vector.shape_cast %46 : vector<14x14x4xbf16> to vector<196x4xbf16>
    %48 = vector.extract_strided_slice %4 {offsets = [32, 0], sizes = [4, 128], strides = [1, 1]} : vector<36x128xbf16> to vector<4x128xbf16>
    %cst_13 = arith.constant dense<0.000000e+00> : vector<196x128xf32>
    %49 = tpu.matmul %47, %48, %cst_13 {dimension_numbers = #tpu.dot_dimension_numbers<[1], [0], [0], [1], [0, 0, 1, 1], [], []>} : vector<196x4xbf16>, vector<4x128xbf16>, vector<196x128xf32> -> vector<196x128xf32>
    %50 = arith.addf %45, %49 : vector<196x128xf32>
    %51 = arith.index_cast %arg1 : i32 to index
    %c0_14 = arith.constant 0 : index
    %c0_15 = arith.constant 0 : index
    %52 = vector.load %arg4[%51, %c0_14, %c0_15] : memref<1x1x128xf32, #tpu.memory_space<vmem>>, vector<1x1x128xf32>
    %53 = vector.shape_cast %52 : vector<1x1x128xf32> to vector<1x128xf32>
    %54 = vector.broadcast %53 : vector<1x128xf32> to vector<196x128xf32>
    %55 = arith.addf %50, %54 : vector<196x128xf32>
    %cst_16 = arith.constant 0.000000e+00 : f32
    %56 = vector.broadcast %cst_16 : f32 to vector<196x128xf32>
    %57 = arith.cmpf oge, %55, %56 : vector<196x128xf32>
    %cst_17 = arith.constant 1.41421354 : f32
    %cst_18 = arith.constant 0.282842726 : f32
    %58 = vector.broadcast %cst_17 : f32 to vector<196x128xf32>
    %59 = vector.broadcast %cst_18 : f32 to vector<196x128xf32>
    %60 = arith.select %57, %58, %59 : vector<196x128xi1>, vector<196x128xf32>
    %61 = arith.mulf %55, %60 : vector<196x128xf32>
    %c0_19 = arith.constant 0 : index
    %c0_20 = arith.constant 0 : index
    %c0_21 = arith.constant 0 : index
    %62 = vector.load %arg5[%c0_19, %c0_20, %c0_21] : memref<1x196x128xf32, #tpu.memory_space<vmem>>, vector<1x196x128xf32>
    %63 = vector.shape_cast %62 : vector<1x196x128xf32> to vector<196x128xf32>
    %64 = vector.shape_cast %61 : vector<196x128xf32> to vector<1x196x128xf32>
    tpu.vector_store %arg5[%c0_19, %c0_20, %c0_21], %64 {strides = array<i32>} : memref<1x196x128xf32, #tpu.memory_space<vmem>>, vector<1x196x128xf32>,
    return
  }
  func.func @transform_0(%arg0: i32, %arg1: i32) -> (i32, i32, i32, i32) {
    %c0_i32 = arith.constant 0 : i32
    %c0_i32_0 = arith.constant 0 : i32
    %c0_i32_1 = arith.constant 0 : i32
    %c0_i32_2 = arith.constant 0 : i32
    return %arg0, %c0_i32, %c0_i32_0, %c0_i32_1 : i32, i32, i32, i32
  }
  func.func @transform_1(%arg0: i32, %arg1: i32) -> (i32, i32, i32) {
    %c0_i32 = arith.constant 0 : i32
    %c0_i32_0 = arith.constant 0 : i32
    %c0_i32_1 = arith.constant 0 : i32
    %c0_i32_2 = arith.constant 0 : i32
    return %c0_i32, %c0_i32_0, %c0_i32_1 : i32, i32, i32
  }
  func.func @transform_2(%arg0: i32, %arg1: i32) -> (i32, i32, i32) {
    %c0_i32 = arith.constant 0 : i32
    %c0_i32_0 = arith.constant 0 : i32
    %c0_i32_1 = arith.constant 0 : i32
    %c0_i32_2 = arith.constant 0 : i32
    return %c0_i32, %c0_i32_0, %c0_i32_1 : i32, i32, i32
  }
  func.func @transform_3(%arg0: i32, %arg1: i32) -> (i32, i32, i32) {
    %c0_i32 = arith.constant 0 : i32
    %c0_i32_0 = arith.constant 0 : i32
    return %arg0, %c0_i32, %arg1 : i32, i32, i32
  }
}

</mosaic_0001>

<bundles_post_ra>
// kernel: tpu_custom_call.1
= control target key start
LH: loop header
LB: loop body
LE: loop exit
PB: predicated region body
PF: predicated region fallthrough
CT: control target
= control target key end

     0   :  { %s8670_s12 = smov 0   ;;  %s8672_s13 = smov 0   ;;  %s12317_s0 = inlined_call_operand.vmem [shape: bf16[2,16,16,4], index: 0, kind: input, shape index: {}]   ;;  %s12318_s1 = inlined_call_operand.vmem [shape: bf16[1,36,128], index: 1, kind: input, shape index: {}]   ;;  %s12319_s2 = inlined_call_operand.vmem [shape: f32[1,1,128], index: 2, kind: input, shape index: {}]   ;;  %s12320_s3 = inlined_call_operand.vmem [shape: f32[2,196,128], index: 3, kind: output, shape index: {}]  }
   0x1   :  { %s8674_s14 = smov 0  }
   0x2 LB: > { %s25_s15 = sadd.s32 1, %s8640_s13  ;;  %p7670_p0 = scmp.ge.s32.totalorder %s8644_s14, 1  ;;  %s8644_s14 = sphi %s8674_s14, %s13_s14   ;;  %s8640_s13 = sphi %s8672_s13, %s13395_s13   ;;  %s8636_s12 = sphi %s8670_s12, %s13394_s12  }
   0x3   : > { %p27_p1 = scmp.ge.s32.totalorder %s25_s15, 2  ;;  %p151_p2 = scmp.lt.s32.totalorder %s8644_s14, 3 }
   0x5   : > { %s13397_s15 = smov (%p27_p1, %s25_s15), 0  ;;  %p152_p3 = pnand %p7670_p0, %p151_p2 }
   0x7   : > { %155 = sbr.rel (%p152_p3) target bundleno = 827 (0x33b), region = 32 }
   0xe   : > { %v227_v0 = vld [vmem:[%s12318_s1] sm:$0xf]  ;;  %vm2392_vm0 = vcmask 1041408   ;;  %p178_p4 = scmp.lt.s32.totalorder %s8636_s12, 1  ;;  %v271_v1 = vlaneseq  ;;  %v12321_v2 = vmov 0.0   ;;  %vm8647_vm3 = vmmov 0  }
   0xf   : > { %8100 = vmatprep.subr.bf16.mxu0 %v12321_v2  ;;  %8586 = vmatprep.subr.bf16.mxu1 %v12321_v2  ;;  %v7800_v3 = vcombine.low %v227_v0, %v227_v0  ;;  %vm932_vm1 = vsmask.f32 256  ;;  %vm933_vm2 = vsmask.f32 1284  ;;  %v8648_v4 = vmov 1966171168  }
  0x10   : > { %8102 = vmatprep.mubr.msk.bf16.mxu0 %vm8647_vm3, %v12321_v2  ;;  %8130 = vmatprep.mubr.msk.bf16.mxu1 %vm8647_vm3, %v12321_v2  ;;  %s13399_s12 = smov (!%p178_p4, %s8636_s12), 1  ;;  %v269_v5 = vunpack.c.l.s4 %v8648_v4  ;;  %v272_v6 = vshrl.u32 %v271_v1, 7  ;;  %vm934_vm4 = vmor %vm932_vm1, %vm933_vm2  ;;  %vm935_vm5 = vsmask.f32 2312  ;;  %vm937_vm6 = vsmask.f32 3340 }
  0x11   : > { %v2351_v7 = vrot.slane %v7800_v3, 2  ;;  %vm936_vm7 = vmor %vm934_vm4, %vm935_vm5  ;;  %vm939_vm8 = vsmask.f32 4368  ;;  %vm941_vm9 = vsmask.f32 5396  ;;  %s7973_s18 = sshll.u32 %s13399_s12, 7 }
  0x12   : > { %v270_v8 = vunpack.c.0.s8 %v269_v5  ;;  %vm938_vm10 = vmor %vm936_vm7, %vm937_vm6  ;;  %vm943_vm11 = vsmask.f32 6424  ;;  %s8704_s21 = scalar_lea.vmem %s12317_s0, %s7973_s18  ;;  %vm945_vm15 = vsmask.f32 7452  ;;  %v8726_v21 = vsel %vm2392_vm0, %v227_v0, 0  ;;  %s8588_s7 = smul.u32 200, %s13399_s12 }
  0x13   : > { %v2394_v9 = vsel %vm2392_vm0, %v2351_v7, 0  ;;  %vm940_vm12 = vmor %vm938_vm10, %vm939_vm8  ;;  %v7674_v10 = vld.sshfl [vmem:[%s8704_s21] sm:$0x33 pattern:$0x75316420]  ;;  %v12707_v25 = vmov 0 }
  0x14   : > { %8101 = vmatpush3.bf16.msra.mxu0 %v2394_v9  ;;  %8587 = vmatpush3.bf16.msra.mxu1 %v2394_v9  ;;  %v8707_v11 = vsub.s32 %v270_v8, %v272_v6  ;;  %vm942_vm13 = vmor %vm940_vm12, %vm941_vm9  ;;  %v7675_v12 = vld.sshfl [vmem:[%s8704_s21 + $0x4] sm:$0x33 pattern:$0x75316420]  ;;  %v267_v13 = vcombine.high %v7674_v10, %v7674_v10  ;;  %vm2352_vm2 = vcmask 31744   ;;  %s12212_s10 = scalar_lea.vmem %s12320_s3, %s8588_s7 }
  0x15   : > { %8208 = vmatprep.subr.bf16.mxu0 %v12321_v2  ;;  %vm944_vm14 = vmor %vm942_vm13, %vm943_vm11  ;;  %8154 = vmatprep.subr.bf16.mxu1 %v12321_v2  ;;  %v7676_v14 = vld.sshfl [vmem:[%s8704_s21 + $0x8] sm:$0x33 pattern:$0x75316420]  ;;  %v291_v16 = vcombine.high %v7675_v12, %v7675_v12  ;;  %v228_v43 = vld [vmem:[%s12318_s1 + $0x4] sm:$0xf] }
  0x16   : > { %v8714_v15 = vrot.slane %v7674_v10, %v8707_v11  ;;  %v8717_v17 = vrot.slane %v7675_v12, %v8707_v11  ;;  %v8720_v18 = vrot.slane %v267_v13, %v8707_v11  ;;  %v314_v19 = vcombine.high %v7676_v14, %v7676_v14  ;;  %vm8739_vm1 = vmor %vm944_vm14, %vm945_vm15  ;;  %v7690_v48 = vld.sshfl [vmem:[%s8704_s21 + $0x40] sm:$0x33 pattern:$0x75316420] }
  0x17   : > { %v8723_v20 = vrot.slane %v7676_v14, %v8707_v11  ;;  %v8733_v23 = vrot.slane %v291_v16, %v8707_v11  ;;  %v12708_v25 = vsel %vm8739_vm1, 4294967295, %v12707_v25  ;;  %v7691_v57 = vld.sshfl [vmem:[%s8704_s21 + $0x44] sm:$0x33 pattern:$0x75316420]  ;;  %v643_v60 = vcombine.high %v7690_v48, %v7690_v48 }
  0x18   : > { %v8730_v22 = vcombine.high %v8714_v15, %v8714_v15  ;;  %v8737_v24 = vcombine.high %v8717_v17, %v8717_v17  ;;  %12709 = vst [vmem:[#allocation2_spill] sm:$0xff] %v12708_v25  ;;  %v948_v26 = vshrl.u32 %v8714_v15, 16  ;;  %v8746_v27 = vcombine.high %v8720_v18, %v8720_v18  ;;  %v7692_v59 = vld.sshfl [vmem:[%s8704_s21 + $0x48] sm:$0x33 pattern:$0x75316420] }
  0x19   : > { %v8749_v28 = vrot.slane %v314_v19, %v8707_v11  ;;  %v953_v29 = vshll.u32 %v8720_v18, 16  ;;  %v956_v30 = vshrl.u32 %v8720_v18, 16  ;;  %v8755_v31 = vcombine.high %v8733_v23, %v8733_v23 }
  0x1a   : > { %v961_v32 = vshll.u32 %v8730_v22, 16  ;;  %v964_v33 = vshrl.u32 %v8730_v22, 16  ;;  %v977_v34 = vshll.u32 %v8717_v17, 16  ;;  %v969_v36 = vshll.u32 %v8746_v27, 16 }
  0x1b   : > { %v955_v35 = vsel %vm8739_vm1, %v948_v26, %v953_v29  ;;  %v972_v37 = vshrl.u32 %v8746_v27, 16  ;;  %v980_v38 = vshrl.u32 %v8717_v17, 16  ;;  %v985_v40 = vshll.u32 %v8733_v23, 16 }
  0x1c   : > { %v963_v39 = vsel %vm8739_vm1, %v956_v30, %v961_v32  ;;  %v988_v41 = vshrl.u32 %v8733_v23, 16  ;;  %v993_v42 = vshll.u32 %v8737_v24, 16  ;;  %v971_v44 = vsel %vm8739_vm1, %v964_v33, %v969_v36 }
  0x1d   : > { %v979_v45 = vsel %vm8739_vm1, %v972_v37, %v977_v34  ;;  %v996_v46 = vshrl.u32 %v8737_v24, 16  ;;  %v1001_v47 = vshll.u32 %v8755_v31, 16  ;;  %v987_v49 = vsel %vm8739_vm1, %v980_v38, %v985_v40 }
  0x1e   : > { %v995_v50 = vsel %vm8739_vm1, %v988_v41, %v993_v42  ;;  %v1005_v51 = vshrl.u32 %v8723_v20, 16  ;;  %v1010_v52 = vshll.u32 %v8749_v28, 16  ;;  %v1745_v54 = vcombine.low %v955_v35, %v963_v39 }
  0x1f   : > { %v1003_v53 = vsel %vm8739_vm1, %v996_v46, %v1001_v47  ;;  %v1746_v55 = vcombine.low %v971_v44, %v979_v45  ;;  %v1747_v56 = vcombine.low %v987_v49, %v995_v50  ;;  %v8795_v61 = vrot.slane %v7690_v48, %v8707_v11 }
  0x20   : > { %v8791_v58 = vsel %vm8739_vm1, %v1005_v51, %v1010_v52  ;;  %v3956_v62 = vsel %vm2392_vm0, %v228_v43, 0  ;;  %v1755_v0 = vrot.slane %v1745_v54, %v8707_v11  ;;  %v8803_v4 = vrot.slane %v643_v60, %v8707_v11 }
  0x21   : > { %12710 = vst [vmem:[#allocation3_spill] sm:$0xff] %v8791_v58  ;;  %12711 = vst [vmem:[#allocation4_spill] sm:$0xff] %v8795_v61  ;;  %v1748_v63 = vcombine.low %v1003_v53, %v8791_v58  ;;  %v1762_v1 = vrot.slane %v1746_v55, %v8707_v11  ;;  %v1769_v3 = vrot.slane %v1747_v56, %v8707_v11  ;;  %v1404_v19 = vshrl.u32 %v8795_v61, 16 }
  0x22   : > { %12712 = vst [vmem:[#allocation5_spill] sm:$0xff] %v8803_v4  ;;  %v8807_v5 = vcombine.high %v8795_v61, %v8795_v61  ;;  %v667_v6 = vcombine.high %v7691_v57, %v7691_v57  ;;  %v8810_v7 = vrot.slane %v7691_v57, %v8707_v11  ;;  %v690_v10 = vcombine.high %v7692_v59, %v7692_v59  ;;  %v7677_v57 = vld.sshfl [vmem:[%s8704_s21 + $0xc] sm:$0x33 pattern:$0x75316420] }
  0x23   : > { %v1776_v8 = vrot.slane %v1748_v63, %v8707_v11  ;;  %v1777_v9 = vcombine.low %v1755_v0, %v1762_v1  ;;  %v8814_v12 = vrot.slane %v7692_v59, %v8707_v11  ;;  %v8818_v13 = vcombine.high %v8803_v4, %v8803_v4  ;;  %v7678_v0 = vld.sshfl [vmem:[%s8704_s21 + $0x10] sm:$0x33 pattern:$0x75316420] }
  0x24   : > { %12713 = vst [vmem:[#allocation6_spill] sm:$0xff] %v8807_v5  ;;  %12714 = vst [vmem:[#allocation7_spill] sm:$0xff] %v8810_v7  ;;  %v8821_v14 = vrot.slane %v667_v6, %v8707_v11  ;;  %v8825_v16 = vcombine.high %v8810_v7, %v8810_v7  ;;  %v8830_v30 = vrot.slane %v690_v10, %v8707_v11  ;;  %v1409_v32 = vshll.u32 %v8803_v4, 16 }
  0x25   : > { %12715 = vst [vmem:[#allocation8_spill] sm:$0xff] %v8814_v12  ;;  %12716 = vst [vmem:[#allocation9_spill] sm:$0xff] %v8818_v13  ;;  %v1778_v26 = vcombine.low %v1769_v3, %v1776_v8  ;;  %v1785_v29 = vrot.slane %v1777_v9, %v8707_v11  ;;  %v1412_v34 = vshrl.u32 %v8803_v4, 16  ;;  %v1417_v35 = vshll.u32 %v8807_v5, 16 }
  0x26   : > { %12717 = vst [vmem:[#allocation10_spill] sm:$0xff] %v8821_v14  ;;  %12718 = vst [vmem:[#allocation11_spill] sm:$0xff] %v8825_v16  ;;  %v8835_v33 = vcombine.high %v8821_v14, %v8821_v14  ;;  %v1420_v36 = vshrl.u32 %v8807_v5, 16  ;;  %v8843_v38 = vsel %vm8739_vm1, %v1404_v19, %v1409_v32  ;;  %v1425_v39 = vshll.u32 %v8818_v13, 16 }
  0x27   : > { %12719 = vst [vmem:[#allocation12_spill] sm:$0xff] %v8830_v30  ;;  %v1792_v37 = vrot.slane %v1778_v26, %v8707_v11  ;;  %12721 = vst [vmem:[#allocation14_spill] sm:$0xff] %v8843_v38  ;;  %v1428_v40 = vshrl.u32 %v8818_v13, 16  ;;  %v8849_v41 = vsel %vm8739_vm1, %v1412_v34, %v1417_v35  ;;  %v1433_v42 = vshll.u32 %v8810_v7, 16 }
  0x28   : > { %12720 = vst [vmem:[#allocation13_spill] sm:$0xff] %v8835_v33  ;;  %12722 = vst [vmem:[#allocation15_spill] sm:$0xff] %v8849_v41  ;;  %v1436_v43 = vshrl.u32 %v8810_v7, 16  ;;  %v1441_v44 = vshll.u32 %v8821_v14, 16  ;;  %v8856_v46 = vsel %vm8739_vm1, %v1420_v36, %v1425_v39  ;;  %v1444_v47 = vshrl.u32 %v8821_v14, 16 }
  0x29   : > { %v1793_v45 = vcombine.low %v1785_v29, %v1792_v37  ;;  %12723 = vst [vmem:[#allocation16_spill] sm:$0xff] %v8856_v46  ;;  %v1449_v48 = vshll.u32 %v8825_v16, 16  ;;  %v8862_v49 = vsel %vm8739_vm1, %v1428_v40, %v1433_v42  ;;  %v1452_v51 = vshrl.u32 %v8825_v16, 16 }
  0x2a   : > { %12724 = vst [vmem:[#allocation17_spill] sm:$0xff] %v8862_v49  ;;  %v8866_v50 = vsel %vm8739_vm1, %v1436_v43, %v1441_v44  ;;  %v1457_v52 = vshll.u32 %v8835_v33, 16  ;;  %v1461_v54 = vshrl.u32 %v8814_v12, 16  ;;  %v1466_v55 = vshll.u32 %v8830_v30, 16 }
  0x2b   : > { %12725 = vst [vmem:[#allocation18_spill] sm:$0xff] %v8866_v50  ;;  %8103 = vmatmul.mubr.msk.bf16.vlgmr.msra.gmra.mrb[0].mxu0 %vm2352_vm2, %v1793_v45  ;;  %v8873_v53 = vsel %vm8739_vm1, %v1444_v47, %v1449_v48  ;;  %v2088_v56 = vcombine.low %v8843_v38, %v8849_v41  ;;  %v2089_v60 = vcombine.low %v8856_v46, %v8862_v49  ;;  %v1013_v1 = vshrl.u32 %v8749_v28, 16  ;;  %v7679_v38 = vld.sshfl [vmem:[%s8704_s21 + $0x14] sm:$0x33 pattern:$0x75316420] }
  0x2c   : > { %12726 = vst [vmem:[#allocation19_spill] sm:$0xff] %v8873_v53  ;;  %v8882_v59 = vsel %vm8739_vm1, %v1452_v51, %v1457_v52  ;;  %v2090_v63 = vcombine.low %v8866_v50, %v8873_v53  ;;  %8209 = vmatpush3.bf16.msra.mxu0 %v3956_v62  ;;  %8106 = vmatprep.mubr.msk.bf16.mxu0 %vm8647_vm3, %v12321_v2 }
  0x2d   : > { %12727 = vst [vmem:[#allocation20_spill] sm:$0xff] %v8882_v59  ;;  %v8894_v3 = vsel %vm8739_vm1, %v1461_v54, %v1466_v55  ;;  %v8897_v6 = vrot.slane %v2088_v56, %v8707_v11  ;;  %v8901_v8 = vcombine.high %v8723_v20, %v8723_v20  ;;  %v8905_v62 = vcombine.high %v8749_v28, %v8749_v28 }
  0x2e   : > { %12728 = vst [vmem:[#allocation21_spill] sm:$0xff] %v8894_v3  ;;  %8316 = vmatprep.subr.bf16.mxu0 %v12321_v2  ;;  %v2091_v9 = vcombine.low %v8882_v59, %v8894_v3  ;;  %v8911_v10 = vrot.slane %v2089_v60, %v8707_v11  ;;  %v8914_v19 = vrot.slane %v2090_v63, %v8707_v11 }
  0x2f   : > { %12729 = vst [vmem:[#allocation22_spill] sm:$0xff] %v8897_v6  ;;  %v338_v26 = vcombine.high %v7677_v57, %v7677_v57  ;;  %v8917_v29 = vrot.slane %v7677_v57, %v8707_v11  ;;  %v361_v32 = vcombine.high %v7678_v0, %v7678_v0  ;;  %v8920_v34 = vrot.slane %v7678_v0, %v8707_v11 }
  0x30   : > { %12730 = vst [vmem:[#allocation23_spill] sm:$0xff] %v8911_v10  ;;  %12731 = vst [vmem:[#allocation24_spill] sm:$0xff] %v8914_v19  ;;  %v1018_v35 = vshll.u32 %v8901_v8, 16  ;;  %v8924_v36 = vrot.slane %v2091_v9, %v8707_v11  ;;  %v2120_v37 = vcombine.low %v8897_v6, %v8911_v10  ;;  %v1021_v40 = vshrl.u32 %v8901_v8, 16 }
  0x31   : > { %v8929_v39 = vrot.slane %v338_v26, %v8707_v11  ;;  %v8934_v42 = vcombine.high %v8917_v29, %v8917_v29  ;;  %v8937_v43 = vrot.slane %v361_v32, %v8707_v11  ;;  %v8941_v44 = vcombine.high %v8920_v34, %v8920_v34 }
  0x32   : > { %12732 = vst [vmem:[#allocation25_spill] sm:$0xff] %v8924_v36  ;;  %v8945_v45 = vsel %vm8739_vm1, %v1013_v1, %v1018_v35  ;;  %v2121_v47 = vcombine.low %v8914_v19, %v8924_v36  ;;  %v2128_v48 = vrot.slane %v2120_v37, %v8707_v11  ;;  %v1026_v52 = vshll.u32 %v8905_v62, 16  ;;  %v7694_v36 = vld.sshfl [vmem:[%s8704_s21 + $0x50] sm:$0x33 pattern:$0x75316420] }
  0x33   : > { %12733 = vst [vmem:[#allocation26_spill] sm:$0xff] %v8945_v45  ;;  %v8952_v51 = vcombine.high %v8929_v39, %v8929_v39  ;;  %v1029_v54 = vshrl.u32 %v8905_v62, 16  ;;  %v1034_v55 = vshll.u32 %v8917_v29, 16  ;;  %v1037_v56 = vshrl.u32 %v8917_v29, 16 }
  0x34   : > { %v1042_v57 = vshll.u32 %v8929_v39, 16  ;;  %v2135_v60 = vrot.slane %v2121_v47, %v8707_v11  ;;  %v8962_v63 = vsel %vm8739_vm1, %v1021_v40, %v1026_v52  ;;  %v1045_v0 = vshrl.u32 %v8929_v39, 16 }
  0x35   : > { %12734 = vst [vmem:[#allocation27_spill] sm:$0xff] %v8962_v63  ;;  %v1050_v1 = vshll.u32 %v8934_v42, 16  ;;  %v8968_v9 = vsel %vm8739_vm1, %v1029_v54, %v1034_v55  ;;  %v1053_v32 = vshrl.u32 %v8934_v42, 16  ;;  %v1058_v35 = vshll.u32 %v8952_v51, 16 }
  0x36   : > { %12735 = vst [vmem:[#allocation28_spill] sm:$0xff] %v8968_v9  ;;  %v8972_v26 = vsel %vm8739_vm1, %v1037_v56, %v1042_v57  ;;  %v2136_v37 = vcombine.low %v2128_v48, %v2135_v60  ;;  %v1062_v47 = vshrl.u32 %v8920_v34, 16  ;;  %v1067_v52 = vshll.u32 %v8937_v43, 16 }
  0x37   : > { %12736 = vst [vmem:[#allocation29_spill] sm:$0xff] %v8972_v26  ;;  %v8978_v40 = vsel %vm8739_vm1, %v1045_v0, %v1050_v1  ;;  %v8984_v54 = vsel %vm8739_vm1, %v1053_v32, %v1058_v35  ;;  %v1070_v55 = vshrl.u32 %v8937_v43, 16  ;;  %v1075_v56 = vshll.u32 %v8941_v44, 16 }
  0x38   : > { %12737 = vst [vmem:[#allocation30_spill] sm:$0xff] %v8978_v40  ;;  %12738 = vst [vmem:[#allocation31_spill] sm:$0xff] %v8984_v54  ;;  %v1794_v48 = vcombine.low %v8945_v45, %v8962_v63  ;;  %8131 = vmatmul.mubr.msk.bf16.vlgmr.msra.gmra.mrb[0].mxu1 %vm2352_vm2, %v2136_v37  ;;  %v8993_v57 = vsel %vm8739_vm1, %v1062_v47, %v1067_v52  ;;  %v1795_v60 = vcombine.low %v8968_v9, %v8972_v26  ;;  %v7693_v47 = vld.sshfl [vmem:[%s8704_s21 + $0x4c] sm:$0x33 pattern:$0x75316420] }
  0x39   : > { %12739 = vst [vmem:[#allocation32_spill] sm:$0xff] %v8993_v57  ;;  %v1796_v0 = vcombine.low %v8978_v40, %v8984_v54  ;;  %8155 = vmatpush3.bf16.msra.mxu1 %v8726_v21  ;;  %8134 = vmatprep.mubr.msk.bf16.mxu1 %vm8647_vm3, %v12321_v2  ;;  %v9006_v32 = vsel %vm8739_vm1, %v1070_v55, %v1075_v56  ;;  %v12741_v10 = vmov 0.0  }
  0x3a   : > { %12740 = vst [vmem:[#allocation33_spill] sm:$0xff] %v9006_v32  ;;  %v1804_v35 = vrot.slane %v1794_v48, %v8707_v11  ;;  %v1797_v52 = vcombine.low %v8993_v57, %v9006_v32  ;;  %v1811_v1 = vrot.slane %v1795_v60, %v8707_v11  ;;  %8262 = vmatprep.subr.bf16.mxu1 %v12741_v10 }
  0x3b   : > { %v1818_v21 = vrot.slane %v1796_v0, %v8707_v11  ;;  %v9024_v56 = vcombine.high %v8814_v12, %v8814_v12  ;;  %v9031_v60 = vcombine.high %v8830_v30, %v8830_v30  ;;  %v1469_v0 = vshrl.u32 %v8830_v30, 16 }
  0x3c   : > { %v9027_v48 = vrot.slane %v1797_v52, %v8707_v11  ;;  %v1826_v37 = vcombine.low %v1804_v35, %v1811_v1  ;;  %v714_v2 = vcombine.high %v7693_v47, %v7693_v47  ;;  %v9035_v19 = vrot.slane %v7693_v47, %v8707_v11 }
  0x3d   : > { %12742 = vst [vmem:[#allocation34_spill] sm:$0xff] %v9024_v56  ;;  %12744 = vst [vmem:[#allocation36_spill] sm:$0xff] %v9031_v60  ;;  %v737_v6 = vcombine.high %v7694_v36, %v7694_v36  ;;  %v9040_v53 = vrot.slane %v7694_v36, %v8707_v11  ;;  %v1474_v1 = vshll.u32 %v9024_v56, 16  ;;  %v1482_v59 = vshll.u32 %v9031_v60, 16 }
  0x3e   : > { %12743 = vst [vmem:[#allocation35_spill] sm:$0xff] %v9027_v48  ;;  %12745 = vst [vmem:[#allocation37_spill] sm:$0xff] %v9035_v19  ;;  %v1827_v55 = vcombine.low %v1818_v21, %v9027_v48  ;;  %v1834_v3 = vrot.slane %v1826_v37, %v8707_v11  ;;  %v9044_v35 = vrot.slane %v714_v2, %v8707_v11  ;;  %v1477_v21 = vshrl.u32 %v9024_v56, 16 }
  0x3f   : > { %12746 = vst [vmem:[#allocation38_spill] sm:$0xff] %v9040_v53  ;;  %v9048_v52 = vcombine.high %v9035_v19, %v9035_v19  ;;  %v9051_v47 = vrot.slane %v737_v6, %v8707_v11  ;;  %v9057_v36 = vcombine.high %v9040_v53, %v9040_v53  ;;  %v9061_v2 = vsel %vm8739_vm1, %v1469_v0, %v1474_v1  ;;  %v7697_v56 = vld.sshfl [vmem:[%s8704_s21 + $0x5c] sm:$0x33 pattern:$0x75316420] }
  0x40   : > { %12747 = vst [vmem:[#allocation39_spill] sm:$0xff] %v9044_v35  ;;  %v1841_v37 = vrot.slane %v1827_v55, %v8707_v11  ;;  %12751 = vst [vmem:[#allocation43_spill] sm:$0xff] %v9061_v2  ;;  %v9066_v49 = vcombine.high %v9044_v35, %v9044_v35  ;;  %v1485_v6 = vshrl.u32 %v9031_v60, 16  ;;  %v1490_v50 = vshll.u32 %v9035_v19, 16 }
  0x41   : > { %12748 = vst [vmem:[#allocation40_spill] sm:$0xff] %v9048_v52  ;;  %12749 = vst [vmem:[#allocation41_spill] sm:$0xff] %v9051_v47  ;;  %v1493_v55 = vshrl.u32 %v9035_v19, 16  ;;  %v9073_v46 = vsel %vm8739_vm1, %v1477_v21, %v1482_v59  ;;  %v1498_v0 = vshll.u32 %v9044_v35, 16  ;;  %v1501_v1 = vshrl.u32 %v9044_v35, 16 }
  0x42   : > { %12750 = vst [vmem:[#allocation42_spill] sm:$0xff] %v9057_v36  ;;  %12752 = vst [vmem:[#allocation44_spill] sm:$0xff] %v9066_v49  ;;  %v1842_v41 = vcombine.low %v1834_v3, %v1841_v37  ;;  %v9080_v32 = vsel %vm8739_vm1, %v1485_v6, %v1490_v50  ;;  %v1506_v57 = vshll.u32 %v9048_v52, 16  ;;  %v1509_v54 = vshrl.u32 %v9048_v52, 16 }
  0x43   : > { %12753 = vst [vmem:[#allocation45_spill] sm:$0xff] %v9073_v46  ;;  %12754 = vst [vmem:[#allocation46_spill] sm:$0xff] %v9080_v32  ;;  %v1514_v3 = vshll.u32 %v9066_v49, 16  ;;  %v9088_v59 = vsel %vm8739_vm1, %v1493_v55, %v1498_v0  ;;  %v1518_v21 = vshrl.u32 %v9040_v53, 16  ;;  %v1523_v37 = vshll.u32 %v9051_v47, 16 }
  0x44   : > { %8107 = vmatmul.mubr.msk.bf16.gmra.mrb[4].mxu0 %vm2352_vm2, %v1842_v41  ;;  %12755 = vst [vmem:[#allocation47_spill] sm:$0xff] %v9088_v59  ;;  %v1526_v40 = vshrl.u32 %v9051_v47, 16  ;;  %v9095_v50 = vsel %vm8739_vm1, %v1501_v1, %v1506_v57  ;;  %v1531_v41 = vshll.u32 %v9057_v36, 16  ;;  %v2137_v55 = vcombine.low %v9061_v2, %v9073_v46 }
  0x45   : > { %12756 = vst [vmem:[#allocation48_spill] sm:$0xff] %v9095_v50  ;;  %v9099_v6 = vsel %vm8739_vm1, %v1509_v54, %v1514_v3  ;;  %8110 = vmatprep.mubr.msk.bf16.mxu0 %vm8647_vm3, %v12741_v10  ;;  %v7680_v0 = vld.sshfl [vmem:[%s8704_s21 + $0x18] sm:$0x33 pattern:$0x75316420]  ;;  %v9109_v49 = vsel %vm8739_vm1, %v1518_v21, %v1523_v37  ;;  %v2138_v57 = vcombine.low %v9080_v32, %v9088_v59  ;;  %v1534_v48 = vshrl.u32 %v9057_v36, 16 }
  0x46   : > { %12757 = vst [vmem:[#allocation49_spill] sm:$0xff] %v9099_v6  ;;  %12758 = vst [vmem:[#allocation50_spill] sm:$0xff] %v9109_v49  ;;  %v2139_v54 = vcombine.low %v9095_v50, %v9099_v6  ;;  %v9117_v1 = vcombine.high %v8937_v43, %v8937_v43  ;;  %v9121_v3 = vsel %vm8739_vm1, %v1526_v40, %v1531_v41  ;;  %v7695_v35 = vld.sshfl [vmem:[%s8704_s21 + $0x54] sm:$0x33 pattern:$0x75316420] }
  0x47   : > { %12759 = vst [vmem:[#allocation51_spill] sm:$0xff] %v9121_v3  ;;  %v9124_v46 = vrot.slane %v2137_v55, %v8707_v11  ;;  %v385_v2 = vcombine.high %v7679_v38, %v7679_v38  ;;  %v9127_v21 = vrot.slane %v7679_v38, %v8707_v11  ;;  %v2140_v37 = vcombine.low %v9109_v49, %v9121_v3 }
  0x48   : > { %v9132_v6 = vrot.slane %v2138_v57, %v8707_v11  ;;  %v9135_v59 = vrot.slane %v2139_v54, %v8707_v11  ;;  %v408_v50 = vcombine.high %v7680_v0, %v7680_v0  ;;  %v9145_v38 = vrot.slane %v7680_v0, %v8707_v11 }
  0x49   : > { %12760 = vst [vmem:[#allocation52_spill] sm:$0xff] %v9124_v46  ;;  %12761 = vst [vmem:[#allocation53_spill] sm:$0xff] %v9127_v21  ;;  %v9138_v40 = vrot.slane %v385_v2, %v8707_v11  ;;  %v9142_v41 = vcombine.high %v9127_v21, %v9127_v21  ;;  %v1078_v55 = vshrl.u32 %v8941_v44, 16  ;;  %v9149_v3 = vrot.slane %v2140_v37, %v8707_v11 }
  0x4a   : > { %12762 = vst [vmem:[#allocation54_spill] sm:$0xff] %v9132_v6  ;;  %12763 = vst [vmem:[#allocation55_spill] sm:$0xff] %v9135_v59  ;;  %v2169_v57 = vcombine.low %v9124_v46, %v9132_v6  ;;  %v9154_v54 = vrot.slane %v408_v50, %v8707_v11  ;;  %v1083_v2 = vshll.u32 %v9117_v1, 16  ;;  %v9159_v49 = vcombine.high %v9145_v38, %v9145_v38 }
  0x4b   : > { %12764 = vst [vmem:[#allocation56_spill] sm:$0xff] %v9138_v40  ;;  %12765 = vst [vmem:[#allocation57_spill] sm:$0xff] %v9149_v3  ;;  %v9163_v0 = vcombine.high %v9138_v40, %v9138_v40  ;;  %v1086_v32 = vshrl.u32 %v9117_v1, 16  ;;  %v1091_v37 = vshll.u32 %v9127_v21, 16  ;;  %v2170_v6 = vcombine.low %v9135_v59, %v9149_v3 }
  0x4c   : > { %v2177_v50 = vrot.slane %v2169_v57, %v8707_v11  ;;  %v9172_v46 = vcombine.high %v9154_v54, %v9154_v54  ;;  %v9176_v26 = vsel %vm8739_vm1, %v1078_v55, %v1083_v2  ;;  %v1094_v63 = vshrl.u32 %v9127_v21, 16 }
  0x4d   : > { %12766 = vst [vmem:[#allocation58_spill] sm:$0xff] %v9176_v26  ;;  %v9180_v9 = vsel %vm8739_vm1, %v1086_v32, %v1091_v37  ;;  %v1099_v45 = vshll.u32 %v9138_v40, 16  ;;  %v1102_v3 = vshrl.u32 %v9138_v40, 16  ;;  %v2184_v57 = vrot.slane %v2170_v6, %v8707_v11 }
  0x4e   : > { %12767 = vst [vmem:[#allocation59_spill] sm:$0xff] %v9180_v9  ;;  %v1107_v59 = vshll.u32 %v9142_v41, 16  ;;  %v1110_v58 = vshrl.u32 %v9142_v41, 16  ;;  %v1115_v55 = vshll.u32 %v9163_v0, 16  ;;  %v1119_v2 = vshrl.u32 %v9145_v38, 16 }
  0x4f   : > { %v9191_v32 = vsel %vm8739_vm1, %v1094_v63, %v1099_v45  ;;  %v1124_v37 = vshll.u32 %v9154_v54, 16  ;;  %v1127_v33 = vshrl.u32 %v9154_v54, 16  ;;  %v2185_v13 = vcombine.low %v2177_v50, %v2184_v57 }
  0x50   : > { %12768 = vst [vmem:[#allocation60_spill] sm:$0xff] %v9191_v32  ;;  %v9198_v6 = vsel %vm8739_vm1, %v1102_v3, %v1107_v59  ;;  %v9202_v5 = vsel %vm8739_vm1, %v1110_v58, %v1115_v55  ;;  %v1132_v53 = vshll.u32 %v9159_v49, 16  ;;  %v1135_v63 = vshrl.u32 %v9159_v49, 16 }
  0x51   : > { %12769 = vst [vmem:[#allocation61_spill] sm:$0xff] %v9198_v6  ;;  %12770 = vst [vmem:[#allocation62_spill] sm:$0xff] %v9202_v5  ;;  %v9208_v45 = vsel %vm8739_vm1, %v1119_v2, %v1124_v37  ;;  %v1140_v52 = vshll.u32 %v9172_v46, 16  ;;  %v1843_v50 = vcombine.low %v9176_v26, %v9180_v9  ;;  %8135 = vmatmul.mubr.msk.bf16.gmra.mrb[4].mxu1 %vm2352_vm2, %v2185_v13 }
  0x52   : > { %12771 = vst [vmem:[#allocation63_spill] sm:$0xff] %v9208_v45  ;;  %v7696_v59 = vld.sshfl [vmem:[%s8704_s21 + $0x58] sm:$0x33 pattern:$0x75316420]  ;;  %v9218_v58 = vsel %vm8739_vm1, %v1127_v33, %v1132_v53  ;;  %v1844_v3 = vcombine.low %v9191_v32, %v9198_v6  ;;  %v1845_v57 = vcombine.low %v9202_v5, %v9208_v45  ;;  %v9226_v55 = vcombine.high %v9051_v47, %v9051_v47 }
  0x53   : > { %12772 = vst [vmem:[#allocation64_spill] sm:$0xff] %v9218_v58  ;;  %8138 = vmatprep.mubr.msk.bf16.mxu1 %vm8647_vm3, %v12741_v10  ;;  %v9232_v13 = vsel %vm8739_vm1, %v1135_v63, %v1140_v52  ;;  %v9235_v33 = vrot.slane %v1843_v50, %v8707_v11  ;;  %v761_v53 = vcombine.high %v7695_v35, %v7695_v35 }
  0x54   : > { %12773 = vst [vmem:[#allocation65_spill] sm:$0xff] %v9226_v55  ;;  %12774 = vst [vmem:[#allocation66_spill] sm:$0xff] %v9232_v13  ;;  %v9238_v2 = vrot.slane %v7695_v35, %v8707_v11  ;;  %v1846_v37 = vcombine.low %v9218_v58, %v9232_v13  ;;  %v9243_v45 = vrot.slane %v1844_v3, %v8707_v11 }
  0x55   : > { %12775 = vst [vmem:[#allocation67_spill] sm:$0xff] %v9235_v33  ;;  %v9246_v6 = vrot.slane %v1845_v57, %v8707_v11  ;;  %v784_v5 = vcombine.high %v7696_v59, %v7696_v59  ;;  %v9251_v63 = vrot.slane %v761_v53, %v8707_v11  ;;  %v9258_v50 = vrot.slane %v7696_v59, %v8707_v11 }
  0x56   : > { %12776 = vst [vmem:[#allocation68_spill] sm:$0xff] %v9238_v2  ;;  %12777 = vst [vmem:[#allocation69_spill] sm:$0xff] %v9243_v45  ;;  %v9255_v35 = vcombine.high %v9238_v2, %v9238_v2  ;;  %v9261_v3 = vrot.slane %v1846_v37, %v8707_v11  ;;  %v1875_v57 = vcombine.low %v9235_v33, %v9243_v45  ;;  %v1542_v45 = vshrl.u32 %v9226_v55, 16 }
  0x57   : > { %12778 = vst [vmem:[#allocation70_spill] sm:$0xff] %v9246_v6  ;;  %12779 = vst [vmem:[#allocation71_spill] sm:$0xff] %v9251_v63  ;;  %v9268_v52 = vrot.slane %v784_v5, %v8707_v11  ;;  %v9272_v53 = vcombine.high %v9251_v63, %v9251_v63  ;;  %v9280_v33 = vcombine.high %v9258_v50, %v9258_v50  ;;  %v1539_v5 = vshll.u32 %v9226_v55, 16 }
  0x58   : > { %12780 = vst [vmem:[#allocation72_spill] sm:$0xff] %v9255_v35  ;;  %12781 = vst [vmem:[#allocation73_spill] sm:$0xff] %v9258_v50  ;;  %v1876_v59 = vcombine.low %v9246_v6, %v9261_v3  ;;  %v1883_v37 = vrot.slane %v1875_v57, %v8707_v11  ;;  %v1547_v58 = vshll.u32 %v9238_v2, 16  ;;  %v1550_v9 = vshrl.u32 %v9238_v2, 16 }
  0x59   : > { %12782 = vst [vmem:[#allocation74_spill] sm:$0xff] %v9261_v3  ;;  %12783 = vst [vmem:[#allocation75_spill] sm:$0xff] %v9268_v52  ;;  %v9284_v13 = vcombine.high %v9268_v52, %v9268_v52  ;;  %v1555_v57 = vshll.u32 %v9251_v63, 16  ;;  %v1558_v6 = vshrl.u32 %v9251_v63, 16  ;;  %v1563_v32 = vshll.u32 %v9255_v35, 16 }
  0x5a   : > { %12784 = vst [vmem:[#allocation76_spill] sm:$0xff] %v9272_v53  ;;  %12785 = vst [vmem:[#allocation77_spill] sm:$0xff] %v9280_v33  ;;  %v1890_v3 = vrot.slane %v1876_v59, %v8707_v11  ;;  %v9296_v26 = vsel %vm8739_vm1, %v1534_v48, %v1539_v5  ;;  %v9300_v36 = vsel %vm8739_vm1, %v1542_v45, %v1547_v58  ;;  %v1566_v55 = vshrl.u32 %v9255_v35, 16 }
  0x5b   : > { %12786 = vst [vmem:[#allocation78_spill] sm:$0xff] %v9284_v13  ;;  %12787 = vst [vmem:[#allocation79_spill] sm:$0xff] %v9296_v26  ;;  %v1571_v2 = vshll.u32 %v9272_v53, 16  ;;  %v9306_v47 = vsel %vm8739_vm1, %v1550_v9, %v1555_v57  ;;  %v9310_v63 = vsel %vm8739_vm1, %v1558_v6, %v1563_v32  ;;  %v1575_v48 = vshrl.u32 %v9258_v50, 16 }
  0x5c   : > { %12788 = vst [vmem:[#allocation80_spill] sm:$0xff] %v9300_v36  ;;  %v1891_v59 = vcombine.low %v1883_v37, %v1890_v3  ;;  %12789 = vst [vmem:[#allocation81_spill] sm:$0xff] %v9306_v47  ;;  %v7681_v5 = vld.sshfl [vmem:[%s8704_s21 + $0x1c] sm:$0x33 pattern:$0x75316420]  ;;  %v2186_v6 = vcombine.low %v9296_v26, %v9300_v36  ;;  %v2187_v57 = vcombine.low %v9306_v47, %v9310_v63 }
  0x5d   : > { %12790 = vst [vmem:[#allocation82_spill] sm:$0xff] %v9310_v63  ;;  %v9316_v45 = vsel %vm8739_vm1, %v1566_v55, %v1571_v2  ;;  %v1580_v58 = vshll.u32 %v9268_v52, 16  ;;  %v1583_v3 = vshrl.u32 %v9268_v52, 16  ;;  %v1588_v37 = vshll.u32 %v9280_v33, 16 }
  0x5e   : > { %12791 = vst [vmem:[#allocation83_spill] sm:$0xff] %v9316_v45  ;;  %8111 = vmatmul.mubr.msk.bf16.gmra.mrb[8].mxu0 %vm2352_vm2, %v1891_v59  ;;  %v1591_v9 = vshrl.u32 %v9280_v33, 16  ;;  %v1596_v32 = vshll.u32 %v9284_v13, 16  ;;  %v432_v52 = vcombine.high %v7681_v5, %v7681_v5  ;;  %v9343_v36 = vrot.slane %v7681_v5, %v8707_v11 }
  0x5f   : > { %v7682_v55 = vld.sshfl [vmem:[%s8704_s21 + $0x20] sm:$0x33 pattern:$0x75316420]  ;;  %v9331_v2 = vsel %vm8739_vm1, %v1575_v48, %v1580_v58  ;;  %v9335_v53 = vsel %vm8739_vm1, %v1583_v3, %v1588_v37  ;;  %8114 = vmatprep.mubr.msk.bf16.mxu0 %vm8647_vm3, %v12741_v10  ;;  %v9352_v58 = vrot.slane %v2186_v6, %v8707_v11  ;;  %v9355_v3 = vrot.slane %v2187_v57, %v8707_v11 }
  0x60   : > { %12792 = vst [vmem:[#allocation84_spill] sm:$0xff] %v9331_v2  ;;  %12793 = vst [vmem:[#allocation85_spill] sm:$0xff] %v9335_v53  ;;  %v9340_v59 = vld.sshfl [vmem:[%s8704_s21 + $0x24] sm:$0x33 pattern:$0x75316420]  ;;  %v9347_v63 = vsel %vm8739_vm1, %v1591_v9, %v1596_v32  ;;  %v2188_v48 = vcombine.low %v9316_v45, %v9331_v2  ;;  %v9360_v47 = vrot.slane %v432_v52, %v8707_v11 }
  0x61   : > { %12794 = vst [vmem:[#allocation86_spill] sm:$0xff] %v9347_v63  ;;  %12795 = vst [vmem:[#allocation87_spill] sm:$0xff] %v9352_v58  ;;  %v2189_v37 = vcombine.low %v9335_v53, %v9347_v63  ;;  %v9364_v5 = vcombine.high %v9343_v36, %v9343_v36  ;;  %v455_v9 = vcombine.high %v7682_v55, %v7682_v55  ;;  %v1143_v53 = vshrl.u32 %v9172_v46, 16 }
  0x62   : > { %12796 = vst [vmem:[#allocation88_spill] sm:$0xff] %v9355_v3  ;;  %v9367_v32 = vrot.slane %v2188_v48, %v8707_v11  ;;  %v2218_v6 = vcombine.low %v9352_v58, %v9355_v3  ;;  %v9372_v57 = vrot.slane %v7682_v55, %v8707_v11  ;;  %v9376_v63 = vrot.slane %v9340_v59, %v8707_v11 }
  0x63   : > { %v9379_v52 = vrot.slane %v2189_v37, %v8707_v11  ;;  %v9382_v2 = vrot.slane %v455_v9, %v8707_v11  ;;  %v9386_v48 = vcombine.high %v9360_v47, %v9360_v47  ;;  %v1148_v58 = vshll.u32 %v9343_v36, 16 }
  0x64   : > { %12797 = vst [vmem:[#allocation89_spill] sm:$0xff] %v9367_v32  ;;  %12798 = vst [vmem:[#allocation90_spill] sm:$0xff] %v9376_v63  ;;  %v2226_v3 = vrot.slane %v2218_v6, %v8707_v11  ;;  %v9392_v55 = vcombine.high %v9372_v57, %v9372_v57  ;;  %v1151_v37 = vshrl.u32 %v9343_v36, 16  ;;  %v1156_v26 = vshll.u32 %v9360_v47, 16 }
  0x65   : > { %12799 = vst [vmem:[#allocation91_spill] sm:$0xff] %v9379_v52  ;;  %12800 = vst [vmem:[#allocation92_spill] sm:$0xff] %v9382_v2  ;;  %v2219_v9 = vcombine.low %v9367_v32, %v9379_v52  ;;  %v9400_v45 = vcombine.high %v9382_v2, %v9382_v2  ;;  %v1159_v6 = vshrl.u32 %v9360_v47, 16  ;;  %v9406_v33 = vsel %vm8739_vm1, %v1143_v53, %v1148_v58 }
  0x66   : > { %12801 = vst [vmem:[#allocation93_spill] sm:$0xff] %v9386_v48  ;;  %12802 = vst [vmem:[#allocation94_spill] sm:$0xff] %v9392_v55  ;;  %v1164_v35 = vshll.u32 %v9364_v5, 16  ;;  %v1167_v50 = vshrl.u32 %v9364_v5, 16  ;;  %v1172_v52 = vshll.u32 %v9386_v48, 16  ;;  %v9414_v60 = vsel %vm8739_vm1, %v1151_v37, %v1156_v26 }
  0x67   : > { %12803 = vst [vmem:[#allocation95_spill] sm:$0xff] %v9400_v45  ;;  %12804 = vst [vmem:[#allocation96_spill] sm:$0xff] %v9406_v33  ;;  %v2233_v32 = vrot.slane %v2219_v9, %v8707_v11  ;;  %v1176_v19 = vshrl.u32 %v9372_v57, 16  ;;  %v1181_v30 = vshll.u32 %v9382_v2, 16  ;;  %v1184_v48 = vshrl.u32 %v9382_v2, 16 }
  0x68   : > { %12805 = vst [vmem:[#allocation97_spill] sm:$0xff] %v9414_v60  ;;  %v9420_v53 = vsel %vm8739_vm1, %v1159_v6, %v1164_v35  ;;  %v9424_v58 = vsel %vm8739_vm1, %v1167_v50, %v1172_v52  ;;  %v1189_v9 = vshll.u32 %v9392_v55, 16  ;;  %v1192_v16 = vshrl.u32 %v9392_v55, 16 }
  0x69   : > { %12806 = vst [vmem:[#allocation98_spill] sm:$0xff] %v9420_v53  ;;  %12807 = vst [vmem:[#allocation99_spill] sm:$0xff] %v9424_v58  ;;  %v2234_v26 = vcombine.low %v2226_v3, %v2233_v32  ;;  %v9431_v37 = vsel %vm8739_vm1, %v1176_v19, %v1181_v30  ;;  %v1197_v35 = vshll.u32 %v9400_v45, 16  ;;  %v1200_v52 = vshrl.u32 %v9400_v45, 16 }
  0x6a   : > { %12808 = vst [vmem:[#allocation100_spill] sm:$0xff] %v9431_v37  ;;  %v7698_v6 = vld.sshfl [vmem:[%s8704_s21 + $0x60] sm:$0x33 pattern:$0x75316420]  ;;  %v9438_v50 = vsel %vm8739_vm1, %v1184_v48, %v1189_v9  ;;  %v1205_v12 = vshll.u32 %v9376_v63, 16  ;;  %v1892_v3 = vcombine.low %v9406_v33, %v9414_v60  ;;  %v1893_v19 = vcombine.low %v9420_v53, %v9424_v58 }
  0x6b   : > { %12809 = vst [vmem:[#allocation101_spill] sm:$0xff] %v9438_v50  ;;  %8139 = vmatmul.mubr.msk.bf16.gmra.mrb[8].mxu1 %vm2352_vm2, %v2234_v26  ;;  %v9447_v30 = vsel %vm8739_vm1, %v1192_v16, %v1197_v35  ;;  %v1894_v32 = vcombine.low %v9431_v37, %v9438_v50  ;;  %v9454_v48 = vld.sshfl [vmem:[%s8704_s21 + $0x64] sm:$0x33 pattern:$0x75316420]  ;;  %v808_v9 = vcombine.high %v7697_v56, %v7697_v56 }
  0x6c   : > { %12810 = vst [vmem:[#allocation102_spill] sm:$0xff] %v9447_v30  ;;  %8142 = vmatprep.mubr.msk.bf16.mxu1 %vm8647_vm3, %v12741_v10  ;;  %v9460_v60 = vsel %vm8739_vm1, %v1200_v52, %v1205_v12  ;;  %v9463_v26 = vrot.slane %v1892_v3, %v8707_v11  ;;  %v9466_v16 = vrot.slane %v7697_v56, %v8707_v11 }
  0x6d   : > { %12811 = vst [vmem:[#allocation103_spill] sm:$0xff] %v9460_v60  ;;  %v831_v35 = vcombine.high %v7698_v6, %v7698_v6  ;;  %v1895_v50 = vcombine.low %v9447_v30, %v9460_v60  ;;  %v9471_v58 = vrot.slane %v1893_v19, %v8707_v11  ;;  %v9474_v37 = vrot.slane %v1894_v32, %v8707_v11 }
  0x6e   : > { %12812 = vst [vmem:[#allocation104_spill] sm:$0xff] %v9463_v26  ;;  %12813 = vst [vmem:[#allocation105_spill] sm:$0xff] %v9466_v16  ;;  %v9477_v53 = vrot.slane %v808_v9, %v8707_v11  ;;  %v9481_v12 = vcombine.high %v9466_v16, %v9466_v16  ;;  %v9484_v56 = vrot.slane %v7698_v6, %v8707_v11  ;;  %v1599_v6 = vshrl.u32 %v9284_v13, 16 }
  0x6f   : > { %12814 = vst [vmem:[#allocation106_spill] sm:$0xff] %v9471_v58  ;;  %12815 = vst [vmem:[#allocation107_spill] sm:$0xff] %v9474_v37  ;;  %v9487_v52 = vrot.slane %v831_v35, %v8707_v11  ;;  %v9491_v3 = vrot.slane %v9454_v48, %v8707_v11  ;;  %v9494_v19 = vrot.slane %v1895_v50, %v8707_v11  ;;  %v1604_v50 = vshll.u32 %v9466_v16, 16 }
  0x70   : > { %12816 = vst [vmem:[#allocation108_spill] sm:$0xff] %v9477_v53  ;;  %12817 = vst [vmem:[#allocation109_spill] sm:$0xff] %v9481_v12  ;;  %v1924_v32 = vcombine.low %v9463_v26, %v9471_v58  ;;  %v9500_v9 = vcombine.high %v9477_v53, %v9477_v53  ;;  %v9505_v35 = vcombine.high %v9484_v56, %v9484_v56  ;;  %v1607_v30 = vshrl.u32 %v9466_v16, 16 }
  0x71   : > { %12818 = vst [vmem:[#allocation110_spill] sm:$0xff] %v9484_v56  ;;  %12819 = vst [vmem:[#allocation111_spill] sm:$0xff] %v9487_v52  ;;  %v9509_v60 = vcombine.high %v9487_v52, %v9487_v52  ;;  %v1925_v58 = vcombine.low %v9474_v37, %v9494_v19  ;;  %v1612_v33 = vshll.u32 %v9477_v53, 16  ;;  %v1615_v13 = vshrl.u32 %v9477_v53, 16 }
  0x72   : > { %12820 = vst [vmem:[#allocation112_spill] sm:$0xff] %v9491_v3  ;;  %12821 = vst [vmem:[#allocation113_spill] sm:$0xff] %v9494_v19  ;;  %v1932_v26 = vrot.slane %v1924_v32, %v8707_v11  ;;  %v9520_v7 = vsel %vm8739_vm1, %v1599_v6, %v1604_v50  ;;  %v1620_v14 = vshll.u32 %v9481_v12, 16  ;;  %v1623_v61 = vshrl.u32 %v9481_v12, 16 }
  0x73   : > { %12822 = vst [vmem:[#allocation114_spill] sm:$0xff] %v9500_v9  ;;  %12823 = vst [vmem:[#allocation115_spill] sm:$0xff] %v9505_v35  ;;  %v1628_v16 = vshll.u32 %v9500_v9, 16  ;;  %v1939_v4 = vrot.slane %v1925_v58, %v8707_v11  ;;  %v9528_v32 = vsel %vm8739_vm1, %v1607_v30, %v1612_v33  ;;  %v1632_v19 = vshrl.u32 %v9484_v56, 16 }
  0x74   : > { %12824 = vst [vmem:[#allocation116_spill] sm:$0xff] %v9509_v60  ;;  %12825 = vst [vmem:[#allocation117_spill] sm:$0xff] %v9520_v7  ;;  %v1637_v37 = vshll.u32 %v9487_v52, 16  ;;  %v9534_v6 = vsel %vm8739_vm1, %v1615_v13, %v1620_v14  ;;  %v1640_v9 = vshrl.u32 %v9487_v52, 16  ;;  %v1645_v58 = vshll.u32 %v9505_v35, 16 }
  0x75   : > { %12826 = vst [vmem:[#allocation118_spill] sm:$0xff] %v9528_v32  ;;  %12827 = vst [vmem:[#allocation119_spill] sm:$0xff] %v9534_v6  ;;  %v9538_v50 = vsel %vm8739_vm1, %v1623_v61, %v1628_v16  ;;  %v1940_v53 = vcombine.low %v1932_v26, %v1939_v4  ;;  %v1648_v30 = vshrl.u32 %v9505_v35, 16  ;;  %v1653_v56 = vshll.u32 %v9509_v60, 16 }
  0x76   : > { %12828 = vst [vmem:[#allocation120_spill] sm:$0xff] %v9538_v50  ;;  %v9544_v33 = vsel %vm8739_vm1, %v1632_v19, %v1637_v37  ;;  %v7684_v14 = vld.sshfl [vmem:[%s8704_s21 + $0x28] sm:$0x33 pattern:$0x75316420]  ;;  %v9551_v13 = vsel %vm8739_vm1, %v1640_v9, %v1645_v58  ;;  %v1656_v61 = vshrl.u32 %v9509_v60, 16  ;;  %v2235_v4 = vcombine.low %v9520_v7, %v9528_v32 }
  0x77   : > { %12829 = vst [vmem:[#allocation121_spill] sm:$0xff] %v9544_v33  ;;  %12830 = vst [vmem:[#allocation122_spill] sm:$0xff] %v9551_v13  ;;  %v1661_v16 = vshll.u32 %v9491_v3, 16  ;;  %8115 = vmatmul.mubr.msk.bf16.gmra.mrb[12].mxu0 %vm2352_vm2, %v1940_v53  ;;  %v9560_v37 = vsel %vm8739_vm1, %v1648_v30, %v1653_v56  ;;  %v2236_v26 = vcombine.low %v9534_v6, %v9538_v50 }
  0x78   : > { %12831 = vst [vmem:[#allocation123_spill] sm:$0xff] %v9560_v37  ;;  %v2237_v19 = vcombine.low %v9544_v33, %v9551_v13  ;;  %v7685_v9 = vld.sshfl [vmem:[%s8704_s21 + $0x2c] sm:$0x33 pattern:$0x75316420]  ;;  %v479_v58 = vcombine.high %v9340_v59, %v9340_v59  ;;  %v9574_v53 = vrot.slane %v2235_v4, %v8707_v11  ;;  %8118 = vmatprep.mubr.msk.bf16.mxu0 %vm8647_vm3, %v12741_v10 }
  0x79   : > { %v9571_v60 = vsel %vm8739_vm1, %v1656_v61, %v1661_v16  ;;  %v9580_v56 = vcombine.high %v9376_v63, %v9376_v63  ;;  %v502_v30 = vcombine.high %v7684_v14, %v7684_v14  ;;  %v9585_v59 = vrot.slane %v2236_v26, %v8707_v11 }
  0x7a   : > { %12832 = vst [vmem:[#allocation124_spill] sm:$0xff] %v9571_v60  ;;  %12833 = vst [vmem:[#allocation125_spill] sm:$0xff] %v9574_v53  ;;  %v2238_v13 = vcombine.low %v9560_v37, %v9571_v60  ;;  %v9588_v61 = vrot.slane %v2237_v19, %v8707_v11  ;;  %v9591_v16 = vrot.slane %v479_v58, %v8707_v11 }
  0x7b   : > { %12834 = vst [vmem:[#allocation126_spill] sm:$0xff] %v9580_v56  ;;  %12835 = vst [vmem:[#allocation127_spill] sm:$0xff] %v9585_v59  ;;  %v9594_v4 = vrot.slane %v7684_v14, %v8707_v11  ;;  %v9597_v50 = vrot.slane %v502_v30, %v8707_v11  ;;  %v526_v33 = vcombine.high %v7685_v9, %v7685_v9  ;;  %v1208_v14 = vshrl.u32 %v9376_v63, 16 }
  0x7c   : > { %12836 = vst [vmem:[#allocation128_spill] sm:$0xff] %v9588_v61  ;;  %12837 = vst [vmem:[#allocation129_spill] sm:$0xff] %v9591_v16  ;;  %v9600_v32 = vrot.slane %v7685_v9, %v8707_v11  ;;  %v9603_v60 = vrot.slane %v2238_v13, %v8707_v11  ;;  %v2267_v26 = vcombine.low %v9574_v53, %v9585_v59  ;;  %v1213_v30 = vshll.u32 %v9591_v16, 16 }
  0x7d   : > { %12838 = vst [vmem:[#allocation130_spill] sm:$0xff] %v9594_v4  ;;  %12839 = vst [vmem:[#allocation131_spill] sm:$0xff] %v9597_v50  ;;  %v9609_v19 = vcombine.high %v9591_v16, %v9591_v16  ;;  %v9614_v58 = vcombine.high %v9594_v4, %v9594_v4  ;;  %v9618_v9 = vcombine.high %v9597_v50, %v9597_v50  ;;  %v1216_v37 = vshrl.u32 %v9591_v16, 16 }
  0x7e   : > { %12840 = vst [vmem:[#allocation132_spill] sm:$0xff] %v9600_v32  ;;  %12841 = vst [vmem:[#allocation133_spill] sm:$0xff] %v9603_v60  ;;  %v9621_v13 = vrot.slane %v526_v33, %v8707_v11  ;;  %v2268_v59 = vcombine.low %v9588_v61, %v9603_v60  ;;  %v2275_v53 = vrot.slane %v2267_v26, %v8707_v11  ;;  %v1221_v6 = vshll.u32 %v9580_v56, 16 }
  0x7f   : > { %12842 = vst [vmem:[#allocation134_spill] sm:$0xff] %v9609_v19  ;;  %12843 = vst [vmem:[#allocation135_spill] sm:$0xff] %v9614_v58  ;;  %v9631_v7 = vsel %vm8739_vm1, %v1208_v14, %v1213_v30  ;;  %v1224_v35 = vshrl.u32 %v9580_v56, 16  ;;  %v1229_v33 = vshll.u32 %v9609_v19, 16  ;;  %v1233_v52 = vshrl.u32 %v9594_v4, 16 }
  0x80   : > { %12844 = vst [vmem:[#allocation136_spill] sm:$0xff] %v9618_v9  ;;  %12845 = vst [vmem:[#allocation137_spill] sm:$0xff] %v9621_v13  ;;  %v2282_v12 = vrot.slane %v2268_v59, %v8707_v11  ;;  %v9639_v26 = vsel %vm8739_vm1, %v1216_v37, %v1221_v6  ;;  %v1238_v60 = vshll.u32 %v9597_v50, 16  ;;  %v1241_v61 = vshrl.u32 %v9597_v50, 16 }
  0x81   : > { %12846 = vst [vmem:[#allocation138_spill] sm:$0xff] %v9631_v7  ;;  %12847 = vst [vmem:[#allocation139_spill] sm:$0xff] %v9639_v26  ;;  %v9645_v14 = vsel %vm8739_vm1, %v1224_v35, %v1229_v33  ;;  %v1246_v30 = vshll.u32 %v9614_v58, 16  ;;  %v1249_v19 = vshrl.u32 %v9614_v58, 16  ;;  %v1254_v45 = vshll.u32 %v9618_v9, 16 }
  0x82   : > { %12848 = vst [vmem:[#allocation140_spill] sm:$0xff] %v9645_v14  ;;  %v2283_v59 = vcombine.low %v2275_v53, %v2282_v12  ;;  %v9652_v6 = vsel %vm8739_vm1, %v1233_v52, %v1238_v60  ;;  %v1257_v37 = vshrl.u32 %v9618_v9, 16  ;;  %v1262_v55 = vshll.u32 %v9600_v32, 16 }
  0x83   : > { %12849 = vst [vmem:[#allocation141_spill] sm:$0xff] %v9652_v6  ;;  %v7700_v50 = vld.sshfl [vmem:[%s8704_s21 + $0x68] sm:$0x33 pattern:$0x75316420]  ;;  %v9659_v35 = vsel %vm8739_vm1, %v1241_v61, %v1246_v30  ;;  %v9663_v33 = vsel %vm8739_vm1, %v1249_v19, %v1254_v45  ;;  %v1265_v58 = vshrl.u32 %v9600_v32, 16  ;;  %v1941_v52 = vcombine.low %v9631_v7, %v9639_v26 }
  0x84   : > { %12850 = vst [vmem:[#allocation142_spill] sm:$0xff] %v9659_v35  ;;  %12851 = vst [vmem:[#allocation143_spill] sm:$0xff] %v9663_v33  ;;  %v1270_v12 = vshll.u32 %v9621_v13, 16  ;;  %8143 = vmatmul.mubr.msk.bf16.gmra.mrb[12].mxu1 %vm2352_vm2, %v2283_v59  ;;  %v9670_v60 = vsel %vm8739_vm1, %v1257_v37, %v1262_v55  ;;  %v1942_v53 = vcombine.low %v9645_v14, %v9652_v6 }
  0x85   : > { %12852 = vst [vmem:[#allocation144_spill] sm:$0xff] %v9670_v60  ;;  %v1943_v45 = vcombine.low %v9659_v35, %v9663_v33  ;;  %v7701_v61 = vld.sshfl [vmem:[%s8704_s21 + $0x6c] sm:$0x33 pattern:$0x75316420]  ;;  %8146 = vmatprep.mubr.msk.bf16.mxu1 %vm8647_vm3, %v12741_v10  ;;  %v855_v55 = vcombine.high %v9454_v48, %v9454_v48  ;;  %v9689_v30 = vcombine.high %v9491_v3, %v9491_v3 }
  0x86   : > { %v9683_v19 = vsel %vm8739_vm1, %v1265_v58, %v1270_v12  ;;  %v878_v59 = vcombine.high %v7700_v50, %v7700_v50  ;;  %v9694_v33 = vrot.slane %v1941_v52, %v8707_v11  ;;  %v9697_v6 = vrot.slane %v1942_v53, %v8707_v11 }
  0x87   : > { %12853 = vst [vmem:[#allocation145_spill] sm:$0xff] %v9683_v19  ;;  %12854 = vst [vmem:[#allocation146_spill] sm:$0xff] %v9689_v30  ;;  %v1944_v37 = vcombine.low %v9670_v60, %v9683_v19  ;;  %v9700_v58 = vrot.slane %v1943_v45, %v8707_v11  ;;  %v9703_v12 = vrot.slane %v855_v55, %v8707_v11  ;;  %v1664_v45 = vshrl.u32 %v9491_v3, 16 }
  0x88   : > { %12855 = vst [vmem:[#allocation147_spill] sm:$0xff] %v9694_v33  ;;  %12856 = vst [vmem:[#allocation148_spill] sm:$0xff] %v9697_v6  ;;  %v9706_v48 = vrot.slane %v7700_v50, %v8707_v11  ;;  %v9709_v35 = vrot.slane %v878_v59, %v8707_v11  ;;  %v902_v26 = vcombine.high %v7701_v61, %v7701_v61  ;;  %v1677_v14 = vshll.u32 %v9689_v30, 16 }
  0x89   : > { %12857 = vst [vmem:[#allocation149_spill] sm:$0xff] %v9700_v58  ;;  %12858 = vst [vmem:[#allocation150_spill] sm:$0xff] %v9703_v12  ;;  %v9712_v19 = vrot.slane %v1944_v37, %v8707_v11  ;;  %v1973_v52 = vcombine.low %v9694_v33, %v9697_v6  ;;  %v9717_v53 = vrot.slane %v7701_v61, %v8707_v11  ;;  %v1669_v33 = vshll.u32 %v9703_v12, 16 }
  0x8a   : > { %12859 = vst [vmem:[#allocation151_spill] sm:$0xff] %v9706_v48  ;;  %12860 = vst [vmem:[#allocation152_spill] sm:$0xff] %v9709_v35  ;;  %v9722_v55 = vcombine.high %v9706_v48, %v9706_v48  ;;  %v9726_v50 = vcombine.high %v9709_v35, %v9709_v35  ;;  %v9729_v59 = vrot.slane %v902_v26, %v8707_v11  ;;  %v1672_v60 = vshrl.u32 %v9703_v12, 16 }
  0x8b   : > { %12861 = vst [vmem:[#allocation153_spill] sm:$0xff] %v9712_v19  ;;  %12862 = vst [vmem:[#allocation154_spill] sm:$0xff] %v9717_v53  ;;  %v9733_v37 = vcombine.high %v9703_v12, %v9703_v12  ;;  %v1974_v61 = vcombine.low %v9700_v58, %v9712_v19  ;;  %v1981_v6 = vrot.slane %v1973_v52, %v8707_v11  ;;  %v1680_v7 = vshrl.u32 %v9689_v30, 16 }
  0x8c   : > { %12863 = vst [vmem:[#allocation155_spill] sm:$0xff] %v9722_v55  ;;  %12864 = vst [vmem:[#allocation156_spill] sm:$0xff] %v9726_v50  ;;  %v1689_v3 = vshrl.u32 %v9706_v48, 16  ;;  %v9747_v19 = vsel %vm8739_vm1, %v1664_v45, %v1669_v33  ;;  %v1694_v52 = vshll.u32 %v9709_v35, 16  ;;  %v1697_v58 = vshrl.u32 %v9709_v35, 16 }
  0x8d   : > { %12865 = vst [vmem:[#allocation157_spill] sm:$0xff] %v9729_v59  ;;  %12866 = vst [vmem:[#allocation158_spill] sm:$0xff] %v9733_v37  ;;  %v1685_v26 = vshll.u32 %v9733_v37, 16  ;;  %v1988_v9 = vrot.slane %v1974_v61, %v8707_v11  ;;  %v9753_v12 = vsel %vm8739_vm1, %v1672_v60, %v1677_v14  ;;  %v1702_v37 = vshll.u32 %v9722_v55, 16 }
  0x8e   : > { %12867 = vst [vmem:[#allocation159_spill] sm:$0xff] %v9747_v19  ;;  %12868 = vst [vmem:[#allocation160_spill] sm:$0xff] %v9753_v12  ;;  %v1705_v61 = vshrl.u32 %v9722_v55, 16  ;;  %v9763_v33 = vsel %vm8739_vm1, %v1689_v3, %v1694_v52  ;;  %v1710_v45 = vshll.u32 %v9726_v50, 16  ;;  %v1713_v35 = vshrl.u32 %v9726_v50, 16 }
  0x8f   : > { %v9757_v30 = vsel %vm8739_vm1, %v1680_v7, %v1685_v26  ;;  %v1989_v48 = vcombine.low %v1981_v6, %v1988_v9  ;;  %12870 = vst [vmem:[#allocation162_spill] sm:$0xff] %v9763_v33  ;;  %v7686_v14 = vld.sshfl [vmem:[%s8704_s21 + $0x30] sm:$0x33 pattern:$0x75316420]  ;;  %v9770_v60 = vsel %vm8739_vm1, %v1697_v58, %v1702_v37  ;;  %v1718_v7 = vshll.u32 %v9717_v53, 16 }
  0x90   : > { %12869 = vst [vmem:[#allocation161_spill] sm:$0xff] %v9757_v30  ;;  %12871 = vst [vmem:[#allocation163_spill] sm:$0xff] %v9770_v60  ;;  %v1721_v26 = vshrl.u32 %v9717_v53, 16  ;;  %v1726_v55 = vshll.u32 %v9729_v59, 16  ;;  %v9778_v3 = vsel %vm8739_vm1, %v1705_v61, %v1710_v45  ;;  %v2284_v9 = vcombine.low %v9747_v19, %v9753_v12 }
  0x91   : > { %8119 = vmatmul.mubr.msk.bf16.gmra.mrb[16].mxu0 %vm2352_vm2, %v1989_v48  ;;  %12872 = vst [vmem:[#allocation164_spill] sm:$0xff] %v9778_v3  ;;  %v2285_v6 = vcombine.low %v9757_v30, %v9763_v33  ;;  %v7687_v58 = vld.sshfl [vmem:[%s8704_s21 + $0x34] sm:$0x33 pattern:$0x75316420]  ;;  %v9787_v37 = vcombine.high %v9600_v32, %v9600_v32  ;;  %v9791_v52 = vsel %vm8739_vm1, %v1713_v35, %v1718_v7 }
  0x92   : > { %12873 = vst [vmem:[#allocation165_spill] sm:$0xff] %v9791_v52  ;;  %v9795_v48 = vsel %vm8739_vm1, %v1721_v26, %v1726_v55  ;;  %v2286_v61 = vcombine.low %v9770_v60, %v9778_v3  ;;  %8122 = vmatprep.mubr.msk.bf16.mxu0 %vm8647_vm3, %v12741_v10  ;;  %v549_v45 = vcombine.high %v7686_v14, %v7686_v14 }
  0x93   : > { %12874 = vst [vmem:[#allocation166_spill] sm:$0xff] %v9795_v48  ;;  %v2287_v33 = vcombine.low %v9791_v52, %v9795_v48  ;;  %v9804_v12 = vrot.slane %v2284_v9, %v8707_v11  ;;  %v9807_v35 = vrot.slane %v2285_v6, %v8707_v11  ;;  %v9810_v7 = vrot.slane %v7686_v14, %v8707_v11 }
  0x94   : > { %v9813_v55 = vrot.slane %v2286_v61, %v8707_v11  ;;  %v9816_v26 = vrot.slane %v549_v45, %v8707_v11  ;;  %v573_v3 = vcombine.high %v7687_v58, %v7687_v58  ;;  %v9819_v60 = vrot.slane %v7687_v58, %v8707_v11 }
  0x95   : > { %12875 = vst [vmem:[#allocation167_spill] sm:$0xff] %v9804_v12  ;;  %12876 = vst [vmem:[#allocation168_spill] sm:$0xff] %v9807_v35  ;;  %v9822_v52 = vrot.slane %v2287_v33, %v8707_v11  ;;  %v2316_v9 = vcombine.low %v9804_v12, %v9807_v35  ;;  %v9828_v14 = vcombine.high %v9810_v7, %v9810_v7  ;;  %v1273_v45 = vshrl.u32 %v9621_v13, 16 }
  0x96   : > { %12877 = vst [vmem:[#allocation169_spill] sm:$0xff] %v9810_v7  ;;  %12878 = vst [vmem:[#allocation170_spill] sm:$0xff] %v9813_v55  ;;  %v9832_v6 = vcombine.high %v9621_v13, %v9621_v13  ;;  %v9836_v61 = vcombine.high %v9816_v26, %v9816_v26  ;;  %v9839_v58 = vrot.slane %v573_v3, %v8707_v11  ;;  %v1278_v30 = vshll.u32 %v9787_v37, 16 }
  0x97   : > { %12879 = vst [vmem:[#allocation171_spill] sm:$0xff] %v9816_v26  ;;  %12880 = vst [vmem:[#allocation172_spill] sm:$0xff] %v9819_v60  ;;  %v9843_v33 = vcombine.high %v9819_v60, %v9819_v60  ;;  %v2317_v35 = vcombine.low %v9813_v55, %v9822_v52  ;;  %v2324_v12 = vrot.slane %v2316_v9, %v8707_v11  ;;  %v1281_v19 = vshrl.u32 %v9787_v37, 16 }
  0x98   : > { %12881 = vst [vmem:[#allocation173_spill] sm:$0xff] %v9822_v52  ;;  %12882 = vst [vmem:[#allocation174_spill] sm:$0xff] %v9828_v14  ;;  %v1286_v50 = vshll.u32 %v9832_v6, 16  ;;  %v1290_v3 = vshrl.u32 %v9810_v7, 16  ;;  %v1295_v32 = vshll.u32 %v9816_v26, 16  ;;  %v1298_v56 = vshrl.u32 %v9816_v26, 16 }
  0x99   : > { %12883 = vst [vmem:[#allocation175_spill] sm:$0xff] %v9832_v6  ;;  %12884 = vst [vmem:[#allocation176_spill] sm:$0xff] %v9836_v61  ;;  %v2331_v4 = vrot.slane %v2317_v35, %v8707_v11  ;;  %v9858_v13 = vsel %vm8739_vm1, %v1273_v45, %v1278_v30  ;;  %v1303_v9 = vshll.u32 %v9828_v14, 16  ;;  %v1306_v52 = vshrl.u32 %v9828_v14, 16 }
  0x9a   : > { %12885 = vst [vmem:[#allocation177_spill] sm:$0xff] %v9839_v58  ;;  %12886 = vst [vmem:[#allocation178_spill] sm:$0xff] %v9858_v13  ;;  %v9864_v55 = vsel %vm8739_vm1, %v1281_v19, %v1286_v50  ;;  %v9868_v6 = vsel %vm8739_vm1, %v1290_v3, %v1295_v32  ;;  %v1311_v7 = vshll.u32 %v9836_v61, 16  ;;  %v1314_v35 = vshrl.u32 %v9836_v61, 16 }
  0x9b   : > { %12887 = vst [vmem:[#allocation179_spill] sm:$0xff] %v9864_v55  ;;  %12888 = vst [vmem:[#allocation180_spill] sm:$0xff] %v9868_v6  ;;  %v2332_v26 = vcombine.low %v2324_v12, %v2331_v4  ;;  %v9874_v30 = vsel %vm8739_vm1, %v1298_v56, %v1303_v9  ;;  %v1319_v45 = vshll.u32 %v9819_v60, 16  ;;  %v1322_v14 = vshrl.u32 %v9819_v60, 16 }
  0x9c   : > { %12889 = vst [vmem:[#allocation181_spill] sm:$0xff] %v9874_v30  ;;  %v9880_v19 = vsel %vm8739_vm1, %v1306_v52, %v1311_v7  ;;  %v1327_v32 = vshll.u32 %v9839_v58, 16  ;;  %v1330_v50 = vshrl.u32 %v9839_v58, 16  ;;  %v1335_v3 = vshll.u32 %v9843_v33, 16 }
  0x9d   : > { %12890 = vst [vmem:[#allocation182_spill] sm:$0xff] %v9880_v19  ;;  %8147 = vmatmul.mubr.msk.bf16.gmra.mrb[16].mxu1 %vm2352_vm2, %v2332_v26  ;;  %v9888_v56 = vsel %vm8739_vm1, %v1314_v35, %v1319_v45  ;;  %v1990_v4 = vcombine.low %v9858_v13, %v9864_v55  ;;  %v1991_v12 = vcombine.low %v9868_v6, %v9874_v30 }
  0x9e   : > { %12891 = vst [vmem:[#allocation183_spill] sm:$0xff] %v9888_v56  ;;  %v9896_v52 = vcombine.high %v9717_v53, %v9717_v53  ;;  %8150 = vmatprep.mubr.msk.bf16.mxu1 %vm8647_vm3, %v12741_v10  ;;  %v9902_v7 = vsel %vm8739_vm1, %v1322_v14, %v1327_v32  ;;  %v9906_v26 = vsel %vm8739_vm1, %v1330_v50, %v1335_v3  ;;  %v1729_v32 = vshrl.u32 %v9729_v59, 16  ;;  %v7688_v50 = vld.sshfl [vmem:[%s8704_s21 + $0x38] sm:$0x33 pattern:$0x75316420] }
  0x9f   : > { %12893 = vst [vmem:[#allocation185_spill] sm:$0xff] %v9902_v7  ;;  %12894 = vst [vmem:[#allocation186_spill] sm:$0xff] %v9906_v26  ;;  %v1992_v9 = vcombine.low %v9880_v19, %v9888_v56  ;;  %v9912_v35 = vcombine.high %v9729_v59, %v9729_v59  ;;  %v1993_v45 = vcombine.low %v9902_v7, %v9906_v26  ;;  %v7689_v7 = vld.sshfl [vmem:[%s8704_s21 + $0x3c] sm:$0x33 pattern:$0x75316420] }
  0xa0   : > { %12892 = vst [vmem:[#allocation184_spill] sm:$0xff] %v9896_v52  ;;  %v9917_v30 = vrot.slane %v1990_v4, %v8707_v11  ;;  %v9920_v14 = vrot.slane %v1991_v12, %v8707_v11  ;;  %v1734_v56 = vshll.u32 %v9896_v52, 16  ;;  %v1737_v19 = vshrl.u32 %v9896_v52, 16 }
  0xa1   : > { %12895 = vst [vmem:[#allocation187_spill] sm:$0xff] %v9912_v35  ;;  %v9925_v3 = vrot.slane %v1992_v9, %v8707_v11  ;;  %v1742_v55 = vshll.u32 %v9912_v35, 16  ;;  %v9931_v26 = vrot.slane %v1993_v45, %v8707_v11  ;;  %v596_v6 = vcombine.high %v7688_v50, %v7688_v50 }
  0xa2   : > { %12896 = vst [vmem:[#allocation188_spill] sm:$0xff] %v9917_v30  ;;  %12897 = vst [vmem:[#allocation189_spill] sm:$0xff] %v9920_v14  ;;  %v2022_v4 = vcombine.low %v9917_v30, %v9920_v14  ;;  %v9937_v12 = vsel %vm8739_vm1, %v1729_v32, %v1734_v56  ;;  %v9945_v13 = vrot.slane %v7688_v50, %v8707_v11 }
  0xa3   : > { %12898 = vst [vmem:[#allocation190_spill] sm:$0xff] %v9925_v3  ;;  %12899 = vst [vmem:[#allocation191_spill] sm:$0xff] %v9931_v26  ;;  %v9941_v9 = vsel %vm8739_vm1, %v1737_v19, %v1742_v55  ;;  %v2023_v45 = vcombine.low %v9925_v3, %v9931_v26  ;;  %v9955_v32 = vrot.slane %v596_v6, %v8707_v11 }
  0xa4   : > { %12900 = vst [vmem:[#allocation192_spill] sm:$0xff] %v9937_v12  ;;  %12901 = vst [vmem:[#allocation193_spill] sm:$0xff] %v9941_v9  ;;  %v2030_v35 = vrot.slane %v2022_v4, %v8707_v11  ;;  %v2333_v14 = vcombine.low %v9937_v12, %v9941_v9  ;;  %v9963_v50 = vcombine.high %v9945_v13, %v9945_v13  ;;  %v1347_v59 = vshrl.u32 %v9945_v13, 16 }
  0xa5   : > { %12902 = vst [vmem:[#allocation194_spill] sm:$0xff] %v9945_v13  ;;  %12903 = vst [vmem:[#allocation195_spill] sm:$0xff] %v9955_v32  ;;  %v2037_v55 = vrot.slane %v2023_v45, %v8707_v11  ;;  %v620_v26 = vcombine.high %v7689_v7, %v7689_v7  ;;  %v9967_v4 = vcombine.high %v9955_v32, %v9955_v32  ;;  %v1338_v45 = vshrl.u32 %v9843_v33, 16 }
  0xa6   : > { %v9959_v19 = vrot.slane %v2333_v14, %v8707_v11  ;;  %12905 = vst [vmem:[#allocation197_spill] sm:$0xff] %v9963_v50  ;;  %v9970_v3 = vrot.slane %v7689_v7, %v8707_v11  ;;  %v9974_v6 = vcombine.high %v9839_v58, %v9839_v58  ;;  %v8621_v14 = vld [vmem:[%s12318_s1 + $0x4] sm:$0xf] }
  0xa7   : > { %12906 = vst [vmem:[#allocation198_spill] sm:$0xff] %v9967_v4  ;;  %v7863_v56 = vcombine.low %v8621_v14, %v8621_v14  ;;  %v2038_v30 = vcombine.low %v2030_v35, %v2037_v55  ;;  %v9983_v48 = vrot.slane %v620_v26, %v8707_v11  ;;  %v1352_v26 = vshll.u32 %v9955_v32, 16 }
  0xa8   : > { %12904 = vst [vmem:[#allocation196_spill] sm:$0xff] %v9959_v19  ;;  %12907 = vst [vmem:[#allocation199_spill] sm:$0xff] %v9974_v6  ;;  %v2347_v12 = vrot.slane %v9959_v19, %v8707_v11  ;;  %v9989_v9 = vcombine.high %v9970_v3, %v9970_v3  ;;  %v1343_v52 = vshll.u32 %v9974_v6, 16  ;;  %v1355_v55 = vshrl.u32 %v9955_v32, 16 }
  0xa9   : > { %12908 = vst [vmem:[#allocation200_spill] sm:$0xff] %v9983_v48  ;;  %8123 = vmatmul.mubr.msk.bf16.gmra.mrb[20].mxu0 %vm2352_vm2, %v2038_v30  ;;  %v9997_v35 = vcombine.high %v9983_v48, %v9983_v48  ;;  %v1360_v14 = vshll.u32 %v9963_v50, 16  ;;  %v1368_v7 = vshll.u32 %v9967_v4, 16  ;;  %v1371_v19 = vshrl.u32 %v9967_v4, 16 }
  0xaa   : > { %12909 = vst [vmem:[#allocation201_spill] sm:$0xff] %v9989_v9  ;;  %8151 = vmatmul.mubr.msk.bf16.gmra.mrb[20].mxu1 %vm2352_vm2, %v2347_v12  ;;  %8126 = vmatprep.mubr.msk.bf16.mxu0 %vm8647_vm3, %v12741_v10  ;;  %v10008_v30 = vsel %vm8739_vm1, %v1338_v45, %v1343_v52  ;;  %v1363_v12 = vshrl.u32 %v9963_v50, 16  ;;  %v10015_v53 = vsel %vm8739_vm1, %v1347_v59, %v1352_v26  ;;  %v1376_v61 = vshll.u32 %v9970_v3, 16 }
  0xab   : > { %12910 = vst [vmem:[#allocation202_spill] sm:$0xff] %v9997_v35  ;;  %8156 = vmatprep.mubr.msk.bf16.mxu1 %vm8647_vm3, %v12741_v10  ;;  %12911 = vst [vmem:[#allocation203_spill] sm:$0xff] %v10008_v30  ;;  %v10019_v6 = vsel %vm8739_vm1, %v1355_v55, %v1360_v14  ;;  %v1379_v32 = vshrl.u32 %v9970_v3, 16  ;;  %v1384_v45 = vshll.u32 %v9983_v48, 16  ;;  %v1387_v4 = vshrl.u32 %v9983_v48, 16 }
  0xac   : > { %12912 = vst [vmem:[#allocation204_spill] sm:$0xff] %v10015_v53  ;;  %12913 = vst [vmem:[#allocation205_spill] sm:$0xff] %v10019_v6  ;;  %v10025_v52 = vsel %vm8739_vm1, %v1363_v12, %v1368_v7  ;;  %v1392_v50 = vshll.u32 %v9989_v9, 16  ;;  %v10032_v59 = vsel %vm8739_vm1, %v1371_v19, %v1376_v61  ;;  %v1395_v26 = vshrl.u32 %v9989_v9, 16 }
  0xad   : > { %12914 = vst [vmem:[#allocation206_spill] sm:$0xff] %v10025_v52  ;;  %12915 = vst [vmem:[#allocation207_spill] sm:$0xff] %v10032_v59  ;;  %v1400_v55 = vshll.u32 %v9997_v35, 16  ;;  %v2039_v14 = vcombine.low %v10008_v30, %v10015_v53  ;;  %v10040_v7 = vsel %vm8739_vm1, %v1379_v32, %v1384_v45  ;;  %v2040_v48 = vcombine.low %v10019_v6, %v10025_v52 }
  0xae   : > { %12916 = vst [vmem:[#allocation208_spill] sm:$0xff] %v10040_v7  ;;  %v10044_v12 = vsel %vm8739_vm1, %v1387_v4, %v1392_v50  ;;  %v2532_v61 = vcombine.low %v8714_v15, %v8720_v18  ;;  %v2041_v35 = vcombine.low %v10032_v59, %v10040_v7  ;;  %v7814_v50 = vcombine.high %v8714_v15, %v8720_v18 }
  0xaf   : > { %12917 = vst [vmem:[#allocation209_spill] sm:$0xff] %v10044_v12  ;;  %v10052_v19 = vsel %vm8739_vm1, %v1395_v26, %v1400_v55  ;;  %v10057_v32 = vrot.slane %v2039_v14, %v8707_v11  ;;  %v10064_v45 = vrot.slane %v2040_v48, %v8707_v11  ;;  %v2534_v52 = vcombine.low %v8717_v17, %v8733_v23 }
  0xb0   : > { %12918 = vst [vmem:[#allocation210_spill] sm:$0xff] %v10052_v19  ;;  %v2042_v4 = vcombine.low %v10044_v12, %v10052_v19  ;;  %v2535_v26 = vcombine.low %v8737_v24, %v8723_v20  ;;  %v10071_v55 = vrot.slane %v2041_v35, %v8707_v11  ;;  %v2542_v14 = vrot.slane %v2532_v61, %v8707_v11 }
  0xb1   : > { %12919 = vst [vmem:[#allocation211_spill] sm:$0xff] %v10057_v32  ;;  %12920 = vst [vmem:[#allocation212_spill] sm:$0xff] %v10064_v45  ;;  %v2549_v7 = vrot.slane %v7814_v50, %v8707_v11  ;;  %v4518_v15 = vrot.slane %v7863_v56, 2  ;;  %v2071_v48 = vcombine.low %v10057_v32, %v10064_v45  ;;  %v2556_v19 = vrot.slane %v2534_v52, %v8707_v11 }
  0xb2   : > { %12921 = vst [vmem:[#allocation213_spill] sm:$0xff] %v10071_v55  ;;  %v10076_v59 = vrot.slane %v2042_v4, %v8707_v11  ;;  %v2563_v12 = vrot.slane %v2535_v26, %v8707_v11  ;;  %v2581_v35 = vcombine.low %v8749_v28, %v8901_v8  ;;  %v2582_v61 = vcombine.low %v8905_v62, %v8917_v29 }
  0xb3   : > { %v2564_v53 = vcombine.low %v2542_v14, %v2549_v7  ;;  %v4559_v6 = vsel %vm2392_vm0, %v4518_v15, 0  ;;  %v2079_v50 = vrot.slane %v2071_v48, %v8707_v11  ;;  %v2583_v52 = vcombine.low %v8929_v39, %v8934_v42 }
  0xb4   : > { %12922 = vst [vmem:[#allocation214_spill] sm:$0xff] %v10076_v59  ;;  %v2072_v56 = vcombine.low %v10071_v55, %v10076_v59  ;;  %v2565_v4 = vcombine.low %v2556_v19, %v2563_v12  ;;  %v2584_v7 = vcombine.low %v8920_v34, %v8937_v43  ;;  %v2591_v14 = vrot.slane %v2581_v35, %v8707_v11 }
  0xb5   : > { %v2572_v26 = vrot.slane %v2564_v53, %v8707_v11  ;;  %v2598_v8 = vrot.slane %v2582_v61, %v8707_v11  ;;  %v2605_v59 = vrot.slane %v2583_v52, %v8707_v11  ;;  %v5586_v12 = vcombine.low %v8952_v51, %v8937_v43  ;;  %v10115_v51 = vld [vmem:[%s12318_s1 + $0x8] sm:$0xf] }
  0xb6   : > { %v2086_v62 = vrot.slane %v2072_v56, %v8707_v11  ;;  %v2579_v15 = vrot.slane %v2565_v4, %v8707_v11  ;;  %v10103_v19 = vrot.slane %v2584_v7, %v8707_v11  ;;  %v3313_v48 = vcombine.low %v8720_v18, %v8730_v22 }
  0xb7   : > { %v2613_v53 = vcombine.low %v2591_v14, %v2598_v8  ;;  %v3314_v35 = vcombine.low %v8746_v27, %v8717_v17  ;;  %v5593_v56 = vrot.slane %v5586_v12, %v8707_v11  ;;  %v3315_v4 = vcombine.low %v8733_v23, %v8737_v24 }
  0xb8   : > { %12923 = vst [vmem:[#allocation215_spill] sm:$0xff] %v10103_v19  ;;  %v2087_v61 = vcombine.low %v2079_v50, %v2086_v62  ;;  %v2580_v45 = vcombine.low %v2572_v26, %v2579_v15  ;;  %v2614_v52 = vcombine.low %v2605_v59, %v10103_v19  ;;  %v3323_v18 = vrot.slane %v3313_v48, %v8707_v11 }
  0xb9   : > { %v10119_v7 = vrot.slane %v2613_v53, %v8707_v11  ;;  %v3330_v17 = vrot.slane %v3314_v35, %v8707_v11  ;;  %v5594_v22 = vcombine.low %v2605_v59, %v5593_v56  ;;  %v3337_v23 = vrot.slane %v3315_v4, %v8707_v11 }
  0xba   : > { %8127 = vmatmul.mubr.msk.bf16.gmra.mrb[24].mxu0 %vm2352_vm2, %v2087_v61  ;;  %8157 = vmatmul.mubr.msk.bf16.vlgmr.msra.gmra.mrb[24].mxu1 %vm2352_vm2, %v2580_v45  ;;  %v12925_v24 = vcombine.low %v8755_v31, %v8749_v28  ;;  %v2628_v50 = vrot.slane %v2614_v52, %v8707_v11  ;;  %v5423_v14 = vsel %vm2392_vm0, %v10115_v51, 0  ;;  %v7815_v31 = vcombine.high %v8920_v34, %v8937_v43 }
  0xbb   : > { %12924 = vst [vmem:[#allocation216_spill] sm:$0xff] %v10119_v7  ;;  %8263 = vmatpush3.bf16.msra.mxu1 %v4559_v6  ;;  %8160 = vmatprep.mubr.msk.bf16.mxu1 %vm8647_vm3, %v12741_v10  ;;  %v3345_v26 = vcombine.low %v3323_v18, %v3330_v17  ;;  %v10138_v59 = vrot.slane %v5594_v22, %v8707_v11 }
  0xbc   : > { %v3344_v27 = vrot.slane %v12925_v24, %v8707_v11  ;;  %8210 = vmatprep.mubr.msk.bf16.mxu0 %vm8647_vm3, %v12741_v10  ;;  %v2631_v6 = vcombine.low %v9127_v21, %v9138_v40  ;;  %v2629_v8 = vcombine.low %v10119_v7, %v2628_v50  ;;  %v2632_v15 = vcombine.low %v9142_v41, %v9145_v38 }
  0xbd   : > { %12926 = vst [vmem:[#allocation217_spill] sm:$0xff] %v10138_v59  ;;  %v3353_v62 = vrot.slane %v3345_v26, %v8707_v11  ;;  %v2633_v12 = vcombine.low %v9154_v54, %v9159_v49  ;;  %8370 = vmatprep.subr.bf16.mxu1 %v12741_v10  ;;  %v10155_v35 = vrot.slane %v7815_v31, %v8707_v11  ;;  %v12964_v59 = vld [vmem:[#allocation195_spill] sm:$0xff] }
  0xbe   : > { %v3346_v45 = vcombine.low %v3337_v23, %v3344_v27  ;;  %v10158_v61 = vrot.slane %v2631_v6, %v8707_v11  ;;  %v10161_v56 = vrot.slane %v2632_v15, %v8707_v11  ;;  %v7834_v49 = vcombine.high %v8723_v20, %v8749_v28 }
  0xbf   : > { %12927 = vst [vmem:[#allocation218_spill] sm:$0xff] %v10155_v35  ;;  %v10164_v4 = vrot.slane %v2633_v12, %v8707_v11  ;;  %v3363_v52 = vcombine.low %v8917_v29, %v8929_v39  ;;  %v7835_v23 = vcombine.high %v8917_v29, %v8929_v39  ;;  %v3365_v50 = vcombine.low %v8937_v43, %v8941_v44 }
  0xc0   : > { %v3360_v48 = vrot.slane %v3346_v45, %v8707_v11  ;;  %12928 = vst [vmem:[#allocation219_spill] sm:$0xff] %v10158_v61  ;;  %12929 = vst [vmem:[#allocation220_spill] sm:$0xff] %v10161_v56  ;;  %v2662_v17 = vcombine.low %v10155_v35, %v10158_v61  ;;  %v10183_v26 = vrot.slane %v7834_v49, %v8707_v11  ;;  %v12993_v35 = vld [vmem:[#allocation36_spill] sm:$0xff] }
  0xc1   : > { %12930 = vst [vmem:[#allocation221_spill] sm:$0xff] %v10164_v4  ;;  %v2663_v24 = vcombine.low %v10161_v56, %v10164_v4  ;;  %v10191_v29 = vrot.slane %v3363_v52, %v8707_v11  ;;  %v3386_v43 = vrot.slane %v7835_v23, %v8707_v11  ;;  %v10200_v44 = vrot.slane %v3365_v50, %v8707_v11 }
  0xc2   : > { %v3361_v18 = vcombine.low %v3353_v62, %v3360_v48  ;;  %8161 = vmatmul.mubr.msk.bf16.gmra.mrb[28].mxu1 %vm2352_vm2, %v2629_v8  ;;  %v10188_v45 = vrot.slane %v2662_v17, %v8707_v11  ;;  %v2679_v6 = vcombine.low %v9172_v46, %v9343_v36  ;;  %v2681_v8 = vcombine.low %v9372_v57, %v9382_v2 }
  0xc3   : > { %8164 = vmatprep.mubr.msk.bf16.mxu1 %vm8647_vm3, %v12741_v10  ;;  %v2677_v39 = vrot.slane %v2663_v24, %v8707_v11  ;;  %v3394_v31 = vcombine.low %v10183_v26, %v10191_v29  ;;  %v3395_v15 = vcombine.low %v3386_v43, %v10200_v44  ;;  %v7816_v48 = vcombine.high %v9372_v57, %v9382_v2 }
  0xc4   : > { %8211 = vmatmul.mubr.msk.bf16.vlgmr.msra.gmra.mrb[28].mxu0 %vm2352_vm2, %v3361_v18  ;;  %12931 = vst [vmem:[#allocation222_spill] sm:$0xff] %v10188_v45  ;;  %v10217_v49 = vrot.slane %v2679_v6, %v8707_v11  ;;  %v10223_v52 = vrot.slane %v2681_v8, %v8707_v11  ;;  %v3411_v17 = vcombine.low %v9117_v1, %v9127_v21 }
  0xc5   : > { %8317 = vmatpush3.bf16.msra.mxu0 %v5423_v14  ;;  %8214 = vmatprep.mubr.msk.bf16.mxu0 %vm8647_vm3, %v12741_v10  ;;  %v2680_v14 = vcombine.low %v9360_v47, %v9364_v5  ;;  %v2678_v62 = vcombine.low %v10188_v45, %v2677_v39  ;;  %v3402_v12 = vrot.slane %v3394_v31, %v8707_v11 }
  0xc6   : > { %8424 = vmatprep.subr.bf16.mxu0 %v12741_v10  ;;  %12932 = vst [vmem:[#allocation223_spill] sm:$0xff] %v10217_v49  ;;  %12934 = vst [vmem:[#allocation225_spill] sm:$0xff] %v10223_v52  ;;  %v3409_v18 = vrot.slane %v3395_v15, %v8707_v11  ;;  %v10229_v23 = vrot.slane %v7816_v48, %v8707_v11  ;;  %v3412_v50 = vcombine.low %v9138_v40, %v9142_v41  ;;  %v12937_v15 = vld [vmem:[#allocation130_spill] sm:$0xff] }
  0xc7   : > { %v10220_v46 = vrot.slane %v2680_v14, %v8707_v11  ;;  %v3413_v39 = vcombine.low %v9163_v0, %v9154_v54  ;;  %v7836_v31 = vcombine.high %v9145_v38, %v9154_v54  ;;  %v10248_v41 = vrot.slane %v3411_v17, %v8707_v11 }
  0xc8   : > { %12935 = vst [vmem:[#allocation226_spill] sm:$0xff] %v10229_v23  ;;  %v3410_v43 = vcombine.low %v3402_v12, %v3409_v18  ;;  %v2712_v1 = vcombine.low %v10223_v52, %v10229_v23  ;;  %v10251_v0 = vrot.slane %v3412_v50, %v8707_v11  ;;  %v12938_v12 = vld [vmem:[#allocation126_spill] sm:$0xff]  ;;  %v12940_v50 = vld [vmem:[#allocation131_spill] sm:$0xff] }
  0xc9   : > { %12933 = vst [vmem:[#allocation224_spill] sm:$0xff] %v10220_v46  ;;  %v2711_v24 = vcombine.low %v10217_v49, %v10220_v46  ;;  %v10255_v14 = vrot.slane %v3413_v39, %v8707_v11  ;;  %v10258_v8 = vrot.slane %v7836_v31, %v8707_v11  ;;  %v2729_v48 = vcombine.low %v12938_v12, %v12937_v15  ;;  %v12942_v31 = vld [vmem:[#allocation136_spill] sm:$0xff]  ;;  %v12947_v49 = vld [vmem:[#allocation94_spill] sm:$0xff] }
  0xca   : > { %8165 = vmatmul.mubr.msk.bf16.gmra.mrb[32].mxu1 %vm2352_vm2, %v2678_v62  ;;  %v2728_v62 = vcombine.low %v9376_v63, %v9591_v16  ;;  %v2726_v18 = vrot.slane %v2712_v1, %v8707_v11  ;;  %v3443_v17 = vcombine.low %v10248_v41, %v10251_v0  ;;  %v3460_v1 = vcombine.low %v9343_v36, %v9360_v47 }
  0xcb   : > { %8168 = vmatprep.mubr.msk.bf16.mxu1 %vm8647_vm3, %v12741_v10  ;;  %v10245_v6 = vrot.slane %v2711_v24, %v8707_v11  ;;  %v12939_v24 = vld [vmem:[#allocation135_spill] sm:$0xff]  ;;  %v3444_v27 = vcombine.low %v10255_v14, %v10258_v8  ;;  %v10279_v55 = vrot.slane %v2729_v48, %v8707_v11  ;;  %v7837_v48 = vcombine.high %v9343_v36, %v9360_v47 }
  0xcc   : > { %8215 = vmatmul.mubr.msk.bf16.gmra.mrb[32].mxu0 %vm2352_vm2, %v3410_v43  ;;  %v2730_v39 = vcombine.low %v12940_v50, %v12939_v24  ;;  %v12941_v43 = vld [vmem:[#allocation132_spill] sm:$0xff]  ;;  %v10276_v22 = vrot.slane %v2728_v62, %v8707_v11  ;;  %v3451_v46 = vrot.slane %v3443_v17, %v8707_v11  ;;  %v3462_v23 = vcombine.low %v9382_v2, %v12947_v49  ;;  %v12948_v17 = vld [vmem:[#allocation95_spill] sm:$0xff] }
  0xcd   : > { %12936 = vst [vmem:[#allocation227_spill] sm:$0xff] %v10245_v6  ;;  %8218 = vmatprep.mubr.msk.bf16.mxu0 %vm8647_vm3, %v12741_v10  ;;  %v2731_v53 = vcombine.low %v12942_v31, %v12941_v43  ;;  %12944 = vst [vmem:[#allocation126_spill] sm:$0xff] %v10279_v55  ;;  %v2727_v32 = vcombine.low %v10245_v6, %v2726_v18  ;;  %v3458_v52 = vrot.slane %v3444_v27, %v8707_v11  ;;  %v12949_v27 = vld [vmem:[#allocation137_spill] sm:$0xff] }
  0xce   : > { %12943 = vst [vmem:[#allocation130_spill] sm:$0xff] %v10276_v22  ;;  %v10286_v24 = vrot.slane %v2730_v39, %v8707_v11  ;;  %v2760_v62 = vcombine.low %v10276_v22, %v10279_v55  ;;  %v3463_v39 = vcombine.low %v12948_v17, %v9376_v63  ;;  %v2777_v6 = vcombine.low %v12949_v27, %v9787_v37 }
  0xcf   : > { %v10289_v31 = vrot.slane %v2731_v53, %v8707_v11  ;;  %v10303_v53 = vrot.slane %v3460_v1, %v8707_v11  ;;  %v3459_v55 = vcombine.low %v3451_v46, %v3458_v52  ;;  %v10310_v36 = vrot.slane %v7837_v48, %v8707_v11 }
  0xd0   : > { %12945 = vst [vmem:[#allocation135_spill] sm:$0xff] %v10286_v24  ;;  %v2768_v47 = vrot.slane %v2760_v62, %v8707_v11  ;;  %v10313_v49 = vrot.slane %v3462_v23, %v8707_v11  ;;  %v10321_v17 = vrot.slane %v3463_v39, %v8707_v11  ;;  %v2780_v62 = vcombine.low %v9819_v60, %v9839_v58 }
  0xd1   : > { %12946 = vst [vmem:[#allocation131_spill] sm:$0xff] %v10289_v31  ;;  %v2761_v18 = vcombine.low %v10286_v24, %v10289_v31  ;;  %12950 = vst [vmem:[#allocation132_spill] sm:$0xff] %v10310_v36  ;;  %v12953_v31 = vld [vmem:[#allocation171_spill] sm:$0xff]  ;;  %v3492_v23 = vcombine.low %v10303_v53, %v10310_v36  ;;  %v10333_v48 = vrot.slane %v2777_v6, %v8707_v11 }
  0xd2   : > { %8169 = vmatmul.mubr.msk.bf16.gmra.mrb[36].mxu1 %vm2352_vm2, %v2727_v32  ;;  %12951 = vst [vmem:[#allocation136_spill] sm:$0xff] %v10313_v49  ;;  %v12954_v32 = vld [vmem:[#allocation169_spill] sm:$0xff]  ;;  %v10350_v22 = vrot.slane %v2780_v62, %v8707_v11 }
  0xd3   : > { %8172 = vmatprep.mubr.msk.bf16.mxu1 %vm8647_vm3, %v12741_v10  ;;  %v10318_v1 = vrot.slane %v2761_v18, %v8707_v11  ;;  %v2778_v46 = vcombine.low %v12954_v32, %v12953_v31  ;;  %v7817_v52 = vcombine.high %v12954_v32, %v12953_v31  ;;  %12955 = vst [vmem:[#allocation95_spill] sm:$0xff] %v10333_v48 }
  0xd4   : > { %8219 = vmatmul.mubr.msk.bf16.gmra.mrb[36].mxu0 %vm2352_vm2, %v3459_v55  ;;  %v3509_v18 = vcombine.low %v9591_v16, %v12938_v12  ;;  %v3493_v55 = vcombine.low %v10313_v49, %v10321_v17  ;;  %v3500_v6 = vrot.slane %v3492_v23, %v8707_v11  ;;  %12958 = vst [vmem:[#allocation228_spill] sm:$0xff] %v10350_v22  ;;  %v12959_v12 = vld [vmem:[#allocation134_spill] sm:$0xff] }
  0xd5   : > { %12952 = vst [vmem:[#allocation94_spill] sm:$0xff] %v10318_v1  ;;  %8222 = vmatprep.mubr.msk.bf16.mxu0 %vm8647_vm3, %v12741_v10  ;;  %v2776_v39 = vcombine.low %v2768_v47, %v10318_v1  ;;  %v10343_v24 = vrot.slane %v2778_v46, %v8707_v11  ;;  %v10346_v36 = vrot.slane %v7817_v52, %v8707_v11 }
  0xd6   : > { %v3510_v63 = vcombine.low %v12959_v12, %v12940_v50  ;;  %v7838_v47 = vcombine.high %v12937_v15, %v12940_v50  ;;  %v3507_v1 = vrot.slane %v3493_v55, %v8707_v11  ;;  %v3512_v52 = vcombine.low %v12941_v43, %v12949_v27 }
  0xd7   : > { %12956 = vst [vmem:[#allocation137_spill] sm:$0xff] %v10343_v24  ;;  %12957 = vst [vmem:[#allocation169_spill] sm:$0xff] %v10346_v36  ;;  %v2809_v46 = vcombine.low %v10333_v48, %v10343_v24  ;;  %v10362_v16 = vrot.slane %v3509_v18, %v8707_v11  ;;  %v2810_v23 = vcombine.low %v10346_v36, %v10350_v22  ;;  %v12963_v18 = vld [vmem:[#allocation197_spill] sm:$0xff]  ;;  %v12966_v22 = vld [vmem:[#allocation198_spill] sm:$0xff] }
  0xd8   : > { %v10367_v62 = vrot.slane %v3510_v63, %v8707_v11  ;;  %v10370_v12 = vrot.slane %v7838_v47, %v8707_v11  ;;  %v2826_v55 = vcombine.low %v9843_v33, %v9945_v13  ;;  %v3508_v45 = vcombine.low %v3500_v6, %v3507_v1  ;;  %v12967_v1 = vld [vmem:[#allocation200_spill] sm:$0xff] }
  0xd9   : > { %v2817_v24 = vrot.slane %v2809_v46, %v8707_v11  ;;  %v10376_v48 = vrot.slane %v3512_v52, %v8707_v11  ;;  %v2827_v7 = vcombine.low %v12964_v59, %v12963_v18  ;;  %v10382_v63 = vrot.slane %v2810_v23, %v8707_v11 }
  0xda   : > { %12960 = vst [vmem:[#allocation134_spill] sm:$0xff] %v10367_v62  ;;  %12961 = vst [vmem:[#allocation229_spill] sm:$0xff] %v10370_v12  ;;  %8173 = vmatmul.mubr.msk.bf16.gmra.mrb[40].mxu1 %vm2352_vm2, %v2776_v39  ;;  %v3541_v47 = vcombine.low %v10362_v16, %v10367_v62  ;;  %v2828_v36 = vcombine.low %v12966_v22, %v9970_v3  ;;  %v2829_v6 = vcombine.low %v12967_v1, %v9989_v9  ;;  %v12996_v9 = vld [vmem:[#allocation41_spill] sm:$0xff] }
  0xdb   : > { %12962 = vst [vmem:[#allocation230_spill] sm:$0xff] %v10376_v48  ;;  %12965 = vst [vmem:[#allocation197_spill] sm:$0xff] %v10382_v63  ;;  %8176 = vmatprep.mubr.msk.bf16.mxu1 %vm8647_vm3, %v12741_v10  ;;  %v3542_v46 = vcombine.low %v10370_v12, %v10376_v48  ;;  %v10395_v39 = vrot.slane %v2826_v55, %v8707_v11  ;;  %v10398_v52 = vrot.slane %v2827_v7, %v8707_v11 }
  0xdc   : > { %v7839_v23 = vcombine.high %v12941_v43, %v12949_v27  ;;  %8223 = vmatmul.mubr.msk.bf16.gmra.mrb[40].mxu0 %vm2352_vm2, %v3508_v45  ;;  %v2825_v22 = vcombine.low %v2817_v24, %v10382_v63  ;;  %v3549_v18 = vrot.slane %v3541_v47, %v8707_v11  ;;  %v10406_v62 = vrot.slane %v2828_v36, %v8707_v11  ;;  %v12972_v27 = vld [vmem:[#allocation174_spill] sm:$0xff]  ;;  %v12973_v24 = vld [vmem:[#allocation176_spill] sm:$0xff]  ;;  %v12975_v63 = vld [vmem:[#allocation5_spill] sm:$0xff] }
  0xdd   : > { %12968 = vst [vmem:[#allocation198_spill] sm:$0xff] %v10395_v39  ;;  %12969 = vst [vmem:[#allocation200_spill] sm:$0xff] %v10398_v52  ;;  %v10409_v2 = vrot.slane %v2829_v6, %v8707_v11  ;;  %8226 = vmatprep.mubr.msk.bf16.mxu0 %vm8647_vm3, %v12741_v10  ;;  %v3556_v7 = vrot.slane %v3542_v46, %v8707_v11  ;;  %v2858_v43 = vcombine.low %v10395_v39, %v10398_v52  ;;  %v12976_v46 = vld [vmem:[#allocation4_spill] sm:$0xff]  ;;  %v12980_v52 = vld [vmem:[#allocation7_spill] sm:$0xff] }
  0xde   : > { %12970 = vst [vmem:[#allocation231_spill] sm:$0xff] %v10406_v62  ;;  %v3559_v45 = vcombine.low %v12953_v31, %v12972_v27  ;;  %v3560_v55 = vcombine.low %v12973_v24, %v9819_v60  ;;  %v3561_v47 = vcombine.low %v9839_v58, %v9843_v33  ;;  %v10425_v6 = vrot.slane %v7839_v23, %v8707_v11 }
  0xdf   : > { %12971 = vst [vmem:[#allocation232_spill] sm:$0xff] %v10409_v2  ;;  %v2859_v36 = vcombine.low %v10406_v62, %v10409_v2  ;;  %v2875_v4 = vcombine.low %v12976_v46, %v12975_v63  ;;  %v3557_v21 = vcombine.low %v3549_v18, %v3556_v7  ;;  %v2866_v39 = vrot.slane %v2858_v43, %v8707_v11  ;;  %v12979_v62 = vld [vmem:[#allocation10_spill] sm:$0xff]  ;;  %v12981_v43 = vld [vmem:[#allocation8_spill] sm:$0xff] }
  0xe0   : > { %12974 = vst [vmem:[#allocation174_spill] sm:$0xff] %v10425_v6  ;;  %v10431_v27 = vrot.slane %v3559_v45, %v8707_v11  ;;  %v10434_v24 = vrot.slane %v3560_v55, %v8707_v11  ;;  %v10440_v33 = vrot.slane %v3561_v47, %v8707_v11  ;;  %v7818_v23 = vcombine.high %v12976_v46, %v12975_v63  ;;  %v12982_v45 = vld [vmem:[#allocation11_spill] sm:$0xff]  ;;  %v12997_v46 = vld [vmem:[#allocation38_spill] sm:$0xff] }
  0xe1   : > { %v10437_v2 = vrot.slane %v2859_v36, %v8707_v11  ;;  %v2877_v18 = vcombine.low %v12980_v52, %v12979_v62  ;;  %v2878_v60 = vcombine.low %v12982_v45, %v12981_v43  ;;  %v10451_v55 = vrot.slane %v2875_v4, %v8707_v11  ;;  %v12984_v36 = vld [vmem:[#allocation199_spill] sm:$0xff] }
  0xe2   : > { %12978 = vst [vmem:[#allocation233_spill] sm:$0xff] %v10440_v33  ;;  %v3590_v7 = vcombine.low %v10425_v6, %v10431_v27  ;;  %v3607_v58 = vcombine.low %v12984_v36, %v12964_v59  ;;  %8177 = vmatmul.mubr.msk.bf16.gmra.mrb[44].mxu1 %vm2352_vm2, %v2825_v22  ;;  %v3591_v31 = vcombine.low %v10434_v24, %v10440_v33 }
  0xe3   : > { %12977 = vst [vmem:[#allocation176_spill] sm:$0xff] %v10437_v2  ;;  %12983 = vst [vmem:[#allocation11_spill] sm:$0xff] %v10451_v55  ;;  %v2874_v47 = vcombine.low %v2866_v39, %v10437_v2  ;;  %v10460_v40 = vrot.slane %v7818_v23, %v8707_v11  ;;  %v10463_v6 = vrot.slane %v2877_v18, %v8707_v11  ;;  %8180 = vmatprep.mubr.msk.bf16.mxu1 %vm8647_vm3, %v12741_v10 }
  0xe4   : > { %v3598_v4 = vrot.slane %v3590_v7, %v8707_v11  ;;  %v10469_v36 = vrot.slane %v2878_v60, %v8707_v11  ;;  %v7840_v39 = vcombine.high %v9945_v13, %v12964_v59  ;;  %v3609_v22 = vcombine.low %v9970_v3, %v12967_v1  ;;  %8227 = vmatmul.mubr.msk.bf16.gmra.mrb[44].mxu0 %vm2352_vm2, %v3557_v21 }
  0xe5   : > { %12985 = vst [vmem:[#allocation199_spill] sm:$0xff] %v10460_v40  ;;  %12986 = vst [vmem:[#allocation234_spill] sm:$0xff] %v10463_v6  ;;  %v3605_v23 = vrot.slane %v3591_v31, %v8707_v11  ;;  %v2907_v18 = vcombine.low %v10451_v55, %v10460_v40  ;;  %v7841_v2 = vcombine.high %v9970_v3, %v12967_v1  ;;  %8230 = vmatprep.mubr.msk.bf16.mxu0 %vm8647_vm3, %v12741_v10  ;;  %v12989_v31 = vld [vmem:[#allocation34_spill] sm:$0xff]  ;;  %v12990_v55 = vld [vmem:[#allocation12_spill] sm:$0xff] }
  0xe6   : > { %12987 = vst [vmem:[#allocation235_spill] sm:$0xff] %v10469_v36  ;;  %v10482_v7 = vrot.slane %v3607_v58, %v8707_v11  ;;  %v2908_v60 = vcombine.low %v10463_v6, %v10469_v36  ;;  %v10489_v56 = vrot.slane %v7840_v39, %v8707_v11  ;;  %v10492_v21 = vrot.slane %v3609_v22, %v8707_v11  ;;  %v12992_v1 = vld [vmem:[#allocation37_spill] sm:$0xff]  ;;  %v12994_v6 = vld [vmem:[#allocation40_spill] sm:$0xff]  ;;  %v12995_v22 = vld [vmem:[#allocation39_spill] sm:$0xff] }
  0xe7   : > { %v2924_v40 = vcombine.low %v12990_v55, %v12989_v31  ;;  %v3606_v61 = vcombine.low %v3598_v4, %v3605_v23  ;;  %v2915_v3 = vrot.slane %v2907_v18, %v8707_v11  ;;  %v10498_v58 = vrot.slane %v7841_v2, %v8707_v11 }
  0xe8   : > { %12988 = vst [vmem:[#allocation236_spill] sm:$0xff] %v10482_v7  ;;  %v2925_v19 = vcombine.low %v12993_v35, %v12992_v1  ;;  %v2922_v36 = vrot.slane %v2908_v60, %v8707_v11  ;;  %v3639_v39 = vcombine.low %v10482_v7, %v10489_v56  ;;  %v2926_v30 = vcombine.low %v12995_v22, %v12994_v6  ;;  %v13000_v35 = vld [vmem:[#allocation6_spill] sm:$0xff] }
  0xe9   : > { %12991 = vst [vmem:[#allocation34_spill] sm:$0xff] %v10498_v58  ;;  %v2927_v31 = vcombine.low %v12997_v46, %v12996_v9  ;;  %v3640_v4 = vcombine.low %v10492_v21, %v10498_v58  ;;  %v10512_v2 = vrot.slane %v2924_v40, %v8707_v11  ;;  %v3656_v18 = vcombine.low %v12975_v63, %v13000_v35 }
  0xea   : > { %v10515_v23 = vrot.slane %v2925_v19, %v8707_v11  ;;  %v4168_v60 = vcombine.low %v8723_v20, %v8749_v28  ;;  %v10522_v7 = vrot.slane %v2926_v30, %v8707_v11  ;;  %v4169_v58 = vcombine.low %v8934_v42, %v8920_v34  ;;  %8181 = vmatmul.mubr.msk.bf16.gmra.mrb[48].mxu1 %vm2352_vm2, %v2874_v47  ;;  %v13003_v19 = vld [vmem:[#allocation9_spill] sm:$0xff] }
  0xeb   : > { %12998 = vst [vmem:[#allocation37_spill] sm:$0xff] %v10512_v2  ;;  %v10525_v6 = vrot.slane %v2927_v31, %v8707_v11  ;;  %v3647_v40 = vrot.slane %v3639_v39, %v8707_v11  ;;  %v3657_v33 = vcombine.low %v13003_v19, %v12980_v52  ;;  %v3658_v35 = vcombine.low %v12979_v62, %v12982_v45  ;;  %v13004_v28 = vld [vmem:[#allocation13_spill] sm:$0xff] }
  0xec   : > { %12999 = vst [vmem:[#allocation36_spill] sm:$0xff] %v10515_v23  ;;  %13001 = vst [vmem:[#allocation39_spill] sm:$0xff] %v10522_v7  ;;  %8184 = vmatprep.mubr.msk.bf16.mxu1 %vm8647_vm3, %v12741_v10  ;;  %v3654_v20 = vrot.slane %v3640_v4, %v8707_v11  ;;  %v3659_v30 = vcombine.low %v13004_v28, %v12990_v55  ;;  %v10541_v34 = vrot.slane %v3656_v18, %v8707_v11  ;;  %v13009_v19 = vld [vmem:[#allocation73_spill] sm:$0xff]  ;;  %v13010_v28 = vld [vmem:[#allocation72_spill] sm:$0xff] }
  0xed   : > { %13002 = vst [vmem:[#allocation6_spill] sm:$0xff] %v10525_v6  ;;  %v7819_v42 = vcombine.high %v12997_v46, %v12996_v9  ;;  %8231 = vmatmul.mubr.msk.bf16.gmra.mrb[48].mxu0 %vm2352_vm2, %v3606_v61  ;;  %v2923_v47 = vcombine.low %v2915_v3, %v2922_v36  ;;  %v2956_v45 = vcombine.low %v10512_v2, %v10515_v23  ;;  %v13007_v61 = vld [vmem:[#allocation71_spill] sm:$0xff]  ;;  %v13008_v36 = vld [vmem:[#allocation68_spill] sm:$0xff] }
  0xee   : > { %13005 = vst [vmem:[#allocation9_spill] sm:$0xff] %v10541_v34  ;;  %v10549_v39 = vrot.slane %v3657_v33, %v8707_v11  ;;  %v10552_v31 = vrot.slane %v3658_v35, %v8707_v11  ;;  %8234 = vmatprep.mubr.msk.bf16.mxu0 %vm8647_vm3, %v12741_v10  ;;  %v2957_v4 = vcombine.low %v10522_v7, %v10525_v6  ;;  %v13011_v35 = vld [vmem:[#allocation77_spill] sm:$0xff]  ;;  %v13012_v2 = vld [vmem:[#allocation75_spill] sm:$0xff] }
  0xef   : > { %v10559_v18 = vrot.slane %v3659_v30, %v8707_v11  ;;  %v2974_v3 = vcombine.low %v13008_v36, %v13007_v61  ;;  %v2975_v23 = vcombine.low %v13010_v28, %v13009_v19  ;;  %v2976_v52 = vcombine.low %v13012_v2, %v13011_v35 }
  0xf0   : > { %v3688_v33 = vcombine.low %v10541_v34, %v10549_v39  ;;  %v10570_v62 = vrot.slane %v7819_v42, %v8707_v11  ;;  %v7842_v6 = vcombine.high %v12981_v43, %v12990_v55  ;;  %v3655_v30 = vcombine.low %v3647_v40, %v3654_v20 }
  0xf1   : > { %13006 = vst [vmem:[#allocation13_spill] sm:$0xff] %v10559_v18  ;;  %v3689_v7 = vcombine.low %v10552_v31, %v10559_v18  ;;  %v10577_v63 = vrot.slane %v2974_v3, %v8707_v11  ;;  %v10580_v46 = vrot.slane %v2975_v23, %v8707_v11  ;;  %v10583_v34 = vrot.slane %v2956_v45, %v8707_v11  ;;  %v13018_v23 = vld [vmem:[#allocation42_spill] sm:$0xff] }
  0xf2   : > { %13013 = vst [vmem:[#allocation72_spill] sm:$0xff] %v10570_v62  ;;  %v10586_v35 = vrot.slane %v2976_v52, %v8707_v11  ;;  %v3706_v42 = vcombine.low %v12992_v1, %v12995_v22  ;;  %v7843_v40 = vcombine.high %v12992_v1, %v12995_v22  ;;  %v2971_v20 = vrot.slane %v2957_v4, %v8707_v11  ;;  %v13023_v4 = vld [vmem:[#allocation78_spill] sm:$0xff] }
  0xf3   : > { %13014 = vst [vmem:[#allocation77_spill] sm:$0xff] %v10577_v63  ;;  %13015 = vst [vmem:[#allocation237_spill] sm:$0xff] %v10580_v46  ;;  %v3696_v3 = vrot.slane %v3688_v33, %v8707_v11  ;;  %v3703_v18 = vrot.slane %v3689_v7, %v8707_v11  ;;  %v3708_v43 = vcombine.low %v12996_v9, %v13018_v23  ;;  %8185 = vmatmul.mubr.msk.bf16.gmra.mrb[52].mxu1 %vm2352_vm2, %v2923_v47  ;;  %v13022_v47 = vld [vmem:[#allocation105_spill] sm:$0xff] }
  0xf4   : > { %13016 = vst [vmem:[#allocation238_spill] sm:$0xff] %v10583_v34  ;;  %13017 = vst [vmem:[#allocation239_spill] sm:$0xff] %v10586_v35  ;;  %v3005_v52 = vcombine.low %v10570_v62, %v10577_v63  ;;  %v3006_v45 = vcombine.low %v10580_v46, %v10586_v35  ;;  %v10603_v55 = vrot.slane %v7842_v6, %v8707_v11  ;;  %8188 = vmatprep.mubr.msk.bf16.mxu1 %vm8647_vm3, %v12741_v10  ;;  %v13024_v23 = vld [vmem:[#allocation109_spill] sm:$0xff]  ;;  %v13025_v6 = vld [vmem:[#allocation108_spill] sm:$0xff] }
  0xf5   : > { %v10606_v1 = vrot.slane %v3706_v42, %v8707_v11  ;;  %v10611_v7 = vrot.slane %v7843_v40, %v8707_v11  ;;  %v10614_v22 = vrot.slane %v3708_v43, %v8707_v11  ;;  %v3022_v33 = vcombine.low %v13023_v4, %v13022_v47  ;;  %8235 = vmatmul.mubr.msk.bf16.gmra.mrb[52].mxu0 %vm2352_vm2, %v3655_v30  ;;  %v13026_v46 = vld [vmem:[#allocation111_spill] sm:$0xff]  ;;  %v13027_v42 = vld [vmem:[#allocation110_spill] sm:$0xff]  ;;  %v13028_v30 = vld [vmem:[#allocation65_spill] sm:$0xff] }
  0xf6   : > { %13019 = vst [vmem:[#allocation42_spill] sm:$0xff] %v10603_v55  ;;  %v3023_v63 = vcombine.low %v13025_v6, %v13024_v23  ;;  %v3024_v62 = vcombine.low %v13027_v42, %v13026_v46  ;;  %v7820_v35 = vcombine.high %v13027_v42, %v13026_v46  ;;  %v4176_v40 = vrot.slane %v4168_v60, %v8707_v11 }
  0xf7   : > { %13020 = vst [vmem:[#allocation240_spill] sm:$0xff] %v10606_v1  ;;  %13021 = vst [vmem:[#allocation241_spill] sm:$0xff] %v10611_v7  ;;  %v4183_v9 = vrot.slane %v4169_v58, %v8707_v11  ;;  %8238 = vmatprep.mubr.msk.bf16.mxu0 %vm8647_vm3, %v12741_v10  ;;  %v2972_v43 = vcombine.low %v10583_v34, %v2971_v20  ;;  %v3754_v4 = vcombine.low %v13028_v30, %v13008_v36  ;;  %v13031_v30 = vld [vmem:[#allocation76_spill] sm:$0xff]  ;;  %v13040_v36 = vld [vmem:[#allocation151_spill] sm:$0xff] }
  0xf8   : > { %v3704_v25 = vcombine.low %v3696_v3, %v3703_v18  ;;  %v10633_v23 = vrot.slane %v3005_v52, %v8707_v11  ;;  %v3020_v13 = vrot.slane %v3006_v45, %v8707_v11  ;;  %v3737_v42 = vcombine.low %v10603_v55, %v10606_v1  ;;  %v13050_v55 = vld [vmem:[#allocation116_spill] sm:$0xff] }
  0xf9   : > { %v3738_v58 = vcombine.low %v10611_v7, %v10614_v22  ;;  %v10641_v60 = vrot.slane %v3022_v33, %v8707_v11  ;;  %v3755_v20 = vcombine.low %v13007_v61, %v13010_v28  ;;  %v3756_v18 = vcombine.low %v13031_v30, %v13012_v2  ;;  %v13041_v61 = vld [vmem:[#allocation146_spill] sm:$0xff] }
  0xfa   : > { %13029 = vst [vmem:[#allocation105_spill] sm:$0xff] %v10633_v23  ;;  %v10648_v3 = vrot.slane %v3023_v63, %v8707_v11  ;;  %v10651_v52 = vrot.slane %v3024_v62, %v8707_v11  ;;  %v10654_v45 = vrot.slane %v7820_v35, %v8707_v11  ;;  %v7844_v7 = vcombine.high %v13009_v19, %v13012_v2  ;;  %v13038_v63 = vld [vmem:[#allocation150_spill] sm:$0xff]  ;;  %v13039_v35 = vld [vmem:[#allocation112_spill] sm:$0xff] }
  0xfb   : > { %13030 = vst [vmem:[#allocation78_spill] sm:$0xff] %v10641_v60  ;;  %v10659_v33 = vrot.slane %v3754_v4, %v8707_v11  ;;  %v10662_v28 = vrot.slane %v3755_v20, %v8707_v11  ;;  %v10665_v30 = vrot.slane %v3756_v18, %v8707_v11  ;;  %8189 = vmatmul.mubr.msk.bf16.gmra.mrb[56].mxu1 %vm2352_vm2, %v2972_v43 }
  0xfc   : > { %13032 = vst [vmem:[#allocation108_spill] sm:$0xff] %v10648_v3  ;;  %13033 = vst [vmem:[#allocation65_spill] sm:$0xff] %v10651_v52  ;;  %v10669_v62 = vrot.slane %v7844_v7, %v8707_v11  ;;  %v3071_v34 = vcombine.low %v13039_v35, %v13038_v63  ;;  %v3072_v19 = vcombine.low %v13041_v61, %v13040_v36  ;;  %8192 = vmatprep.mubr.msk.bf16.mxu1 %vm8647_vm3, %v12741_v10 }
  0xfd   : > { %13034 = vst [vmem:[#allocation76_spill] sm:$0xff] %v10654_v45  ;;  %13035 = vst [vmem:[#allocation242_spill] sm:$0xff] %v10662_v28  ;;  %v4184_v4 = vcombine.low %v4176_v40, %v10183_v26  ;;  %v4185_v2 = vcombine.low %v10191_v29, %v4183_v9  ;;  %v3745_v20 = vrot.slane %v3737_v42, %v8707_v11  ;;  %8239 = vmatmul.mubr.msk.bf16.gmra.mrb[56].mxu0 %vm2352_vm2, %v3704_v25  ;;  %v13042_v29 = vld [vmem:[#allocation155_spill] sm:$0xff]  ;;  %v13043_v42 = vld [vmem:[#allocation152_spill] sm:$0xff] }
  0xfe   : > { %13036 = vst [vmem:[#allocation243_spill] sm:$0xff] %v10665_v30  ;;  %13037 = vst [vmem:[#allocation244_spill] sm:$0xff] %v10669_v62  ;;  %v3752_v43 = vrot.slane %v3738_v58, %v8707_v11  ;;  %v3021_v7 = vcombine.low %v10633_v23, %v3020_v13  ;;  %v3054_v18 = vcombine.low %v10641_v60, %v10648_v3  ;;  %8242 = vmatprep.mubr.msk.bf16.mxu0 %vm8647_vm3, %v12741_v10  ;;  %v13044_v40 = vld [vmem:[#allocation154_spill] sm:$0xff]  ;;  %v13045_v13 = vld [vmem:[#allocation156_spill] sm:$0xff]  ;;  %v10721_v48 = vpop.f32.mrb[0].mxu0 }
  0xff   : > { %v3055_v1 = vcombine.low %v10651_v52, %v10654_v45  ;;  %v3786_v9 = vcombine.low %v10659_v33, %v10662_v28  ;;  %v3787_v26 = vcombine.low %v10665_v30, %v10669_v62  ;;  %v3073_v25 = vcombine.low %v13043_v42, %v13042_v29  ;;  %13051 = vst [vmem:[#allocation155_spill] sm:$0xff] %v10721_v48  ;;  %v13066_v48 = vld [vmem:[#allocation32_spill] sm:$0xff] }
 0x100   : > { %v3074_v58 = vcombine.low %v13045_v13, %v13044_v40  ;;  %v10698_v3 = vrot.slane %v3071_v34, %v8707_v11  ;;  %v10701_v52 = vrot.slane %v3072_v19, %v8707_v11  ;;  %v3803_v60 = vcombine.low %v13022_v47, %v13025_v6  ;;  %v13049_v19 = vld [vmem:[#allocation115_spill] sm:$0xff] }
 0x101   : > { %v7845_v45 = vcombine.high %v13022_v47, %v13025_v6  ;;  %v10708_v30 = vrot.slane %v4184_v4, %v8707_v11  ;;  %v10711_v29 = vrot.slane %v4185_v2, %v8707_v11  ;;  %v3753_v23 = vcombine.low %v3745_v20, %v3752_v43  ;;  %v8104_v20 = vpop.f32.mrb[1].mxu0 }
 0x102   : > { %13046 = vst [vmem:[#allocation150_spill] sm:$0xff] %v10698_v3  ;;  %13047 = vst [vmem:[#allocation151_spill] sm:$0xff] %v10701_v52  ;;  %v10714_v13 = vrot.slane %v3054_v18, %v8707_v11  ;;  %v3069_v34 = vrot.slane %v3055_v1, %v8707_v11  ;;  %v3805_v28 = vcombine.low %v13026_v46, %v13049_v19  ;;  %v10740_v18 = vpop.f32.mrb[2].mxu0  ;;  %v13059_v19 = vld [vmem:[#allocation27_spill] sm:$0xff]  ;;  %v13060_v20 = vld [vmem:[#allocation28_spill] sm:$0xff] }
 0x103   : > { %v3806_v59 = vcombine.low %v13050_v55, %v13039_v35  ;;  %v3794_v47 = vrot.slane %v3786_v9, %v8707_v11  ;;  %v3801_v6 = vrot.slane %v3787_v26, %v8707_v11  ;;  %v10726_v2 = vrot.slane %v3073_v25, %v8707_v11  ;;  %8193 = vmatmul.mubr.msk.bf16.gmra.mrb[60].mxu1 %vm2352_vm2, %v3021_v7  ;;  %v13056_v9 = vld [vmem:[#allocation3_spill] sm:$0xff]  ;;  %v13057_v26 = vld [vmem:[#allocation26_spill] sm:$0xff] }
 0x104   : > { %13048 = vst [vmem:[#allocation146_spill] sm:$0xff] %v10714_v13  ;;  %v10729_v4 = vrot.slane %v3074_v58, %v8707_v11  ;;  %v3103_v1 = vcombine.low %v10698_v3, %v10701_v52  ;;  %v10735_v55 = vrot.slane %v3803_v60, %v8707_v11  ;;  %v10738_v43 = vrot.slane %v7845_v45, %v8707_v11  ;;  %v13062_v52 = vld [vmem:[#allocation29_spill] sm:$0xff]  ;;  %v13063_v3 = vld [vmem:[#allocation30_spill] sm:$0xff]  ;;  %v8105_v45 = vpop.f32.mrb[3].mxu0 }
 0x105   : > { %13052 = vst [vmem:[#allocation152_spill] sm:$0xff] %v10726_v2  ;;  %13055 = vst [vmem:[#allocation115_spill] sm:$0xff] %v10740_v18  ;;  %v13058_v25 = vcombine.low %v13056_v9, %v13057_v26  ;;  %v13061_v7 = vcombine.low %v13059_v19, %v13060_v20  ;;  %v13064_v60 = vcombine.low %v13062_v52, %v13063_v3  ;;  %8196 = vmatprep.mubr.msk.bf16.mxu1 %vm8647_vm3, %v12741_v10  ;;  %v13065_v18 = vld [vmem:[#allocation31_spill] sm:$0xff] }
 0x106   : > { %13053 = vst [vmem:[#allocation154_spill] sm:$0xff] %v10729_v4  ;;  %13054 = vst [vmem:[#allocation156_spill] sm:$0xff] %v10738_v43  ;;  %v13067_v62 = vcombine.low %v13065_v18, %v13066_v48  ;;  %8243 = vmatmul.mubr.msk.bf16.gmra.mrb[60].mxu0 %vm2352_vm2, %v3753_v23  ;;  %v3070_v26 = vcombine.low %v10714_v13, %v3069_v34  ;;  %v10766_v19 = vrot.slane %v3806_v59, %v8707_v11  ;;  %v13086_v48 = vld [vmem:[#allocation61_spill] sm:$0xff]  ;;  %v13167_v13 = vld [vmem:[#allocation19_spill] sm:$0xff] }
 0x107   : > { %v4790_v58 = vrot.slane %v13058_v25, %v8707_v11  ;;  %v4797_v35 = vrot.slane %v13061_v7, %v8707_v11  ;;  %v4804_v46 = vrot.slane %v13064_v60, %v8707_v11  ;;  %v10763_v25 = vrot.slane %v3805_v28, %v8707_v11  ;;  %8246 = vmatprep.mubr.msk.bf16.mxu0 %vm8647_vm3, %v12741_v10  ;;  %v13070_v7 = vld [vmem:[#allocation157_spill] sm:$0xff] }
 0x108   : > { %v4811_v9 = vrot.slane %v13067_v62, %v8707_v11  ;;  %v3802_v3 = vcombine.low %v3794_v47, %v3801_v6  ;;  %v3104_v52 = vcombine.low %v10726_v2, %v10729_v4  ;;  %v4201_v23 = vcombine.low %v9145_v38, %v9154_v54  ;;  %v13069_v47 = vld [vmem:[#allocation158_spill] sm:$0xff]  ;;  %v13124_v4 = vld [vmem:[#allocation185_spill] sm:$0xff] }
 0x109   : > { %13068 = vst [vmem:[#allocation116_spill] sm:$0xff] %v10763_v25  ;;  %v3111_v62 = vrot.slane %v3103_v1, %v8707_v11  ;;  %v3835_v28 = vcombine.low %v10735_v55, %v10738_v43  ;;  %v3852_v59 = vcombine.low %v13038_v63, %v13041_v61  ;;  %v4209_v34 = vcombine.low %v10200_v44, %v10248_v41  ;;  %v13087_v43 = vld [vmem:[#allocation64_spill] sm:$0xff]  ;;  %v13165_v2 = vld [vmem:[#allocation17_spill] sm:$0xff] }
 0x10a   : > { %v3853_v6 = vcombine.low %v13069_v47, %v13043_v42  ;;  %v4208_v18 = vrot.slane %v4201_v23, %v8707_v11  ;;  %v7087_v20 = vcombine.low %v10251_v0, %v10255_v14  ;;  %v4812_v38 = vcombine.low %v4790_v58, %v4797_v35 }
 0x10b   : > { %v3836_v54 = vcombine.low %v10763_v25, %v10766_v19  ;;  %v7846_v1 = vcombine.high %v13040_v36, %v13043_v42  ;;  %v3855_v61 = vcombine.low %v13044_v40, %v13070_v7  ;;  %v4813_v60 = vcombine.low %v4804_v46, %v4811_v9  ;;  %8197 = vmatmul.mubr.msk.bf16.gmra.mrb[64].mxu1 %vm2352_vm2, %v3070_v26 }
 0x10c   : > { %v4210_v44 = vcombine.low %v10251_v0, %v4208_v18  ;;  %v10796_v41 = vrot.slane %v4209_v34, %v8707_v11  ;;  %v10799_v45 = vrot.slane %v7087_v20, %v8707_v11  ;;  %v10802_v14 = vrot.slane %v4812_v38, %v8707_v11  ;;  %8200 = vmatprep.mubr.msk.bf16.mxu1 %vm8647_vm3, %v12741_v10  ;;  %v10841_v18 = vpop.f32.mrb[0].mxu1  ;;  %v13077_v20 = vld [vmem:[#allocation184_spill] sm:$0xff] }
 0x10d   : > { %v10806_v35 = vrot.slane %v3104_v52, %v8707_v11  ;;  %v10809_v58 = vrot.slane %v3852_v59, %v8707_v11  ;;  %v10812_v46 = vrot.slane %v4813_v60, %v8707_v11  ;;  %v3843_v9 = vrot.slane %v3835_v28, %v8707_v11 }
 0x10e   : > { %13071 = vst [vmem:[#allocation3_spill] sm:$0xff] %v10796_v41  ;;  %13072 = vst [vmem:[#allocation26_spill] sm:$0xff] %v10799_v45  ;;  %v10820_v23 = vrot.slane %v3853_v6, %v8707_v11  ;;  %v10823_v26 = vrot.slane %v4210_v44, %v8707_v11  ;;  %8247 = vmatmul.mubr.msk.bf16.gmra.mrb[64].mxu0 %vm2352_vm2, %v3802_v3  ;;  %v3850_v59 = vrot.slane %v3836_v54, %v8707_v11  ;;  %v13085_v6 = vld [vmem:[#allocation62_spill] sm:$0xff]  ;;  %v13088_v45 = vld [vmem:[#allocation63_spill] sm:$0xff] }
 0x10f   : > { %13073 = vst [vmem:[#allocation27_spill] sm:$0xff] %v10806_v35  ;;  %v10830_v34 = vrot.slane %v7846_v1, %v8707_v11  ;;  %v10833_v47 = vrot.slane %v3855_v61, %v8707_v11  ;;  %8250 = vmatprep.mubr.msk.bf16.mxu0 %vm8647_vm3, %v12741_v10  ;;  %v3119_v3 = vcombine.low %v3111_v62, %v10806_v35  ;;  %v8132_v1 = vpop.f32.mrb[1].mxu1  ;;  %v13140_v35 = vld [vmem:[#allocation208_spill] sm:$0xff] }
 0x110   : > { %13074 = vst [vmem:[#allocation28_spill] sm:$0xff] %v10820_v23  ;;  %v3120_v38 = vcombine.low %v13070_v7, %v13077_v20  ;;  %v10848_v61 = vpop.f32.mrb[2].mxu1  ;;  %v3851_v60 = vcombine.low %v3843_v9, %v3850_v59  ;;  %v3884_v44 = vcombine.low %v10809_v58, %v10820_v23  ;;  %v4831_v23 = vcombine.low %v13086_v48, %v13085_v6 }
 0x111   : > { %13075 = vst [vmem:[#allocation29_spill] sm:$0xff] %v10830_v34  ;;  %13076 = vst [vmem:[#allocation30_spill] sm:$0xff] %v10833_v47  ;;  %v3885_v52 = vcombine.low %v10830_v34, %v10833_v47  ;;  %v8133_v28 = vpop.f32.mrb[3].mxu1 }
 0x112   : > { %13078 = vst [vmem:[#allocation31_spill] sm:$0xff] %v10848_v61  ;;  %v10856_v62 = vrot.slane %v3120_v38, %v8707_v11  ;;  %v3892_v9 = vrot.slane %v3884_v44, %v8707_v11  ;;  %v7847_v38 = vcombine.high %v13044_v40, %v13070_v7  ;;  %v4832_v7 = vcombine.low %v13088_v45, %v13087_v43  ;;  %v10924_v45 = vld [vmem:[%s12318_s1 + $0xc] sm:$0xf] }
 0x113   : > { %8201 = vmatmul.mubr.msk.bf16.gmra.mrb[68].mxu1 %vm2352_vm2, %v3119_v3  ;;  %v3899_v59 = vrot.slane %v3885_v52, %v8707_v11  ;;  %v7905_v3 = vcombine.low %v10115_v51, %v10115_v51  ;;  %v4853_v6 = vrot.slane %v4831_v23, %v8707_v11 }
 0x114   : > { %13079 = vst [vmem:[#allocation32_spill] sm:$0xff] %v10856_v62  ;;  %8204 = vmatprep.mubr.msk.bf16.mxu1 %vm8647_vm3, %v12741_v10  ;;  %v3134_v28 = vrot.slane %v10856_v62, %v8707_v11  ;;  %v10881_v44 = vrot.slane %v7847_v38, %v8707_v11  ;;  %v13082_v38 = vld [vmem:[#allocation33_spill] sm:$0xff]  ;;  %v4860_v43 = vrot.slane %v4832_v7, %v8707_v11 }
 0x115   : > { %v3900_v54 = vcombine.low %v3892_v9, %v3899_v59  ;;  %v5848_v0 = vrot.slane %v7905_v3, 2  ;;  %v4226_v9 = vcombine.low %v9364_v5, %v9372_v57  ;;  %v13081_v3 = vld [vmem:[#allocation58_spill] sm:$0xff]  ;;  %v13089_v5 = vcombine.low %v10708_v30, %v10711_v29  ;;  %v13093_v7 = vld [vmem:[#allocation97_spill] sm:$0xff] }
 0x116   : > { %8251 = vmatmul.mubr.msk.bf16.gmra.mrb[68].mxu0 %vm2352_vm2, %v3851_v60  ;;  %13080 = vst [vmem:[#allocation158_spill] sm:$0xff] %v10881_v44  ;;  %v3915_v59 = vrot.slane %v10881_v44, %v8707_v11  ;;  %v13083_v60 = vld [vmem:[#allocation60_spill] sm:$0xff]  ;;  %v4251_v30 = vcombine.low %v12937_v15, %v12940_v50  ;;  %v13097_v15 = vld [vmem:[#allocation101_spill] sm:$0xff] }
 0x117   : > { %8254 = vmatprep.mubr.msk.bf16.mxu0 %vm8647_vm3, %v12741_v10  ;;  %v10875_v1 = vpop.f32.mrb[4].mxu0  ;;  %v4233_v57 = vrot.slane %v4226_v9, %v8707_v11  ;;  %v13091_v9 = vld [vmem:[#allocation66_spill] sm:$0xff]  ;;  %v13139_v62 = vld [vmem:[#allocation209_spill] sm:$0xff] }
 0x118   : > { %v8108_v52 = vpop.f32.mrb[5].mxu0 }
 0x119   : > { %v10883_v51 = vpop.f32.mrb[6].mxu0  ;;  %v4829_v52 = vcombine.low %v13082_v38, %v13081_v3  ;;  %v4235_v29 = vcombine.low %v4233_v57, %v10313_v49  ;;  %v13094_v3 = vld [vmem:[#allocation100_spill] sm:$0xff]  ;;  %v13095_v38 = vld [vmem:[#allocation99_spill] sm:$0xff]  ;;  %v4862_v57 = vcombine.low %v4853_v6, %v4860_v43  ;;  %v4258_v49 = vrot.slane %v4251_v30, %v8707_v11 }
 0x11a   : > { %v8109_v40 = vpop.f32.mrb[7].mxu0 }
 0x11b   : > { %8205 = vmatmul.mubr.msk.bf16.gmra.mrb[72].mxu1 %vm2352_vm2, %v3134_v28  ;;  %v5889_v28 = vsel %vm2392_vm0, %v5848_v0, 0  ;;  %v4839_v0 = vrot.slane %v4829_v52, %v8707_v11  ;;  %v4880_v52 = vcombine.low %v13095_v38, %v13094_v3  ;;  %v13104_v38 = vld [vmem:[#allocation244_spill] sm:$0xff] }
 0x11c   : > { %8264 = vmatprep.mubr.msk.bf16.mxu1 %vm8647_vm3, %v12741_v10 }
 0x11d   : > { %v4902_v30 = vrot.slane %v4880_v52, %v8707_v11 }
 0x11e   : > { %8255 = vmatmul.mubr.msk.bf16.gmra.mrb[72].mxu0 %vm2352_vm2, %v3900_v54  ;;  %v13084_v54 = vld [vmem:[#allocation59_spill] sm:$0xff] }
 0x11f   : > { %8258 = vmatprep.mubr.msk.bf16.mxu0 %vm8647_vm3, %v12741_v10  ;;  %v4830_v40 = vcombine.low %v13084_v54, %v13083_v60  ;;  %v13090_v60 = vld [vmem:[#allocation96_spill] sm:$0xff]  ;;  %v13096_v54 = vld [vmem:[#allocation102_spill] sm:$0xff] }
 0x120   : > { %v4878_v23 = vcombine.low %v13091_v9, %v13090_v60  ;;  %v4881_v50 = vcombine.low %v13097_v15, %v13096_v54  ;;  %v13100_v9 = vcombine.low %v10796_v41, %v10823_v26  ;;  %v13105_v54 = vld [vmem:[#allocation138_spill] sm:$0xff]  ;;  %v13106_v15 = vld [vmem:[#allocation103_spill] sm:$0xff] }
 0x121   : > { %v4846_v48 = vrot.slane %v4830_v40, %v8707_v11 }
 0x122   : > { %v4888_v43 = vrot.slane %v4878_v23, %v8707_v11  ;;  %v4260_v23 = vcombine.low %v4258_v49, %v10370_v12  ;;  %v13125_v12 = vld [vmem:[#allocation183_spill] sm:$0xff] }
 0x123   : > { %8265 = vmatmul.mubr.msk.bf16.vlgmr.msra.gmra.mrb[76].mxu1 %vm2352_vm2, %v13089_v5  ;;  %v4861_v5 = vcombine.low %v4839_v0, %v4846_v48  ;;  %v13101_v0 = vcombine.low %v10258_v8, %v10303_v53  ;;  %v4249_v48 = vrot.slane %v4235_v29, %v8707_v11  ;;  %v13103_v8 = vcombine.low %v10802_v14, %v10812_v46 }
 0x124   : > { %8371 = vmatpush3.bf16.msra.mxu1 %v5889_v28  ;;  %8268 = vmatprep.mubr.msk.bf16.mxu1 %vm8647_vm3, %v12741_v10  ;;  %v10934_v40 = vpop.f32.mrb[4].mxu1  ;;  %v4876_v29 = vrot.slane %v4862_v57, %v8707_v11  ;;  %v13113_v14 = vcombine.low %v10321_v17, %v10362_v16 }
 0x125   : > { %8478 = vmatprep.subr.bf16.mxu1 %v12741_v10  ;;  %13098 = vst [vmem:[#allocation157_spill] sm:$0xff] %v10934_v40  ;;  %v8136_v44 = vpop.f32.mrb[5].mxu1  ;;  %v4869_v53 = vrot.slane %v4861_v5, %v8707_v11  ;;  %v7861_v5 = vld.sshfl [vmem:[%s8704_s21 + $0x70] sm:$0x33 pattern:$0x75316420] }
 0x126   : > { %8259 = vmatmul.mubr.msk.bf16.gmra.mrb[76].mxu0 %vm2352_vm2, %v3915_v59  ;;  %v13092_v59 = vld [vmem:[#allocation98_spill] sm:$0xff]  ;;  %v10939_v60 = vpop.f32.mrb[6].mxu1  ;;  %v10951_v44 = vrot.slane %v13101_v0, %v8707_v11 }
 0x127   : > { %8318 = vmatprep.mubr.msk.bf16.mxu0 %vm8647_vm3, %v12741_v10  ;;  %v4879_v28 = vcombine.low %v13093_v7, %v13092_v59  ;;  %13099 = vst [vmem:[#allocation184_spill] sm:$0xff] %v10939_v60  ;;  %v6392_v59 = vsel %vm2392_vm0, %v10924_v45, 0  ;;  %v8137_v6 = vpop.f32.mrb[7].mxu1  ;;  %v4909_v7 = vrot.slane %v4881_v50, %v8707_v11  ;;  %v4927_v50 = vcombine.low %v13106_v15, %v13105_v54  ;;  %v13109_v0 = vld [vmem:[#allocation142_spill] sm:$0xff] }
 0x128   : > { %13102 = vst [vmem:[#allocation58_spill] sm:$0xff] %v10951_v44  ;;  %v4250_v3 = vcombine.low %v10951_v44, %v4249_v48  ;;  %v4877_v57 = vcombine.low %v4869_v53, %v4876_v29  ;;  %v13110_v6 = vld [vmem:[#allocation141_spill] sm:$0xff]  ;;  %v13112_v48 = vld [vmem:[#allocation143_spill] sm:$0xff]  ;;  %v4128_v53 = vcombine.high %v7861_v5, %v7861_v5  ;;  %v11007_v15 = vrot.slane %v7861_v5, %v8707_v11  ;;  %v13122_v5 = vld [vmem:[#allocation182_spill] sm:$0xff] }
 0x129   : > { %v4895_v26 = vrot.slane %v4879_v28, %v8707_v11  ;;  %v4276_v28 = vcombine.low %v9787_v37, %v12954_v32  ;;  %v4911_v52 = vcombine.low %v4902_v30, %v4909_v7  ;;  %v4929_v37 = vcombine.low %v13110_v6, %v13109_v0  ;;  %v13111_v32 = vld [vmem:[#allocation144_spill] sm:$0xff]  ;;  %v13119_v6 = vld [vmem:[#allocation145_spill] sm:$0xff] }
 0x12a   : > { %v4937_v17 = vrot.slane %v4927_v50, %v8707_v11  ;;  %v4979_v44 = vcombine.low %v13125_v12, %v13124_v4 }
 0x12b   : > { %8269 = vmatmul.mubr.msk.bf16.gmra.mrb[80].mxu1 %vm2352_vm2, %v13100_v9  ;;  %v4910_v46 = vcombine.low %v4888_v43, %v4895_v26  ;;  %v13107_v9 = vld [vmem:[#allocation140_spill] sm:$0xff]  ;;  %v10988_v43 = vrot.slane %v13113_v14, %v8707_v11  ;;  %v4274_v26 = vrot.slane %v4260_v23, %v8707_v11  ;;  %v4283_v30 = vrot.slane %v4276_v28, %v8707_v11 }
 0x12c   : > { %8272 = vmatprep.mubr.msk.bf16.mxu1 %vm8647_vm3, %v12741_v10  ;;  %v4925_v54 = vrot.slane %v4911_v52, %v8707_v11  ;;  %v4951_v28 = vrot.slane %v4929_v37, %v8707_v11  ;;  %v13115_v52 = vld [vmem:[#allocation230_spill] sm:$0xff] }
 0x12d   : > { %13114 = vst [vmem:[#allocation33_spill] sm:$0xff] %v10988_v43  ;;  %v4918_v29 = vrot.slane %v4910_v46, %v8707_v11  ;;  %v4275_v46 = vcombine.low %v10988_v43, %v4274_v26 }
 0x12e   : > { %8319 = vmatmul.mubr.msk.bf16.vlgmr.msra.gmra.mrb[80].mxu0 %vm2352_vm2, %v13103_v8  ;;  %v4930_v8 = vcombine.low %v13112_v48, %v13111_v32  ;;  %v13120_v32 = vld [vmem:[#allocation180_spill] sm:$0xff]  ;;  %v13121_v48 = vld [vmem:[#allocation179_spill] sm:$0xff] }
 0x12f   : > { %8425 = vmatpush3.bf16.msra.mxu0 %v6392_v59  ;;  %8322 = vmatprep.mubr.msk.bf16.mxu0 %vm8647_vm3, %v12741_v10  ;;  %v13108_v59 = vld [vmem:[#allocation139_spill] sm:$0xff] }
 0x130   : > { %8532 = vmatprep.subr.bf16.mxu0 %v12741_v10  ;;  %v4928_v49 = vcombine.low %v13108_v59, %v13107_v9  ;;  %v4284_v9 = vcombine.low %v13115_v52, %v4283_v30  ;;  %v13117_v59 = vld [vmem:[#allocation194_spill] sm:$0xff]  ;;  %v11026_v30 = vrot.slane %v4128_v53, %v8707_v11 }
 0x131   : > { %v10999_v16 = vpop.f32.mrb[8].mxu0 }
 0x132   : > { %v4944_v23 = vrot.slane %v4928_v49, %v8707_v11  ;;  %v8112_v14 = vpop.f32.mrb[9].mxu0  ;;  %v13118_v49 = vld [vmem:[#allocation178_spill] sm:$0xff] }
 0x133   : > { %8273 = vmatmul.mubr.msk.bf16.gmra.mrb[84].mxu1 %vm2352_vm2, %v4250_v3  ;;  %v4958_v3 = vrot.slane %v4930_v8, %v8707_v11  ;;  %v11015_v0 = vpop.f32.mrb[10].mxu0  ;;  %v4976_v37 = vcombine.low %v13119_v6, %v13118_v49  ;;  %v4977_v8 = vcombine.low %v13121_v48, %v13120_v32  ;;  %v13123_v14 = vld [vmem:[#allocation181_spill] sm:$0xff]  ;;  %v4729_v49 = vshll.u32 %v11026_v30, 16 }
 0x134   : > { %8276 = vmatprep.mubr.msk.bf16.mxu1 %vm8647_vm3, %v12741_v10  ;;  %v4978_v7 = vcombine.low %v13123_v14, %v13122_v5  ;;  %v8113_v26 = vpop.f32.mrb[11].mxu0  ;;  %v4959_v52 = vcombine.low %v4937_v17, %v4944_v23  ;;  %v4292_v6 = vrot.slane %v4284_v9, %v8707_v11  ;;  %v13126_v32 = vcombine.low %v10431_v27, %v10434_v24  ;;  %v7862_v17 = vld.sshfl [vmem:[%s8704_s21 + $0x74] sm:$0x33 pattern:$0x75316420]  ;;  %v13133_v5 = vld [vmem:[#allocation203_spill] sm:$0xff] }
 0x135   : > { %v4960_v43 = vcombine.low %v4951_v28, %v4958_v3  ;;  %v4986_v4 = vrot.slane %v4976_v37, %v8707_v11  ;;  %v4993_v53 = vrot.slane %v4977_v8, %v8707_v11  ;;  %v13135_v26 = vld [vmem:[#allocation205_spill] sm:$0xff] }
 0x136   : > { %8323 = vmatmul.mubr.msk.bf16.gmra.mrb[84].mxu0 %vm2352_vm2, %v4877_v57  ;;  %v13116_v57 = vld [vmem:[#allocation195_spill] sm:$0xff]  ;;  %v11035_v48 = vrot.slane %v13126_v32, %v8707_v11  ;;  %v4967_v27 = vrot.slane %v4959_v52, %v8707_v11  ;;  %v13138_v32 = vld [vmem:[#allocation206_spill] sm:$0xff] }
 0x137   : > { %8326 = vmatprep.mubr.msk.bf16.mxu0 %vm8647_vm3, %v12741_v10  ;;  %v4301_v50 = vcombine.low %v13117_v59, %v13116_v57  ;;  %v4724_v57 = vshrl.u32 %v11007_v15, 16  ;;  %v4926_v59 = vcombine.low %v4918_v29, %v4925_v54  ;;  %v5000_v29 = vrot.slane %v4978_v7, %v8707_v11  ;;  %v13130_v7 = vld [vmem:[#allocation233_spill] sm:$0xff] }
 0x138   : > { %13127 = vst [vmem:[#allocation60_spill] sm:$0xff] %v11035_v48  ;;  %v5007_v54 = vrot.slane %v4979_v44, %v8707_v11  ;;  %v4974_v24 = vrot.slane %v4960_v43, %v8707_v11  ;;  %v13131_v44 = vld [vmem:[#allocation4_spill] sm:$0xff]  ;;  %v4300_v37 = vcombine.low %v4292_v6, %v11035_v48  ;;  %v5008_v8 = vcombine.low %v4986_v4, %v4993_v53  ;;  %v13134_v43 = vld [vmem:[#allocation186_spill] sm:$0xff] }
 0x139   : > { %v4308_v12 = vrot.slane %v4301_v50, %v8707_v11  ;;  %v11051_v28 = vsel %vm8739_vm1, %v4724_v57, %v4729_v49  ;;  %v4152_v50 = vcombine.high %v7862_v17, %v7862_v17  ;;  %v5025_v14 = vcombine.low %v13134_v43, %v13133_v5  ;;  %v13137_v49 = vld [vmem:[#allocation207_spill] sm:$0xff]  ;;  %v13143_v6 = vld [vmem:[#allocation218_spill] sm:$0xff] }
 0x13a   : > { %13129 = vst [vmem:[#allocation59_spill] sm:$0xff] %v11051_v28  ;;  %v5009_v52 = vcombine.low %v5000_v29, %v5007_v54  ;;  %v5027_v41 = vcombine.low %v13138_v32, %v13137_v49  ;;  %v4975_v29 = vcombine.low %v4967_v27, %v4974_v24  ;;  %v13148_v27 = vld [vmem:[#allocation219_spill] sm:$0xff]  ;;  %v13149_v24 = vld [vmem:[#allocation220_spill] sm:$0xff]  ;;  %v13158_v48 = vld [vmem:[#allocation38_spill] sm:$0xff] }
 0x13b   : > { %8277 = vmatmul.mubr.msk.bf16.gmra.mrb[88].mxu1 %vm2352_vm2, %v4275_v46  ;;  %v4309_v3 = vcombine.low %v13130_v7, %v4308_v12  ;;  %v13132_v46 = vld [vmem:[#allocation201_spill] sm:$0xff]  ;;  %v5028_v12 = vcombine.low %v13140_v35, %v13139_v62  ;;  %v11078_v5 = vrot.slane %v4152_v50, %v8707_v11  ;;  %v13146_v35 = vcombine.low %v10489_v56, %v10492_v21 }
 0x13c   : > { %8280 = vmatprep.mubr.msk.bf16.mxu1 %vm8647_vm3, %v12741_v10  ;;  %v4326_v9 = vcombine.low %v13132_v46, %v13131_v44  ;;  %v13141_v7 = vld [vmem:[#allocation193_spill] sm:$0xff]  ;;  %v13142_v46 = vld [vmem:[#allocation215_spill] sm:$0xff]  ;;  %v13150_v49 = vcombine.low %v13148_v27, %v13149_v24  ;;  %v5023_v56 = vrot.slane %v5009_v52, %v8707_v11  ;;  %v5035_v21 = vrot.slane %v5025_v14, %v8707_v11  ;;  %v13152_v14 = vld [vmem:[#allocation166_spill] sm:$0xff] }
 0x13d   : > { %v5320_v44 = vcombine.low %v13141_v7, %v11051_v28  ;;  %v13144_v4 = vcombine.low %v13142_v46, %v13143_v6  ;;  %v4317_v43 = vrot.slane %v4309_v3, %v8707_v11  ;;  %v11085_v62 = vrot.slane %v13146_v35, %v8707_v11  ;;  %v13156_v27 = vld [vmem:[#allocation12_spill] sm:$0xff] }
 0x13e   : > { %8327 = vmatmul.mubr.msk.bf16.gmra.mrb[88].mxu0 %vm2352_vm2, %v4926_v59  ;;  %v13136_v59 = vld [vmem:[#allocation204_spill] sm:$0xff]  ;;  %v11075_v54 = vpop.f32.mrb[8].mxu1  ;;  %v4333_v7 = vrot.slane %v4326_v9, %v8707_v11  ;;  %v11095_v50 = vrot.slane %v13150_v49, %v8707_v11  ;;  %v5016_v3 = vrot.slane %v5008_v8, %v8707_v11  ;;  %v5049_v9 = vrot.slane %v5027_v41, %v8707_v11 }
 0x13f   : > { %8330 = vmatprep.mubr.msk.bf16.mxu0 %vm8647_vm3, %v12741_v10  ;;  %v5026_v57 = vcombine.low %v13136_v59, %v13135_v26  ;;  %v11073_v53 = vrot.slane %v13144_v4, %v8707_v11  ;;  %13145 = vst [vmem:[#allocation62_spill] sm:$0xff] %v11075_v54  ;;  %13147 = vst [vmem:[#allocation61_spill] sm:$0xff] %v11085_v62  ;;  %v8140_v26 = vpop.f32.mrb[9].mxu1  ;;  %v11089_v59 = vrot.slane %v7862_v17, %v8707_v11  ;;  %v13153_v4 = vld [vmem:[#allocation192_spill] sm:$0xff]  ;;  %v13161_v54 = vld [vmem:[#allocation210_spill] sm:$0xff] }
 0x140   : > { %v11101_v32 = vpop.f32.mrb[10].mxu1  ;;  %v5056_v46 = vrot.slane %v5028_v12, %v8707_v11  ;;  %v4761_v52 = vshll.u32 %v11078_v5, 16  ;;  %v13154_v35 = vcombine.low %v13152_v14, %v13153_v4  ;;  %v11122_v41 = vrot.slane %v5320_v44, %v8707_v11  ;;  %v13155_v26 = vld [vmem:[#allocation9_spill] sm:$0xff]  ;;  %v13157_v24 = vld [vmem:[#allocation8_spill] sm:$0xff] }
 0x141   : > { %13151 = vst [vmem:[#allocation64_spill] sm:$0xff] %v11101_v32  ;;  %v5042_v17 = vrot.slane %v5026_v57, %v8707_v11  ;;  %v8141_v6 = vpop.f32.mrb[11].mxu1  ;;  %v4756_v8 = vshrl.u32 %v11089_v59, 16  ;;  %v4325_v12 = vcombine.low %v4317_v43, %v11085_v62  ;;  %v4351_v49 = vcombine.low %v13157_v24, %v13156_v27  ;;  %v13159_v14 = vld [vmem:[#allocation40_spill] sm:$0xff]  ;;  %v13160_v32 = vld [vmem:[#allocation14_spill] sm:$0xff]  ;;  %v13163_v62 = vld [vmem:[#allocation15_spill] sm:$0xff] }
 0x142   : > { %v11119_v57 = vrot.slane %v13154_v35, %v8707_v11  ;;  %v4764_v6 = vshrl.u32 %v11078_v5, 16  ;;  %v5024_v28 = vcombine.low %v5016_v3, %v5023_v56  ;;  %v4352_v4 = vcombine.low %v13159_v14, %v13158_v48  ;;  %v13162_v43 = vld [vmem:[#allocation16_spill] sm:$0xff] }
 0x143   : > { %8281 = vmatmul.mubr.msk.bf16.gmra.mrb[92].mxu1 %vm2352_vm2, %v4300_v37  ;;  %v11110_v37 = vcombine.high %v11089_v59, %v11089_v59  ;;  %v5074_v60 = vcombine.low %v13161_v54, %v13160_v32  ;;  %v13166_v24 = vld [vmem:[#allocation20_spill] sm:$0xff]  ;;  %v5057_v56 = vcombine.low %v5035_v21, %v5042_v17  ;;  %v5058_v40 = vcombine.low %v5049_v9, %v5056_v46 }
 0x144   : > { %8284 = vmatprep.mubr.msk.bf16.mxu1 %vm8647_vm3, %v12741_v10  ;;  %v5077_v3 = vcombine.low %v13167_v13, %v13166_v24  ;;  %v11146_v48 = vsel %vm8739_vm1, %v4756_v8, %v4761_v52  ;;  %v13168_v54 = vcombine.low %v10549_v39, %v10552_v31  ;;  %v4359_v21 = vrot.slane %v4351_v49, %v8707_v11 }
 0x145   : > { %v4769_v35 = vshll.u32 %v11110_v37, 16  ;;  %v4366_v32 = vrot.slane %v4352_v4, %v8707_v11  ;;  %v5084_v39 = vrot.slane %v5074_v60, %v8707_v11  ;;  %v5065_v8 = vrot.slane %v5057_v56, %v8707_v11 }
 0x146   : > { %8331 = vmatmul.mubr.msk.bf16.gmra.mrb[92].mxu0 %vm2352_vm2, %v4975_v29  ;;  %v4334_v29 = vcombine.low %v4333_v7, %v13155_v26  ;;  %v5075_v7 = vcombine.low %v13163_v62, %v13162_v43  ;;  %v13164_v26 = vld [vmem:[#allocation18_spill] sm:$0xff]  ;;  %v11156_v62 = vrot.slane %v13168_v54, %v8707_v11  ;;  %v5105_v46 = vrot.slane %v5077_v3, %v8707_v11  ;;  %v13173_v43 = vld [vmem:[#allocation73_spill] sm:$0xff] }
 0x147   : > { %8334 = vmatprep.mubr.msk.bf16.mxu0 %vm8647_vm3, %v12741_v10  ;;  %v5076_v27 = vcombine.low %v13165_v2, %v13164_v26  ;;  %v11150_v14 = vsel %vm8739_vm1, %v4764_v6, %v4769_v35  ;;  %v5072_v52 = vrot.slane %v5058_v40, %v8707_v11  ;;  %v13171_v6 = vld [vmem:[#allocation240_spill] sm:$0xff]  ;;  %v13172_v35 = vld [vmem:[#allocation75_spill] sm:$0xff]  ;;  %v13175_v3 = vld [vmem:[#allocation21_spill] sm:$0xff] }
 0x148   : > { %13169 = vst [vmem:[#allocation63_spill] sm:$0xff] %v11156_v62  ;;  %v4342_v13 = vrot.slane %v4334_v29, %v8707_v11  ;;  %v5091_v31 = vrot.slane %v5075_v7, %v8707_v11  ;;  %v13170_v29 = vld [vmem:[#allocation42_spill] sm:$0xff]  ;;  %v4368_v4 = vcombine.low %v13171_v6, %v4366_v32  ;;  %v4384_v7 = vcombine.low %v13173_v43, %v13172_v35  ;;  %v13174_v40 = vld [vmem:[#allocation43_spill] sm:$0xff]  ;;  %v13177_v2 = vld [vmem:[#allocation45_spill] sm:$0xff] }
 0x149   : > { %v5098_v9 = vrot.slane %v5076_v27, %v8707_v11  ;;  %v4367_v49 = vcombine.low %v4359_v21, %v13170_v29  ;;  %v5123_v56 = vcombine.low %v13175_v3, %v13174_v40  ;;  %v13176_v54 = vld [vmem:[#allocation46_spill] sm:$0xff]  ;;  %v5073_v44 = vcombine.low %v5065_v8, %v5072_v52  ;;  %v13181_v32 = vld [vmem:[#allocation49_spill] sm:$0xff]  ;;  %v13185_v43 = vld [vmem:[#allocation51_spill] sm:$0xff] }
 0x14a   : > { %v4350_v60 = vcombine.low %v4342_v13, %v11156_v62  ;;  %v5106_v27 = vcombine.low %v5084_v39, %v5091_v31  ;;  %v5124_v17 = vcombine.low %v13177_v2, %v13176_v54  ;;  %v13178_v13 = vld [vmem:[#allocation48_spill] sm:$0xff]  ;;  %v13179_v62 = vld [vmem:[#allocation47_spill] sm:$0xff]  ;;  %v13180_v29 = vld [vmem:[#allocation50_spill] sm:$0xff]  ;;  %v4382_v39 = vrot.slane %v4368_v4, %v8707_v11 }
 0x14b   : > { %8285 = vmatmul.mubr.msk.bf16.gmra.mrb[96].mxu1 %vm2352_vm2, %v4325_v12  ;;  %v11175_v12 = vpop.f32.mrb[12].mxu0  ;;  %v5107_v24 = vcombine.low %v5098_v9, %v5105_v46  ;;  %v5125_v21 = vcombine.low %v13179_v62, %v13178_v13  ;;  %v5126_v6 = vcombine.low %v13181_v32, %v13180_v29  ;;  %v4375_v35 = vrot.slane %v4367_v49, %v8707_v11  ;;  %v13183_v29 = vld [vmem:[#allocation109_spill] sm:$0xff]  ;;  %v13184_v4 = vld [vmem:[#allocation79_spill] sm:$0xff]  ;;  %v13191_v54 = vld [vmem:[#allocation84_spill] sm:$0xff] }
 0x14c   : > { %8288 = vmatprep.mubr.msk.bf16.mxu1 %vm8647_vm3, %v12741_v10  ;;  %v8116_v26 = vpop.f32.mrb[13].mxu0  ;;  %v4391_v31 = vrot.slane %v4384_v7, %v8707_v11  ;;  %v5114_v2 = vrot.slane %v5106_v27, %v8707_v11  ;;  %v5133_v62 = vrot.slane %v5123_v56, %v8707_v11  ;;  %v5140_v46 = vrot.slane %v5124_v17, %v8707_v11  ;;  %v13186_v27 = vld [vmem:[#allocation81_spill] sm:$0xff]  ;;  %v13188_v3 = vld [vmem:[#allocation83_spill] sm:$0xff]  ;;  %v13189_v17 = vld [vmem:[#allocation82_spill] sm:$0xff] }
 0x14d   : > { %v5121_v9 = vrot.slane %v5107_v24, %v8707_v11  ;;  %v5147_v8 = vrot.slane %v5125_v21, %v8707_v11  ;;  %v5154_v52 = vrot.slane %v5126_v6, %v8707_v11  ;;  %v5172_v7 = vcombine.low %v13185_v43, %v13184_v4  ;;  %v13187_v24 = vld [vmem:[#allocation80_spill] sm:$0xff]  ;;  %v13192_v6 = vld [vmem:[#allocation242_spill] sm:$0xff] }
 0x14e   : > { %8335 = vmatmul.mubr.msk.bf16.gmra.mrb[96].mxu0 %vm2352_vm2, %v5024_v28  ;;  %v11184_v28 = vpop.f32.mrb[14].mxu0  ;;  %v5173_v40 = vcombine.low %v13187_v24, %v13186_v27  ;;  %v5174_v56 = vcombine.low %v13189_v17, %v13188_v3  ;;  %v4383_v13 = vcombine.low %v4375_v35, %v4382_v39  ;;  %v4393_v21 = vcombine.low %v13192_v6, %v4391_v31 }
 0x14f   : > { %8338 = vmatprep.mubr.msk.bf16.mxu0 %vm8647_vm3, %v12741_v10  ;;  %v8117_v26 = vpop.f32.mrb[15].mxu0  ;;  %v5122_v32 = vcombine.low %v5114_v2, %v5121_v9  ;;  %v5182_v43 = vrot.slane %v5172_v7, %v8707_v11  ;;  %v4434_v35 = vcombine.low %v13040_v36, %v13043_v42  ;;  %v13193_v31 = vcombine.low %v10614_v22, %v10659_v33  ;;  %v13195_v7 = vld [vmem:[#allocation117_spill] sm:$0xff] }
 0x150   : > { %v5189_v27 = vrot.slane %v5173_v40, %v8707_v11  ;;  %v5196_v24 = vrot.slane %v5174_v56, %v8707_v11  ;;  %v4407_v9 = vrot.slane %v4393_v21, %v8707_v11  ;;  %v13196_v40 = vld [vmem:[#allocation86_spill] sm:$0xff]  ;;  %v13197_v56 = vld [vmem:[#allocation119_spill] sm:$0xff] }
 0x151   : > { %v11234_v2 = vrot.slane %v13193_v31, %v8707_v11  ;;  %v5221_v17 = vcombine.low %v13196_v40, %v13195_v7  ;;  %v5791_v7 = vcombine.low %v11089_v59, %v11078_v5 }
 0x152   : > { %v5204_v33 = vcombine.low %v5182_v43, %v5189_v27 }
 0x153   : > { %8289 = vmatmul.mubr.msk.bf16.gmra.mrb[100].mxu1 %vm2352_vm2, %v4350_v60  ;;  %v13182_v60 = vld [vmem:[#allocation110_spill] sm:$0xff]  ;;  %13194 = vst [vmem:[#allocation96_spill] sm:$0xff] %v11234_v2  ;;  %v5231_v31 = vrot.slane %v5221_v17, %v8707_v11 }
 0x154   : > { %8292 = vmatprep.mubr.msk.bf16.mxu1 %vm8647_vm3, %v12741_v10  ;;  %v4409_v49 = vcombine.low %v13183_v29, %v13182_v60  ;;  %v5155_v60 = vcombine.low %v5133_v62, %v5140_v46  ;;  %v5156_v29 = vcombine.low %v5147_v8, %v5154_v52  ;;  %v4441_v52 = vrot.slane %v4434_v35, %v8707_v11 }
 0x156   : > { %8339 = vmatmul.mubr.msk.bf16.gmra.mrb[100].mxu0 %vm2352_vm2, %v5073_v44  ;;  %v13190_v44 = vld [vmem:[#allocation85_spill] sm:$0xff]  ;;  %v4416_v4 = vrot.slane %v4409_v49, %v8707_v11  ;;  %v5163_v36 = vrot.slane %v5155_v60, %v8707_v11  ;;  %v5170_v42 = vrot.slane %v5156_v29, %v8707_v11  ;;  %v4408_v49 = vcombine.low %v11234_v2, %v4407_v9  ;;  %v13202_v60 = vld [vmem:[#allocation122_spill] sm:$0xff] }
 0x157   : > { %8342 = vmatprep.mubr.msk.bf16.mxu0 %vm8647_vm3, %v12741_v10  ;;  %v5175_v26 = vcombine.low %v13191_v54, %v13190_v44  ;;  %v11222_v61 = vpop.f32.mrb[12].mxu1  ;;  %v13198_v44 = vld [vmem:[#allocation118_spill] sm:$0xff]  ;;  %v4443_v35 = vcombine.low %v4441_v52, %v10830_v34 }
 0x158   : > { %v8144_v39 = vpop.f32.mrb[13].mxu1  ;;  %v4418_v22 = vcombine.low %v4416_v4, %v10763_v25  ;;  %v5222_v54 = vcombine.low %v13198_v44, %v13197_v56  ;;  %v13203_v4 = vcombine.low %v13104_v38, %v10735_v55  ;;  %v4144_v55 = vcombine.high %v11026_v30, %v11026_v30 }
 0x159   : > { %v5203_v3 = vrot.slane %v5175_v26, %v8707_v11  ;;  %v11237_v62 = vpop.f32.mrb[14].mxu1  ;;  %v13199_v26 = vld [vmem:[#allocation121_spill] sm:$0xff]  ;;  %v5171_v39 = vcombine.low %v5163_v36, %v5170_v42  ;;  %v13205_v42 = vld [vmem:[#allocation35_spill] sm:$0xff]  ;;  %v13208_v56 = vcombine.low %v10766_v19, %v10809_v58  ;;  %v13213_v58 = vld [vmem:[#allocation160_spill] sm:$0xff] }
 0x15a   : > { %v8145_v46 = vpop.f32.mrb[15].mxu1  ;;  %v11261_v43 = vrot.slane %v13203_v4, %v8707_v11  ;;  %v4432_v27 = vrot.slane %v4418_v22, %v8707_v11  ;;  %v5238_v9 = vrot.slane %v5222_v54, %v8707_v11  ;;  %v13206_v22 = vld [vmem:[#allocation67_spill] sm:$0xff]  ;;  %v4457_v54 = vrot.slane %v4443_v35, %v8707_v11  ;;  %v13212_v19 = vld [vmem:[#allocation161_spill] sm:$0xff] }
 0x15b   : > { %8293 = vmatmul.mubr.msk.bf16.gmra.mrb[104].mxu1 %vm2352_vm2, %v4383_v13  ;;  %v5205_v8 = vcombine.low %v5196_v24, %v5203_v3  ;;  %v13200_v13 = vld [vmem:[#allocation120_spill] sm:$0xff]  ;;  %v5212_v24 = vrot.slane %v5204_v33, %v8707_v11  ;;  %v4143_v46 = vcombine.high %v11007_v15, %v11007_v15  ;;  %v13207_v33 = vcombine.low %v13205_v42, %v13206_v22  ;;  %v13210_v4 = vld [vmem:[#allocation159_spill] sm:$0xff]  ;;  %v11311_v35 = vld.sshfl [vmem:[%s8704_s21 + $0x78] sm:$0x33 pattern:$0x75316420] }
 0x15c   : > { %8296 = vmatprep.mubr.msk.bf16.mxu1 %vm8647_vm3, %v12741_v10  ;;  %v5223_v21 = vcombine.low %v13200_v13, %v13199_v26  ;;  %13204 = vst [vmem:[#allocation66_spill] sm:$0xff] %v11261_v43  ;;  %v4433_v40 = vcombine.low %v11261_v43, %v4432_v27  ;;  %v11297_v44 = vrot.slane %v13208_v56, %v8707_v11  ;;  %v13211_v27 = vld [vmem:[#allocation124_spill] sm:$0xff] }
 0x15d   : > { %v5219_v3 = vrot.slane %v5205_v8, %v8707_v11  ;;  %v11282_v8 = vrot.slane %v13207_v33, %v8707_v11  ;;  %v5253_v13 = vcombine.low %v5231_v31, %v5238_v9  ;;  %v13215_v9 = vld [vmem:[#allocation162_spill] sm:$0xff]  ;;  %v13216_v33 = vld [vmem:[#allocation165_spill] sm:$0xff]  ;;  %v13217_v56 = vld [vmem:[#allocation164_spill] sm:$0xff]  ;;  %v4737_v43 = vshll.u32 %v4143_v46, 16 }
 0x15e   : > { %8343 = vmatmul.mubr.msk.bf16.gmra.mrb[104].mxu0 %vm2352_vm2, %v5122_v32  ;;  %v13201_v32 = vld [vmem:[#allocation123_spill] sm:$0xff]  ;;  %v5245_v38 = vrot.slane %v5223_v21, %v8707_v11  ;;  %13209 = vst [vmem:[#allocation98_spill] sm:$0xff] %v11297_v44  ;;  %v4459_v21 = vcombine.low %v13077_v20, %v11007_v15  ;;  %v13220_v31 = vld [vmem:[#allocation70_spill] sm:$0xff] }
 0x15f   : > { %8346 = vmatprep.mubr.msk.bf16.mxu0 %vm8647_vm3, %v12741_v10  ;;  %v5224_v29 = vcombine.low %v13202_v60, %v13201_v32  ;;  %v5220_v17 = vcombine.low %v5212_v24, %v5219_v3  ;;  %v4460_v32 = vcombine.low %v11026_v30, %v4143_v46  ;;  %v4461_v60 = vcombine.low %v4144_v55, %v11089_v59  ;;  %v13214_v20 = vld [vmem:[#allocation163_spill] sm:$0xff] }
 0x160   : > { %v5270_v24 = vcombine.low %v13211_v27, %v13210_v4  ;;  %v5271_v3 = vcombine.low %v13213_v58, %v13212_v19  ;;  %v5272_v22 = vcombine.low %v13215_v9, %v13214_v20  ;;  %v4745_v4 = vshll.u32 %v4144_v55, 16 }
 0x161   : > { %v5252_v36 = vrot.slane %v5224_v29, %v8707_v11  ;;  %v4748_v27 = vshrl.u32 %v4144_v55, 16  ;;  %v4753_v19 = vshll.u32 %v11089_v59, 16  ;;  %v4468_v58 = vrot.slane %v4459_v21, %v8707_v11 }
 0x162   : > { %v4482_v20 = vrot.slane %v4461_v60, %v8707_v11  ;;  %v5294_v21 = vrot.slane %v5272_v22, %v8707_v11  ;;  %v11340_v60 = vrot.slane %v5791_v7, %v8707_v11 }
 0x163   : > { %8297 = vmatmul.mubr.msk.bf16.gmra.mrb[108].mxu1 %vm2352_vm2, %v4408_v49  ;;  %v4732_v49 = vshrl.u32 %v11026_v30, 16 }
 0x164   : > { %8300 = vmatprep.mubr.msk.bf16.mxu1 %vm8647_vm3, %v12741_v10  ;;  %v11285_v52 = vpop.f32.mrb[16].mxu0 }
 0x165   : > { %v8120_v26 = vpop.f32.mrb[17].mxu0 }
 0x166   : > { %8347 = vmatmul.mubr.msk.bf16.gmra.mrb[108].mxu0 %vm2352_vm2, %v5171_v39  ;;  %v11304_v29 = vpop.f32.mrb[18].mxu0  ;;  %v5254_v39 = vcombine.low %v5245_v38, %v5252_v36  ;;  %v5273_v26 = vcombine.low %v13217_v56, %v13216_v33  ;;  %v11321_v38 = vrot.slane %v11311_v35, %v8707_v11  ;;  %v4740_v36 = vshrl.u32 %v4143_v46, 16 }
 0x167   : > { %8350 = vmatprep.mubr.msk.bf16.mxu0 %vm8647_vm3, %v12741_v10  ;;  %v8121_v42 = vpop.f32.mrb[19].mxu0  ;;  %v5261_v46 = vrot.slane %v5253_v13, %v8707_v11  ;;  %v5280_v33 = vrot.slane %v5270_v24, %v8707_v11  ;;  %v13219_v13 = vld [vmem:[#allocation69_spill] sm:$0xff]  ;;  %v11363_v24 = vsel %vm8739_vm1, %v4748_v27, %v4753_v19 }
 0x168   : > { %13218 = vst [vmem:[#allocation97_spill] sm:$0xff] %v11321_v38  ;;  %v4475_v42 = vrot.slane %v4460_v32, %v8707_v11  ;;  %v6296_v9 = vcombine.low %v11110_v37, %v11321_v38  ;;  %v5268_v55 = vrot.slane %v5254_v39, %v8707_v11  ;;  %v5301_v32 = vrot.slane %v5273_v26, %v8707_v11 }
 0x169   : > { %v13221_v39 = vcombine.low %v13219_v13, %v13220_v31  ;;  %v11359_v7 = vsel %vm8739_vm1, %v4740_v36, %v4745_v4  ;;  %13223 = vst [vmem:[#allocation99_spill] sm:$0xff] %v11363_v24  ;;  %v4483_v31 = vcombine.low %v10833_v47, %v4468_v58  ;;  %v5322_v4 = vcombine.low %v11363_v24, %v11146_v48 }
 0x16a   : > { %v11343_v56 = vrot.slane %v6296_v9, %v8707_v11  ;;  %13222 = vst [vmem:[#allocation100_spill] sm:$0xff] %v11359_v7  ;;  %v4484_v22 = vcombine.low %v4475_v42, %v4482_v20  ;;  %v5269_v9 = vcombine.low %v5261_v46, %v5268_v55 }
 0x16b   : > { %8301 = vmatmul.mubr.msk.bf16.gmra.mrb[112].mxu1 %vm2352_vm2, %v4433_v40  ;;  %v5287_v40 = vrot.slane %v5271_v3, %v8707_v11  ;;  %v11349_v34 = vrot.slane %v13221_v39, %v8707_v11  ;;  %v4458_v3 = vcombine.low %v11297_v44, %v4457_v54  ;;  %v4491_v54 = vrot.slane %v4483_v31, %v8707_v11 }
 0x16c   : > { %8304 = vmatprep.mubr.msk.bf16.mxu1 %vm8647_vm3, %v12741_v10  ;;  %v11378_v19 = vrot.slane %v4484_v22, %v8707_v11  ;;  %v4500_v39 = vcombine.low %v11078_v5, %v11110_v37  ;;  %v4772_v22 = vshrl.u32 %v11110_v37, 16 }
 0x16d   : > { %v5302_v13 = vcombine.low %v5280_v33, %v5287_v40  ;;  %v5350_v40 = vrot.slane %v5322_v4, %v8707_v11 }
 0x16e   : > { %8351 = vmatmul.mubr.msk.bf16.gmra.mrb[112].mxu0 %vm2352_vm2, %v5220_v17  ;;  %v11355_v17 = vsel %vm8739_vm1, %v4732_v49, %v4737_v43  ;;  %v5303_v43 = vcombine.low %v5294_v21, %v5301_v32  ;;  %13224 = vst [vmem:[#allocation102_spill] sm:$0xff] %v11378_v19  ;;  %v11395_v21 = vcombine.high %v11078_v5, %v11078_v5 }
 0x16f   : > { %8354 = vmatprep.mubr.msk.bf16.mxu0 %vm8647_vm3, %v12741_v10  ;;  %v5321_v36 = vcombine.low %v11355_v17, %v11359_v7  ;;  %v5310_v46 = vrot.slane %v5302_v13, %v8707_v11  ;;  %v4499_v32 = vcombine.low %v4491_v54, %v11378_v19  ;;  %v11404_v13 = vrot.slane %v4500_v39, %v8707_v11  ;;  %v13241_v19 = vld [vmem:[#allocation115_spill] sm:$0xff] }
 0x170   : > { %v11369_v49 = vpop.f32.mrb[16].mxu1  ;;  %v5317_v55 = vrot.slane %v5303_v43, %v8707_v11  ;;  %13225 = vst [vmem:[#allocation101_spill] sm:$0xff] %v11395_v21  ;;  %v13227_v43 = vcombine.low %v11119_v57, %v11122_v41 }
 0x171   : > { %v8148_v27 = vpop.f32.mrb[17].mxu1  ;;  %v5343_v33 = vrot.slane %v5321_v36, %v8707_v11  ;;  %13226 = vst [vmem:[#allocation244_spill] sm:$0xff] %v11404_v13 }
 0x172   : > { %v11380_v58 = vpop.f32.mrb[18].mxu1  ;;  %v5359_v36 = vrot.slane %v13227_v43, %v8707_v11 }
 0x173   : > { %8305 = vmatmul.mubr.msk.bf16.gmra.mrb[116].mxu1 %vm2352_vm2, %v4458_v3  ;;  %v8149_v20 = vpop.f32.mrb[19].mxu1  ;;  %v5318_v3 = vcombine.low %v5310_v46, %v5317_v55  ;;  %v5352_v31 = vcombine.low %v5343_v33, %v5350_v40  ;;  %v4514_v55 = vrot.slane %v11404_v13, %v8707_v11  ;;  %v13228_v33 = vld [vmem:[#allocation56_spill] sm:$0xff]  ;;  %v13229_v40 = vld [vmem:[#allocation53_spill] sm:$0xff] }
 0x174   : > { %8308 = vmatprep.mubr.msk.bf16.mxu1 %vm8647_vm3, %v12741_v10  ;;  %v231_v13 = vld [vmem:[%s12318_s1 + $0x10] sm:$0x3] }
 0x175   : > { %v5366_v4 = vrot.slane %v5352_v31, %v8707_v11  ;;  %v7941_v31 = vcombine.low %v10924_v45, %v10924_v45  ;;  %v13230_v45 = vld [vmem:[#allocation221_spill] sm:$0xff] }
 0x176   : > { %8355 = vmatmul.mubr.msk.bf16.gmra.mrb[116].mxu0 %vm2352_vm2, %v5269_v9  ;;  %v4777_v9 = vshll.u32 %v11395_v21, 16 }
 0x177   : > { %8358 = vmatprep.mubr.msk.bf16.mxu0 %vm8647_vm3, %v12741_v10  ;;  %v5367_v43 = vcombine.low %v5359_v36, %v5366_v4  ;;  %v13231_v4 = vld [vmem:[#allocation92_spill] sm:$0xff] }
 0x178   : > { %v11422_v46 = vsel %vm8739_vm1, %v4772_v22, %v4777_v9 }
 0x17b   : > { %8309 = vmatmul.mubr.msk.bf16.gmra.mrb[120].mxu1 %vm2352_vm2, %v4499_v32  ;;  %v7897_v32 = vcombine.high %v13229_v40, %v13228_v33 }
 0x17c   : > { %8312 = vmatprep.mubr.msk.bf16.mxu1 %vm8647_vm3, %v12741_v10  ;;  %v11414_v37 = vpop.f32.mrb[20].mxu0 }
 0x17d   : > { %v11416_v27 = vpop.f32.mrb[20].mxu1  ;;  %v8124_v54 = vpop.f32.mrb[21].mxu0  ;;  %v5610_v22 = vrot.slane %v7897_v32, %v8707_v11  ;;  %v13233_v32 = vld [vmem:[#allocation216_spill] sm:$0xff] }
 0x17e   : > { %8359 = vmatmul.mubr.msk.bf16.gmra.mrb[120].mxu0 %vm2352_vm2, %v5318_v3  ;;  %v8152_v20 = vpop.f32.mrb[21].mxu1  ;;  %v11426_v57 = vpop.f32.mrb[22].mxu0  ;;  %v5368_v54 = vcombine.low %v11150_v14, %v11422_v46 }
 0x17f   : > { %8362 = vmatprep.mubr.msk.bf16.mxu0 %vm8647_vm3, %v12741_v10  ;;  %v2529_v41 = vpop.f32.mrb[22].mxu1  ;;  %v8125_v39 = vpop.f32.mrb[23].mxu0  ;;  %v6883_v20 = vrot.slane %v7941_v31, 2  ;;  %v5611_v36 = vcombine.low %v5610_v22, %v13230_v45 }
 0x180   : > { %v8153_v3 = vpop.f32.mrb[23].mxu1  ;;  %v5375_v9 = vrot.slane %v5368_v54, %v8707_v11  ;;  %v13232_v41 = vld [vmem:[#allocation93_spill] sm:$0xff] }
 0x181   : > { %v5620_v33 = vcombine.low %v13232_v41, %v13231_v4  ;;  %v6924_v40 = vsel %vm2392_vm0, %v6883_v20, 0  ;;  %v13234_v39 = vld [vmem:[#allocation217_spill] sm:$0xff] }
 0x182   : > { %v13235_v3 = vcombine.low %v13233_v32, %v13234_v39  ;;  %v13237_v32 = vld [vmem:[#allocation222_spill] sm:$0xff] }
 0x183   : > { %8313 = vmatmul.mubr.msk.bf16.gmra.mrb[124].mxu1 %vm2352_vm2, %v4514_v55  ;;  %v5382_v55 = vrot.slane %v5375_v9, %v8707_v11  ;;  %v5627_v31 = vrot.slane %v5620_v33, %v8707_v11  ;;  %v13236_v9 = vld [vmem:[#allocation155_spill] sm:$0xff]  ;;  %v13238_v39 = vld [vmem:[#allocation226_spill] sm:$0xff] }
 0x184   : > { %8372 = vmatprep.mubr.msk.bf16.mxu1 %vm8647_vm3, %v12741_v10 }
 0x185   : > { %v5628_v33 = vcombine.low %v5627_v31, %v13238_v39 }
 0x186   : > { %8363 = vmatmul.mubr.msk.bf16.gmra.mrb[124].mxu0 %vm2352_vm2, %v5367_v43  ;;  %v5618_v43 = vrot.slane %v5611_v36, %v8707_v11 }
 0x187   : > { %8366 = vmatprep.mubr.msk.bf16.mxu0 %vm8647_vm3, %v12741_v10 }
 0x188   : > { %v5619_v36 = vcombine.low %v13237_v32, %v5618_v43  ;;  %v13243_v43 = vld [vmem:[#allocation225_spill] sm:$0xff]  ;;  %v7290_v32 = vsel %vm2392_vm0, %v231_v13, 0  ;;  %v13246_v13 = vld [vmem:[#allocation171_spill] sm:$0xff] }
 0x18b   : > { %8373 = vmatmul.mubr.msk.bf16.vlgmr.msra.gmra.mrb[128].mxu1 %vm2352_vm2, %v13235_v3  ;;  %v13240_v3 = vld [vmem:[#allocation90_spill] sm:$0xff] }
 0x18c   : > { %8479 = vmatpush3.bf16.msra.mxu1 %v6924_v40  ;;  %8376 = vmatprep.mubr.msk.bf16.mxu1 %vm8647_vm3, %v12741_v10  ;;  %v13239_v40 = vld [vmem:[#allocation129_spill] sm:$0xff] }
 0x18d   : > { %v11456_v54 = vpop.f32.mrb[24].mxu0  ;;  %v3211_v22 = vpop.f32.mrb[24].mxu1  ;;  %v7898_v42 = vcombine.high %v13240_v3, %v13239_v40  ;;  %v5635_v40 = vrot.slane %v5628_v33, %v8707_v11 }
 0x18e   : > { %8367 = vmatmul.mubr.msk.bf16.gmra.mrb[128].mxu0 %vm2352_vm2, %v5382_v55  ;;  %v3212_v20 = vadd.f32 %v3211_v22, %v13236_v9  ;;  %v8128_v4 = vpop.f32.mrb[25].mxu0  ;;  %v8158_v41 = vpop.f32.mrb[25].mxu1  ;;  %v13242_v9 = vld [vmem:[#allocation223_spill] sm:$0xff] }
 0x18f   : > { %8426 = vmatprep.mubr.msk.bf16.mxu0 %vm8647_vm3, %v12741_v10  ;;  %v11465_v26 = vpop.f32.mrb[26].mxu0  ;;  %v3214_v55 = vpop.f32.mrb[26].mxu1  ;;  %v6118_v4 = vcombine.low %v13230_v45, %v13242_v9  ;;  %v13244_v41 = vld [vmem:[#allocation224_spill] sm:$0xff]  ;;  %v5644_v3 = vrot.slane %v7898_v42, %v8707_v11  ;;  %v13247_v42 = vld [vmem:[#allocation175_spill] sm:$0xff] }
 0x190   : > { %v3215_v21 = vadd.f32 %v3214_v55, %v13241_v19  ;;  %v8129_v47 = vpop.f32.mrb[27].mxu0  ;;  %v8159_v22 = vpop.f32.mrb[27].mxu1  ;;  %v6119_v31 = vcombine.low %v13244_v41, %v13243_v43  ;;  %v5654_v33 = vcombine.low %v13247_v42, %v13246_v13  ;;  %v13248_v43 = vld [vmem:[#allocation227_spill] sm:$0xff] }
 0x191   : > { %v13245_v47 = vcombine.low %v11073_v53, %v11095_v50  ;;  %v6126_v19 = vrot.slane %v6118_v4, %v8707_v11  ;;  %v5636_v41 = vcombine.low %v13248_v43, %v5635_v40  ;;  %v13249_v4 = vld [vmem:[#allocation130_spill] sm:$0xff]  ;;  %v13253_v43 = vld [vmem:[#allocation95_spill] sm:$0xff] }
 0x192   : > { %v6133_v45 = vrot.slane %v6119_v31, %v8707_v11  ;;  %v6135_v44 = vcombine.low %v13238_v39, %v13249_v4 }
 0x193   : > { %8377 = vmatmul.mubr.msk.bf16.gmra.mrb[132].mxu1 %vm2352_vm2, %v5619_v36 }
 0x194   : > { %8380 = vmatprep.mubr.msk.bf16.mxu1 %vm8647_vm3, %v12741_v10  ;;  %v6134_v42 = vcombine.low %v6126_v19, %v6133_v45 }
 0x195   : > { %v3219_v36 = vpop.f32.mrb[28].mxu1 }
 0x196   : > { %8427 = vmatmul.mubr.msk.bf16.vlgmr.msra.gmra.mrb[132].mxu0 %vm2352_vm2, %v13245_v47  ;;  %v3220_v22 = vadd.f32 %v3219_v36, %v10875_v1  ;;  %v8162_v53 = vpop.f32.mrb[29].mxu1  ;;  %v5645_v47 = vcombine.low %v13249_v4, %v5644_v3  ;;  %v13251_v36 = vld [vmem:[#allocation126_spill] sm:$0xff]  ;;  %v5661_v3 = vrot.slane %v5654_v33, %v8707_v11  ;;  %v13255_v4 = vld [vmem:[#allocation172_spill] sm:$0xff] }
 0x197   : > { %8533 = vmatpush3.bf16.msra.mxu0 %v7290_v32  ;;  %v3992_v55 = vpop.f32.mrb[28].mxu0  ;;  %8430 = vmatprep.mubr.msk.bf16.mxu0 %vm8647_vm3, %v12741_v10  ;;  %v3222_v31 = vpop.f32.mrb[30].mxu1  ;;  %v13252_v53 = vld [vmem:[#allocation94_spill] sm:$0xff] }
 0x198   : > { %v11492_v9 = vadd.f32 %v3992_v55, %v3212_v20  ;;  %v8212_v50 = vpop.f32.mrb[29].mxu0  ;;  %v3223_v25 = vadd.f32 %v3222_v31, %v10883_v51  ;;  %v8163_v1 = vpop.f32.mrb[31].mxu1  ;;  %v13250_v20 = vld [vmem:[#allocation135_spill] sm:$0xff]  ;;  %v5652_v40 = vrot.slane %v5645_v47, %v8707_v11  ;;  %v6143_v51 = vrot.slane %v6135_v44, %v8707_v11 }
 0x199   : > { %v3995_v32 = vpop.f32.mrb[30].mxu0  ;;  %v6136_v55 = vcombine.low %v13251_v36, %v13250_v20  ;;  %v5662_v33 = vcombine.low %v13253_v43, %v5661_v3  ;;  %v13256_v44 = vld [vmem:[#allocation131_spill] sm:$0xff] }
 0x19a   : > { %v11499_v2 = vadd.f32 %v3995_v32, %v3215_v21  ;;  %v8213_v13 = vpop.f32.mrb[31].mxu0  ;;  %v5653_v50 = vcombine.low %v5652_v40, %v13252_v53 }
 0x19b   : > { %8381 = vmatmul.mubr.msk.bf16.gmra.mrb[136].mxu1 %vm2352_vm2, %v5636_v41  ;;  %v6150_v21 = vrot.slane %v6136_v55, %v8707_v11  ;;  %v13254_v41 = vld [vmem:[#allocation177_spill] sm:$0xff]  ;;  %v6152_v13 = vcombine.low %v13256_v44, %v13253_v43 }
 0x19c   : > { %8384 = vmatprep.mubr.msk.bf16.mxu1 %vm8647_vm3, %v12741_v10  ;;  %v7899_v47 = vcombine.high %v13255_v4, %v13254_v41  ;;  %v13257_v55 = vld [vmem:[#allocation169_spill] sm:$0xff]  ;;  %v5669_v41 = vrot.slane %v5662_v33, %v8707_v11 }
 0x19d   : > { %v3227_v39 = vpop.f32.mrb[32].mxu1  ;;  %v6151_v36 = vcombine.low %v6143_v51, %v6150_v21  ;;  %v13260_v21 = vld [vmem:[#allocation202_spill] sm:$0xff] }
 0x19e   : > { %8431 = vmatmul.mubr.msk.bf16.gmra.mrb[136].mxu0 %vm2352_vm2, %v6134_v42  ;;  %v3228_v19 = vadd.f32 %v3227_v39, %v10999_v16  ;;  %v8166_v45 = vpop.f32.mrb[33].mxu1  ;;  %v13258_v39 = vld [vmem:[#allocation137_spill] sm:$0xff]  ;;  %v5678_v43 = vrot.slane %v7899_v47, %v8707_v11 }
 0x19f   : > { %8434 = vmatprep.mubr.msk.bf16.mxu0 %vm8647_vm3, %v12741_v10  ;;  %v4000_v31 = vpop.f32.mrb[32].mxu0  ;;  %v3230_v32 = vpop.f32.mrb[34].mxu1  ;;  %v6153_v40 = vcombine.low %v13258_v39, %v13257_v55  ;;  %v13261_v47 = vld [vmem:[#allocation197_spill] sm:$0xff]  ;;  %v13265_v39 = vld [vmem:[#allocation198_spill] sm:$0xff] }
 0x1a0   : > { %v11520_v42 = vadd.f32 %v4000_v31, %v3220_v22  ;;  %v8216_v1 = vpop.f32.mrb[33].mxu0  ;;  %v3231_v20 = vadd.f32 %v3230_v32, %v11015_v0  ;;  %v8167_v16 = vpop.f32.mrb[35].mxu1  ;;  %v6160_v0 = vrot.slane %v6152_v13, %v8707_v11  ;;  %v5670_v31 = vcombine.low %v5669_v41, %v13261_v47  ;;  %v13262_v32 = vld [vmem:[#allocation200_spill] sm:$0xff] }
 0x1a1   : > { %v4003_v45 = vpop.f32.mrb[34].mxu0  ;;  %v6167_v22 = vrot.slane %v6153_v40, %v8707_v11  ;;  %v5679_v44 = vcombine.low %v5678_v43, %v13262_v32  ;;  %v13263_v1 = vld [vmem:[#allocation10_spill] sm:$0xff]  ;;  %v13266_v40 = vld [vmem:[#allocation228_spill] sm:$0xff] }
 0x1a2   : > { %v11525_v3 = vadd.f32 %v4003_v45, %v3223_v25  ;;  %v8217_v53 = vpop.f32.mrb[35].mxu0  ;;  %v13259_v25 = vld [vmem:[#allocation5_spill] sm:$0xff]  ;;  %v6169_v45 = vcombine.low %v13266_v40, %v13265_v39  ;;  %v13272_v39 = vld [vmem:[#allocation234_spill] sm:$0xff] }
 0x1a3   : > { %8385 = vmatmul.mubr.msk.bf16.gmra.mrb[140].mxu1 %vm2352_vm2, %v5653_v50  ;;  %v5688_v50 = vcombine.low %v13260_v21, %v13259_v25  ;;  %v6168_v21 = vcombine.low %v6160_v0, %v6167_v22  ;;  %v13268_v0 = vld [vmem:[#allocation41_spill] sm:$0xff]  ;;  %v13269_v22 = vld [vmem:[#allocation44_spill] sm:$0xff] }
 0x1a4   : > { %8388 = vmatprep.mubr.msk.bf16.mxu1 %vm8647_vm3, %v12741_v10 }
 0x1a5   : > { %v3235_v51 = vpop.f32.mrb[36].mxu1 }
 0x1a6   : > { %8435 = vmatmul.mubr.msk.bf16.gmra.mrb[140].mxu0 %vm2352_vm2, %v6151_v36  ;;  %v3236_v33 = vadd.f32 %v3235_v51, %v11175_v12  ;;  %v8170_v4 = vpop.f32.mrb[37].mxu1  ;;  %v13264_v36 = vld [vmem:[#allocation7_spill] sm:$0xff] }
 0x1a7   : > { %8438 = vmatprep.mubr.msk.bf16.mxu0 %vm8647_vm3, %v12741_v10  ;;  %v7900_v16 = vcombine.high %v13264_v36, %v13263_v1  ;;  %v4008_v13 = vpop.f32.mrb[36].mxu0  ;;  %v3238_v55 = vpop.f32.mrb[38].mxu1  ;;  %v13267_v51 = vld [vmem:[#allocation231_spill] sm:$0xff]  ;;  %v5686_v1 = vrot.slane %v5679_v44, %v8707_v11  ;;  %v5696_v36 = vrot.slane %v5688_v50, %v8707_v11  ;;  %v13270_v44 = vld [vmem:[#allocation176_spill] sm:$0xff] }
 0x1a8   : > { %v11546_v53 = vadd.f32 %v4008_v13, %v3228_v19  ;;  %v8220_v7 = vpop.f32.mrb[37].mxu0  ;;  %v3239_v25 = vadd.f32 %v3238_v55, %v11184_v28  ;;  %v8171_v12 = vpop.f32.mrb[39].mxu1  ;;  %v6170_v41 = vcombine.low %v13262_v32, %v13267_v51  ;;  %v6177_v28 = vrot.slane %v6169_v45, %v8707_v11  ;;  %v13271_v13 = vld [vmem:[#allocation199_spill] sm:$0xff]  ;;  %v13274_v51 = vld [vmem:[#allocation232_spill] sm:$0xff] }
 0x1a9   : > { %v4011_v4 = vpop.f32.mrb[38].mxu0  ;;  %v5703_v19 = vrot.slane %v7900_v16, %v8707_v11  ;;  %v5687_v16 = vcombine.low %v5686_v1, %v13270_v44  ;;  %v5704_v55 = vcombine.low %v5696_v36, %v13271_v13  ;;  %v13273_v12 = vld [vmem:[#allocation11_spill] sm:$0xff]  ;;  %v6061_v1 = vcombine.high %v11311_v35, %v11311_v35 }
 0x1aa   : > { %v11551_v43 = vadd.f32 %v4011_v4, %v3231_v20  ;;  %v8221_v47 = vpop.f32.mrb[39].mxu0  ;;  %v6184_v7 = vrot.slane %v6170_v41, %v8707_v11  ;;  %v6186_v41 = vcombine.low %v13274_v51, %v13273_v12 }
 0x1ab   : > { %8389 = vmatmul.mubr.msk.bf16.gmra.mrb[144].mxu1 %vm2352_vm2, %v5670_v31  ;;  %v5721_v31 = vcombine.low %v13269_v22, %v13268_v0  ;;  %v5705_v40 = vcombine.low %v13272_v39, %v5703_v19 }
 0x1ac   : > { %8392 = vmatprep.mubr.msk.bf16.mxu1 %vm8647_vm3, %v12741_v10  ;;  %v6185_v0 = vcombine.low %v6177_v28, %v6184_v7  ;;  %v6194_v28 = vrot.slane %v6186_v41, %v8707_v11 }
 0x1ad   : > { %v3243_v20 = vpop.f32.mrb[40].mxu1 }
 0x1ae   : > { %8439 = vmatmul.mubr.msk.bf16.gmra.mrb[144].mxu0 %vm2352_vm2, %v6168_v21  ;;  %v3244_v50 = vadd.f32 %v3243_v20, %v11285_v52  ;;  %v8174_v32 = vpop.f32.mrb[41].mxu1  ;;  %v6187_v52 = vcombine.low %v13271_v13, %v13272_v39  ;;  %v13275_v13 = vld [vmem:[#allocation39_spill] sm:$0xff] }
 0x1af   : > { %8442 = vmatprep.mubr.msk.bf16.mxu0 %vm8647_vm3, %v12741_v10  ;;  %v4016_v21 = vpop.f32.mrb[40].mxu0  ;;  %v3246_v45 = vpop.f32.mrb[42].mxu1  ;;  %v5719_v32 = vrot.slane %v5705_v40, %v8707_v11  ;;  %v13276_v39 = vld [vmem:[#allocation71_spill] sm:$0xff]  ;;  %v13277_v40 = vld [vmem:[#allocation68_spill] sm:$0xff] }
 0x1b0   : > { %v11572_v4 = vadd.f32 %v4016_v21, %v3236_v33  ;;  %v8224_v47 = vpop.f32.mrb[41].mxu0  ;;  %v3247_v24 = vadd.f32 %v3246_v45, %v11304_v29  ;;  %v8175_v22 = vpop.f32.mrb[43].mxu1  ;;  %v5712_v33 = vrot.slane %v5704_v55, %v8707_v11  ;;  %v5728_v29 = vrot.slane %v5721_v31, %v8707_v11 }
 0x1b1   : > { %v4019_v36 = vpop.f32.mrb[42].mxu0  ;;  %v6201_v35 = vrot.slane %v6187_v52, %v8707_v11  ;;  %v7901_v21 = vcombine.high %v13277_v40, %v13276_v39  ;;  %v6557_v45 = vshrl.u32 %v11321_v38, 16  ;;  %v13278_v47 = vld [vmem:[#allocation37_spill] sm:$0xff] }
 0x1b2   : > { %v11579_v19 = vadd.f32 %v4019_v36, %v3239_v25  ;;  %v8225_v20 = vpop.f32.mrb[43].mxu0  ;;  %v11591_v25 = vrot.slane %v6061_v1, %v8707_v11  ;;  %v5720_v31 = vcombine.low %v5712_v33, %v5719_v32  ;;  %v5729_v55 = vcombine.low %v13275_v13, %v5728_v29  ;;  %v13280_v33 = vld [vmem:[#allocation36_spill] sm:$0xff] }
 0x1b3   : > { %8393 = vmatmul.mubr.msk.bf16.gmra.mrb[148].mxu1 %vm2352_vm2, %v5687_v16  ;;  %v6202_v36 = vcombine.low %v6194_v28, %v6201_v35  ;;  %v6204_v32 = vcombine.low %v13280_v33, %v13275_v13  ;;  %v5745_v40 = vrot.slane %v7901_v21, %v8707_v11  ;;  %v13281_v13 = vld [vmem:[#allocation238_spill] sm:$0xff]  ;;  %v13282_v21 = vld [vmem:[#allocation239_spill] sm:$0xff] }
 0x1b4   : > { %8396 = vmatprep.mubr.msk.bf16.mxu1 %vm8647_vm3, %v12741_v10  ;;  %v6562_v12 = vshll.u32 %v11591_v25, 16  ;;  %v5736_v39 = vrot.slane %v5729_v55, %v8707_v11 }
 0x1b5   : > { %v3251_v7 = vpop.f32.mrb[44].mxu1 }
 0x1b6   : > { %8443 = vmatmul.mubr.msk.bf16.gmra.mrb[148].mxu0 %vm2352_vm2, %v6185_v0  ;;  %v3252_v44 = vadd.f32 %v3251_v7, %v11414_v37  ;;  %v8178_v16 = vpop.f32.mrb[45].mxu1  ;;  %v13279_v0 = vld [vmem:[#allocation235_spill] sm:$0xff]  ;;  %v5737_v55 = vcombine.low %v13281_v13, %v5736_v39  ;;  %v13287_v39 = vld [vmem:[#allocation237_spill] sm:$0xff] }
 0x1b7   : > { %8446 = vmatprep.mubr.msk.bf16.mxu0 %vm8647_vm3, %v12741_v10  ;;  %v4024_v51 = vpop.f32.mrb[44].mxu0  ;;  %v3254_v41 = vpop.f32.mrb[46].mxu1  ;;  %v6203_v22 = vcombine.low %v13279_v0, %v13278_v47  ;;  %v13284_v47 = vld [vmem:[#allocation114_spill] sm:$0xff] }
 0x1b8   : > { %v11603_v52 = vadd.f32 %v4024_v51, %v3244_v50  ;;  %v8228_v1 = vpop.f32.mrb[45].mxu0  ;;  %v3255_v37 = vadd.f32 %v3254_v41, %v11426_v57  ;;  %v8179_v20 = vpop.f32.mrb[47].mxu1  ;;  %v6564_v57 = vsel %vm8739_vm1, %v6557_v45, %v6562_v12  ;;  %v5746_v51 = vcombine.low %v5745_v40, %v13282_v21  ;;  %v13283_v41 = vld [vmem:[#allocation111_spill] sm:$0xff] }
 0x1b9   : > { %v4027_v29 = vpop.f32.mrb[46].mxu0  ;;  %v6211_v50 = vrot.slane %v6203_v22, %v8707_v11  ;;  %v5755_v45 = vcombine.low %v13284_v47, %v13283_v41  ;;  %v6817_v12 = vcombine.low %v11422_v46, %v6564_v57  ;;  %v13285_v1 = vld [vmem:[#allocation72_spill] sm:$0xff] }
 0x1ba   : > { %v11608_v7 = vadd.f32 %v4027_v29, %v3247_v24  ;;  %v8229_v16 = vpop.f32.mrb[47].mxu0  ;;  %v6218_v24 = vrot.slane %v6204_v32, %v8707_v11  ;;  %v5753_v46 = vrot.slane %v5746_v51, %v8707_v11  ;;  %v13292_v51 = vld [vmem:[#allocation112_spill] sm:$0xff] }
 0x1bb   : > { %8397 = vmatmul.mubr.msk.bf16.gmra.mrb[152].mxu1 %vm2352_vm2, %v5720_v31  ;;  %v5762_v57 = vrot.slane %v5755_v45, %v8707_v11  ;;  %v7902_v47 = vcombine.high %v13292_v51, %v13038_v63 }
 0x1bc   : > { %8400 = vmatprep.mubr.msk.bf16.mxu1 %vm8647_vm3, %v12741_v10  ;;  %v6219_v29 = vcombine.low %v6211_v50, %v6218_v24  ;;  %v11652_v24 = vrot.slane %v6817_v12, %v8707_v11 }
 0x1bd   : > { %v3259_v28 = vpop.f32.mrb[48].mxu1 }
 0x1be   : > { %8447 = vmatmul.mubr.msk.bf16.gmra.mrb[152].mxu0 %vm2352_vm2, %v6202_v36  ;;  %v3260_v35 = vadd.f32 %v3259_v28, %v11456_v54  ;;  %v8182_v31 = vpop.f32.mrb[49].mxu1  ;;  %v13286_v36 = vld [vmem:[#allocation6_spill] sm:$0xff]  ;;  %v13288_v28 = vld [vmem:[#allocation77_spill] sm:$0xff]  ;;  %13291 = vst [vmem:[#allocation103_spill] sm:$0xff] %v11652_v24 }
 0x1bf   : > { %8450 = vmatprep.mubr.msk.bf16.mxu0 %vm8647_vm3, %v12741_v10  ;;  %v3262_v22 = vpop.f32.mrb[50].mxu1  ;;  %v6220_v20 = vcombine.low %v13286_v36, %v13285_v1  ;;  %v6221_v40 = vcombine.low %v13288_v28, %v13287_v39  ;;  %v13294_v36 = vld [vmem:[#allocation76_spill] sm:$0xff]  ;;  %v13296_v28 = vld [vmem:[#allocation31_spill] sm:$0xff] }
 0x1c0   : > { %v4032_v0 = vpop.f32.mrb[48].mxu0  ;;  %v3263_v54 = vadd.f32 %v3262_v22, %v11465_v26  ;;  %v8183_v16 = vpop.f32.mrb[51].mxu1  ;;  %v13293_v22 = vld [vmem:[#allocation105_spill] sm:$0xff] }
 0x1c1   : > { %v11630_v33 = vadd.f32 %v4032_v0, %v3252_v44  ;;  %v8232_v32 = vpop.f32.mrb[49].mxu0  ;;  %v6228_v26 = vrot.slane %v6220_v20, %v8707_v11  ;;  %v6235_v44 = vrot.slane %v6221_v40, %v8707_v11  ;;  %v5754_v1 = vcombine.low %v13293_v22, %v5753_v46  ;;  %v13300_v22 = vld [vmem:[#allocation157_spill] sm:$0xff] }
 0x1c2   : > { %v4035_v31 = vpop.f32.mrb[50].mxu0  ;;  %v5763_v20 = vcombine.low %v5762_v57, %v13294_v36  ;;  %v13295_v32 = vld [vmem:[#allocation78_spill] sm:$0xff] }
 0x1c3   : > { %v11635_v13 = vadd.f32 %v4035_v31, %v3255_v37  ;;  %v8233_v41 = vpop.f32.mrb[51].mxu0  ;;  %8401 = vmatmul.mubr.msk.bf16.gmra.mrb[156].mxu1 %vm2352_vm2, %v5737_v55  ;;  %v13289_v37 = vcombine.low %v11146_v48, %v11150_v14  ;;  %v6236_v40 = vcombine.low %v6228_v26, %v6235_v44  ;;  %v13297_v31 = vld [vmem:[#allocation65_spill] sm:$0xff] }
 0x1c4   : > { %8404 = vmatprep.mubr.msk.bf16.mxu1 %vm8647_vm3, %v12741_v10  ;;  %v13298_v41 = vld [vmem:[#allocation108_spill] sm:$0xff]  ;;  %v5770_v51 = vrot.slane %v5763_v20, %v8707_v11  ;;  %v13301_v20 = vld [vmem:[#allocation146_spill] sm:$0xff] }
 0x1c5   : > { %v11649_v50 = vrot.slane %v13289_v37, %v8707_v11  ;;  %v6238_v46 = vcombine.low %v13298_v41, %v13297_v31  ;;  %v13304_v31 = vld [vmem:[#allocation151_spill] sm:$0xff] }
 0x1c6   : > { %8451 = vmatmul.mubr.msk.bf16.gmra.mrb[156].mxu0 %vm2352_vm2, %v6219_v29  ;;  %v3267_v55 = vpop.f32.mrb[52].mxu1  ;;  %v6237_v29 = vcombine.low %v13282_v21, %v13295_v32  ;;  %v5779_v21 = vrot.slane %v7902_v47, %v8707_v11 }
 0x1c7   : > { %13290 = vst [vmem:[#allocation138_spill] sm:$0xff] %v11649_v50  ;;  %8454 = vmatprep.mubr.msk.bf16.mxu0 %vm8647_vm3, %v12741_v10  ;;  %v3268_v45 = vadd.f32 %v3267_v55, %v10841_v18  ;;  %v8186_v0 = vpop.f32.mrb[53].mxu1  ;;  %v6252_v26 = vrot.slane %v6238_v46, %v8707_v11  ;;  %v6271_v46 = vcombine.low %v11007_v15, %v11026_v30  ;;  %v13310_v50 = vld [vmem:[#allocation64_spill] sm:$0xff] }
 0x1c8   : > { %v4040_v14 = vpop.f32.mrb[52].mxu0  ;;  %v3270_v12 = vpop.f32.mrb[54].mxu1 }
 0x1c9   : > { %v11665_v16 = vadd.f32 %v4040_v14, %v3260_v35  ;;  %v8236_v39 = vpop.f32.mrb[53].mxu0  ;;  %v3271_v63 = vadd.f32 %v3270_v12, %v13296_v28  ;;  %v8187_v18 = vpop.f32.mrb[55].mxu1  ;;  %v6245_v35 = vrot.slane %v6237_v29, %v8707_v11  ;;  %v5771_v14 = vcombine.low %v13301_v20, %v5770_v51  ;;  %v13302_v12 = vld [vmem:[#allocation150_spill] sm:$0xff]  ;;  %v13305_v51 = vld [vmem:[#allocation184_spill] sm:$0xff] }
 0x1ca   : > { %v4043_v37 = vpop.f32.mrb[54].mxu0  ;;  %v5780_v32 = vcombine.low %v13302_v12, %v5779_v21  ;;  %v7903_v29 = vcombine.high %v11007_v15, %v11026_v30  ;;  %v13303_v18 = vld [vmem:[#allocation152_spill] sm:$0xff] }
 0x1cb   : > { %v11670_v57 = vadd.f32 %v4043_v37, %v3263_v54  ;;  %v8237_v55 = vpop.f32.mrb[55].mxu0  ;;  %8405 = vmatmul.mubr.msk.bf16.gmra.mrb[160].mxu1 %vm2352_vm2, %v5754_v1  ;;  %v13299_v54 = vld [vmem:[#allocation187_spill] sm:$0xff]  ;;  %v6255_v41 = vcombine.low %v13304_v31, %v13303_v18  ;;  %v6253_v21 = vcombine.low %v6245_v35, %v6252_v26  ;;  %v6278_v35 = vrot.slane %v6271_v46, %v8707_v11 }
 0x1cc   : > { %8408 = vmatprep.mubr.msk.bf16.mxu1 %vm8647_vm3, %v12741_v10  ;;  %v5789_v0 = vcombine.low %v13299_v54, %v11026_v30  ;;  %v5805_v15 = vrot.slane %v7903_v29, %v8707_v11 }
 0x1ce   : > { %8455 = vmatmul.mubr.msk.bf16.gmra.mrb[160].mxu0 %vm2352_vm2, %v6236_v40  ;;  %v3275_v44 = vpop.f32.mrb[56].mxu1  ;;  %v6254_v40 = vcombine.low %v13294_v36, %v13302_v12  ;;  %v5787_v36 = vrot.slane %v5780_v32, %v8707_v11  ;;  %v5798_v12 = vrot.slane %v5789_v0, %v8707_v11  ;;  %v5814_v31 = vcombine.low %v5805_v15, %v11340_v60 }
 0x1cf   : > { %8458 = vmatprep.mubr.msk.bf16.mxu0 %vm8647_vm3, %v12741_v10  ;;  %v3276_v1 = vadd.f32 %v3275_v44, %v13300_v22  ;;  %v8190_v47 = vpop.f32.mrb[57].mxu1 }
 0x1d0   : > { %v4048_v39 = vpop.f32.mrb[56].mxu0  ;;  %v3278_v28 = vpop.f32.mrb[58].mxu1  ;;  %v11699_v47 = vld.sshfl [vmem:[%s8704_s21 + $0x7c] sm:$0x33 pattern:$0x75316420]  ;;  %v6262_v30 = vrot.slane %v6254_v40, %v8707_v11 }
 0x1d1   : > { %v11695_v37 = vadd.f32 %v4048_v39, %v3268_v45  ;;  %v8240_v55 = vpop.f32.mrb[57].mxu0  ;;  %v3279_v44 = vadd.f32 %v3278_v28, %v13305_v51  ;;  %v8191_v54 = vpop.f32.mrb[59].mxu1  ;;  %v6269_v45 = vrot.slane %v6255_v41, %v8707_v11  ;;  %v11723_v26 = vrot.slane %v11699_v47, %v8707_v11  ;;  %v13307_v39 = vld [vmem:[#allocation27_spill] sm:$0xff]  ;;  %v13308_v40 = vld [vmem:[#allocation32_spill] sm:$0xff]  ;;  %v13309_v51 = vld [vmem:[#allocation154_spill] sm:$0xff] }
 0x1d2   : > { %v4051_v22 = vpop.f32.mrb[58].mxu0  ;;  %v5788_v28 = vcombine.low %v5787_v36, %v13307_v39  ;;  %v5813_v18 = vcombine.low %v13308_v40, %v5798_v12  ;;  %v6280_v54 = vcombine.low %v6278_v35, %v5805_v15 }
 0x1d3   : > { %v11701_v20 = vadd.f32 %v4051_v22, %v3271_v63  ;;  %v8241_v48 = vpop.f32.mrb[59].mxu0  ;;  %8409 = vmatmul.mubr.msk.bf16.gmra.mrb[164].mxu1 %vm2352_vm2, %v5771_v14  ;;  %v11719_v63 = vcombine.high %v11591_v25, %v11591_v25  ;;  %v13306_v14 = vld [vmem:[#allocation62_spill] sm:$0xff]  ;;  %v6270_v55 = vcombine.low %v6262_v30, %v6269_v45 }
 0x1d4   : > { %8412 = vmatprep.mubr.msk.bf16.mxu1 %vm8647_vm3, %v12741_v10  ;;  %v11715_v48 = vcombine.high %v11321_v38, %v11321_v38  ;;  %v5821_v15 = vrot.slane %v5813_v18, %v8707_v11 }
 0x1d5   : > { %v6298_v12 = vcombine.low %v11719_v63, %v11723_v26 }
 0x1d6   : > { %8459 = vmatmul.mubr.msk.bf16.gmra.mrb[164].mxu0 %vm2352_vm2, %v6253_v21  ;;  %v3283_v0 = vpop.f32.mrb[60].mxu1  ;;  %v6279_v21 = vcombine.low %v13309_v51, %v13308_v40  ;;  %v6297_v36 = vcombine.low %v11591_v25, %v11715_v48 }
 0x1d7   : > { %8462 = vmatprep.mubr.msk.bf16.mxu0 %vm8647_vm3, %v12741_v10  ;;  %v3284_v32 = vadd.f32 %v3283_v0, %v13306_v14  ;;  %v8194_v29 = vpop.f32.mrb[61].mxu1 }
 0x1d8   : > { %v3286_v46 = vpop.f32.mrb[62].mxu1  ;;  %v6312_v45 = vrot.slane %v6297_v36, %v8707_v11 }
 0x1d9   : > { %v4056_v41 = vpop.f32.mrb[60].mxu0  ;;  %v3287_v38 = vadd.f32 %v3286_v46, %v13310_v50  ;;  %v8195_v0 = vpop.f32.mrb[63].mxu1  ;;  %v6287_v50 = vrot.slane %v6279_v21, %v8707_v11 }
 0x1da   : > { %v11733_v22 = vadd.f32 %v4056_v41, %v3276_v1  ;;  %v8244_v24 = vpop.f32.mrb[61].mxu0  ;;  %v5828_v1 = vrot.slane %v5814_v31, %v8707_v11  ;;  %v6085_v41 = vcombine.high %v11699_v47, %v11699_v47 }
 0x1db   : > { %v4059_v14 = vpop.f32.mrb[62].mxu0  ;;  %8413 = vmatmul.mubr.msk.bf16.gmra.mrb[168].mxu1 %vm2352_vm2, %v5788_v28  ;;  %v6294_v24 = vrot.slane %v6280_v54, %v8707_v11 }
 0x1dc   : > { %v11740_v29 = vadd.f32 %v4059_v14, %v3279_v44  ;;  %v8245_v30 = vpop.f32.mrb[63].mxu0  ;;  %8416 = vmatprep.mubr.msk.bf16.mxu1 %vm8647_vm3, %v12741_v10  ;;  %v6319_v44 = vrot.slane %v6298_v12, %v8707_v11  ;;  %v5829_v40 = vcombine.low %v5821_v15, %v5828_v1  ;;  %v11780_v15 = vcombine.high %v11723_v26, %v11723_v26 }
 0x1dd   : > { %v6295_v21 = vcombine.low %v6287_v50, %v6294_v24 }
 0x1de   : > { %8463 = vmatmul.mubr.msk.bf16.gmra.mrb[168].mxu0 %vm2352_vm2, %v6270_v55  ;;  %v3291_v35 = vpop.f32.mrb[64].mxu1  ;;  %v6321_v0 = vcombine.low %v6312_v45, %v6319_v44 }
 0x1df   : > { %8466 = vmatprep.mubr.msk.bf16.mxu0 %vm8647_vm3, %v12741_v10  ;;  %v3292_v39 = vadd.f32 %v3291_v35, %v11222_v61  ;;  %v8198_v28 = vpop.f32.mrb[65].mxu1  ;;  %v13311_v61 = vcombine.high %v11089_v59, %v11078_v5 }
 0x1e0   : > { %v3294_v31 = vpop.f32.mrb[66].mxu1 }
 0x1e1   : > { %v4064_v18 = vpop.f32.mrb[64].mxu0  ;;  %v3295_v51 = vadd.f32 %v3294_v31, %v11237_v62  ;;  %v8199_v54 = vpop.f32.mrb[67].mxu1  ;;  %v5837_v30 = vrot.slane %v13311_v61, %v8707_v11  ;;  %v13312_v62 = vcombine.low %v11340_v60, %v11343_v56 }
 0x1e2   : > { %v11757_v46 = vadd.f32 %v4064_v18, %v3284_v32  ;;  %v8248_v55 = vpop.f32.mrb[65].mxu0  ;;  %v11776_v32 = vrot.slane %v6085_v41, %v8707_v11 }
 0x1e3   : > { %v4067_v36 = vpop.f32.mrb[66].mxu0  ;;  %8417 = vmatmul.mubr.msk.bf16.gmra.mrb[172].mxu1 %vm2352_vm2, %v5829_v40  ;;  %v6328_v47 = vrot.slane %v13312_v62, %v8707_v11  ;;  %v5844_v50 = vrot.slane %v5837_v30, %v8707_v11 }
 0x1e4   : > { %v11760_v12 = vadd.f32 %v4067_v36, %v3287_v38  ;;  %v8249_v14 = vpop.f32.mrb[67].mxu0  ;;  %8420 = vmatprep.mubr.msk.bf16.mxu1 %vm8647_vm3, %v12741_v10  ;;  %v6335_v38 = vrot.slane %v6321_v0, %v8707_v11  ;;  %v6337_v40 = vcombine.low %v11776_v32, %v11780_v15  ;;  %v13315_v0 = vld [vmem:[#allocation107_spill] sm:$0xff]  ;;  %v13316_v36 = vld [vmem:[#allocation106_spill] sm:$0xff] }
 0x1e5   : > { %v6631_v14 = vcombine.low %v13316_v36, %v13315_v0  ;;  %v13322_v36 = vld [vmem:[#allocation136_spill] sm:$0xff] }
 0x1e6   : > { %8467 = vmatmul.mubr.msk.bf16.gmra.mrb[172].mxu0 %vm2352_vm2, %v6295_v21  ;;  %v3299_v5 = vpop.f32.mrb[68].mxu1  ;;  %v6336_v35 = vcombine.low %v6328_v47, %v6335_v38  ;;  %v13313_v21 = vld [vmem:[#allocation104_spill] sm:$0xff] }
 0x1e7   : > { %8470 = vmatprep.mubr.msk.bf16.mxu0 %vm8647_vm3, %v12741_v10  ;;  %v3300_v59 = vadd.f32 %v3299_v5, %v11369_v49  ;;  %v8202_v1 = vpop.f32.mrb[69].mxu1  ;;  %v6344_v49 = vrot.slane %v6337_v40, %v8707_v11 }
 0x1e8   : > { %v3302_v56 = vpop.f32.mrb[70].mxu1 }
 0x1e9   : > { %v4072_v60 = vpop.f32.mrb[68].mxu0  ;;  %v3303_v44 = vadd.f32 %v3302_v56, %v11380_v58  ;;  %v8203_v28 = vpop.f32.mrb[71].mxu1  ;;  %v6351_v38 = vrot.slane %v6344_v49, %v8707_v11 }
 0x1ea   : > { %v11786_v24 = vadd.f32 %v4072_v60, %v3292_v39  ;;  %v8252_v45 = vpop.f32.mrb[69].mxu0 }
 0x1eb   : > { %v4075_v18 = vpop.f32.mrb[70].mxu0  ;;  %8421 = vmatmul.mubr.msk.bf16.gmra.mrb[176].mxu1 %vm2352_vm2, %v5844_v50  ;;  %v6645_v45 = vrot.slane %v6631_v14, %v8707_v11  ;;  %v13323_v14 = vld [vmem:[#allocation132_spill] sm:$0xff] }
 0x1ec   : > { %v11791_v31 = vadd.f32 %v4075_v18, %v3295_v51  ;;  %v8253_v41 = vpop.f32.mrb[71].mxu0  ;;  %8480 = vmatprep.mubr.msk.bf16.mxu1 %vm8647_vm3, %v12741_v10  ;;  %v13314_v51 = vld [vmem:[#allocation74_spill] sm:$0xff]  ;;  %v13320_v18 = vld [vmem:[#allocation149_spill] sm:$0xff] }
 0x1ed   : > { %v6630_v54 = vcombine.low %v13314_v51, %v13313_v21  ;;  %v13321_v41 = vld [vmem:[#allocation148_spill] sm:$0xff] }
 0x1ee   : > { %8471 = vmatmul.mubr.msk.bf16.gmra.mrb[176].mxu0 %vm2352_vm2, %v6336_v35  ;;  %v3307_v39 = vpop.f32.mrb[72].mxu1  ;;  %v6648_v49 = vcombine.low %v13321_v41, %v13320_v18 }
 0x1ef   : > { %8474 = vmatprep.mubr.msk.bf16.mxu0 %vm8647_vm3, %v12741_v10  ;;  %v3308_v58 = vadd.f32 %v3307_v39, %v11416_v27  ;;  %v8206_v55 = vpop.f32.mrb[73].mxu1  ;;  %v13317_v27 = vcombine.low %v11282_v8, %v11349_v34  ;;  %v6638_v56 = vrot.slane %v6630_v54, %v8707_v11  ;;  %v13318_v34 = vld [vmem:[#allocation147_spill] sm:$0xff]  ;;  %v13319_v8 = vld [vmem:[#allocation113_spill] sm:$0xff] }
 0x1f0   : > { %v3310_v30 = vpop.f32.mrb[74].mxu1  ;;  %v6647_v40 = vcombine.low %v13319_v8, %v13318_v34  ;;  %v13329_v34 = vld [vmem:[#allocation190_spill] sm:$0xff]  ;;  %v13330_v8 = vld [vmem:[#allocation189_spill] sm:$0xff] }
 0x1f1   : > { %v4080_v61 = vpop.f32.mrb[72].mxu0  ;;  %v8207_v5 = vpop.f32.mrb[75].mxu1  ;;  %v6646_v28 = vcombine.low %v6638_v56, %v6645_v45 }
 0x1f2   : > { %v11805_v62 = vadd.f32 %v4080_v61, %v3300_v59  ;;  %v8256_v47 = vpop.f32.mrb[73].mxu0  ;;  %v7096_v61 = vcombine.low %v13323_v14, %v13322_v36  ;;  %v13325_v5 = vld [vmem:[#allocation26_spill] sm:$0xff]  ;;  %v13332_v14 = vld [vmem:[#allocation229_spill] sm:$0xff] }
 0x1f3   : > { %v4083_v1 = vpop.f32.mrb[74].mxu0  ;;  %8481 = vmatmul.mubr.msk.bf16.vlgmr.msra.gmra.mrb[180].mxu1 %vm2352_vm2, %v13317_v27  ;;  %v6655_v47 = vrot.slane %v6647_v40, %v8707_v11  ;;  %v6665_v40 = vcombine.low %v13330_v8, %v13329_v34 }
 0x1f4   : > { %v11808_v50 = vadd.f32 %v4083_v1, %v3303_v44  ;;  %v8257_v60 = vpop.f32.mrb[75].mxu0  ;;  %8484 = vmatprep.mubr.msk.bf16.mxu1 %vm8647_vm3, %v12741_v10 }
 0x1f6   : > { %8475 = vmatmul.mubr.msk.bf16.gmra.mrb[180].mxu0 %vm2352_vm2, %v6351_v38  ;;  %v4595_v59 = vpop.f32.mrb[76].mxu1  ;;  %v6662_v38 = vrot.slane %v6648_v49, %v8707_v11 }
 0x1f7   : > { %8534 = vmatprep.mubr.msk.bf16.mxu0 %vm8647_vm3, %v12741_v10  ;;  %v4697_v44 = vadd.f32 %v4595_v59, %v11492_v9  ;;  %v8266_v35 = vpop.f32.mrb[77].mxu1  ;;  %v13327_v59 = vld [vmem:[#allocation188_spill] sm:$0xff] }
 0x1f8   : > { %v4598_v55 = vpop.f32.mrb[78].mxu1  ;;  %v6663_v45 = vcombine.low %v6655_v47, %v6662_v38  ;;  %v13328_v35 = vld [vmem:[#allocation153_spill] sm:$0xff] }
 0x1f9   : > { %v4088_v39 = vpop.f32.mrb[76].mxu0  ;;  %v4698_v54 = vadd.f32 %v4598_v55, %v11499_v2  ;;  %v8267_v0 = vpop.f32.mrb[79].mxu1  ;;  %v7103_v2 = vrot.slane %v7096_v61, %v8707_v11 }
 0x1fa   : > { %v11826_v21 = vadd.f32 %v4088_v39, %v3308_v58  ;;  %v8260_v51 = vpop.f32.mrb[77].mxu0  ;;  %v13324_v58 = vld [vmem:[#allocation3_spill] sm:$0xff] }
 0x1fb   : > { %v4091_v9 = vpop.f32.mrb[78].mxu0  ;;  %8485 = vmatmul.mubr.msk.bf16.gmra.mrb[184].mxu1 %vm2352_vm2, %v6646_v28  ;;  %v13326_v1 = vcombine.low %v13324_v58, %v13325_v5  ;;  %v6664_v28 = vcombine.low %v13328_v35, %v13327_v59  ;;  %v13331_v51 = vld [vmem:[#allocation58_spill] sm:$0xff]  ;;  %v13337_v59 = vld [vmem:[#allocation212_spill] sm:$0xff] }
 0x1fc   : > { %v8261_v30 = vpop.f32.mrb[79].mxu0  ;;  %8488 = vmatprep.mubr.msk.bf16.mxu1 %vm8647_vm3, %v12741_v10  ;;  %v7104_v0 = vcombine.low %v13331_v51, %v7103_v2  ;;  %v13334_v2 = vld [vmem:[#allocation211_spill] sm:$0xff] }
 0x1fd   : > { %v6672_v38 = vrot.slane %v6664_v28, %v8707_v11 }
 0x1fe   : > { %8535 = vmatmul.mubr.msk.bf16.vlgmr.msra.gmra.mrb[184].mxu0 %vm2352_vm2, %v13326_v1  ;;  %v4603_v60 = vpop.f32.mrb[80].mxu1 }
 0x1ff   : > { %8538 = vmatprep.mubr.msk.bf16.mxu0 %vm8647_vm3, %v12741_v10  ;;  %v4699_v27 = vadd.f32 %v4603_v60, %v11520_v42  ;;  %v8270_v56 = vpop.f32.mrb[81].mxu1  ;;  %v13333_v42 = vld [vmem:[#allocation134_spill] sm:$0xff]  ;;  %v13335_v60 = vld [vmem:[#allocation191_spill] sm:$0xff] }
 0x200   : > { %v4606_v41 = vpop.f32.mrb[82].mxu1  ;;  %v7105_v61 = vcombine.low %v13333_v42, %v13332_v14  ;;  %v6681_v56 = vcombine.low %v13335_v60, %v13334_v2  ;;  %v13344_v2 = vld [vmem:[#allocation23_spill] sm:$0xff] }
 0x201   : > { %v5459_v18 = vpop.f32.mrb[80].mxu0  ;;  %v4700_v55 = vadd.f32 %v4606_v41, %v11525_v3  ;;  %v8271_v36 = vpop.f32.mrb[83].mxu1  ;;  %v13338_v41 = vld [vmem:[#allocation33_spill] sm:$0xff] }
 0x202   : > { %v11848_v49 = vadd.f32 %v5459_v18, %v4697_v44  ;;  %v8320_v39 = vpop.f32.mrb[81].mxu0  ;;  %v6679_v44 = vrot.slane %v6665_v40, %v8707_v11  ;;  %v7112_v3 = vrot.slane %v7105_v61, %v8707_v11 }
 0x203   : > { %v5462_v9 = vpop.f32.mrb[82].mxu0  ;;  %8489 = vmatmul.mubr.msk.bf16.gmra.mrb[188].mxu1 %vm2352_vm2, %v6663_v45  ;;  %v13336_v45 = vld [vmem:[#allocation213_spill] sm:$0xff] }
 0x204   : > { %v11854_v30 = vadd.f32 %v5462_v9, %v4698_v54  ;;  %v8321_v47 = vpop.f32.mrb[83].mxu0  ;;  %8492 = vmatprep.mubr.msk.bf16.mxu1 %vm8647_vm3, %v12741_v10  ;;  %v6680_v1 = vcombine.low %v6672_v38, %v6679_v44  ;;  %v6682_v35 = vcombine.low %v13337_v59, %v13336_v45  ;;  %v7113_v39 = vcombine.low %v13338_v41, %v7112_v3  ;;  %v13341_v3 = vld [vmem:[#allocation22_spill] sm:$0xff] }
 0x205   : > { %v6689_v9 = vrot.slane %v6681_v56, %v8707_v11 }
 0x206   : > { %8539 = vmatmul.mubr.msk.bf16.gmra.mrb[188].mxu0 %vm2352_vm2, %v7104_v0  ;;  %v4611_v58 = vpop.f32.mrb[84].mxu1  ;;  %v13339_v0 = vld [vmem:[#allocation174_spill] sm:$0xff] }
 0x207   : > { %8542 = vmatprep.mubr.msk.bf16.mxu0 %vm8647_vm3, %v12741_v10  ;;  %v4701_v54 = vadd.f32 %v4611_v58, %v11546_v53  ;;  %v8274_v5 = vpop.f32.mrb[85].mxu1  ;;  %v13340_v53 = vld [vmem:[#allocation230_spill] sm:$0xff] }
 0x208   : > { %v4614_v34 = vpop.f32.mrb[86].mxu1  ;;  %v7114_v36 = vcombine.low %v13340_v53, %v13339_v0  ;;  %v13342_v58 = vld [vmem:[#allocation214_spill] sm:$0xff] }
 0x209   : > { %v5467_v28 = vpop.f32.mrb[84].mxu0  ;;  %v4702_v18 = vadd.f32 %v4614_v34, %v11551_v43  ;;  %v8275_v51 = vpop.f32.mrb[87].mxu1  ;;  %v6698_v5 = vcombine.low %v13342_v58, %v13341_v3  ;;  %v13345_v34 = vld [vmem:[#allocation60_spill] sm:$0xff]  ;;  %v13351_v3 = vld [vmem:[#allocation54_spill] sm:$0xff] }
 0x20a   : > { %v11870_v8 = vadd.f32 %v5467_v28, %v4699_v27  ;;  %v8324_v40 = vpop.f32.mrb[85].mxu0  ;;  %v6696_v27 = vrot.slane %v6682_v35, %v8707_v11  ;;  %v7121_v43 = vrot.slane %v7114_v36, %v8707_v11 }
 0x20b   : > { %v5470_v14 = vpop.f32.mrb[86].mxu0  ;;  %8493 = vmatmul.mubr.msk.bf16.gmra.mrb[192].mxu1 %vm2352_vm2, %v6680_v1  ;;  %v13343_v1 = vld [vmem:[#allocation24_spill] sm:$0xff] }
 0x20c   : > { %v11876_v42 = vadd.f32 %v5470_v14, %v4700_v55  ;;  %v8325_v61 = vpop.f32.mrb[87].mxu0  ;;  %8496 = vmatprep.mubr.msk.bf16.mxu1 %vm8647_vm3, %v12741_v10  ;;  %v6697_v44 = vcombine.low %v6689_v9, %v6696_v27  ;;  %v6699_v60 = vcombine.low %v13344_v2, %v13343_v1  ;;  %v7122_v40 = vcombine.low %v7121_v43, %v13345_v34  ;;  %v13348_v43 = vld [vmem:[#allocation52_spill] sm:$0xff] }
 0x20d   : > { %v6706_v14 = vrot.slane %v6698_v5, %v8707_v11 }
 0x20e   : > { %8543 = vmatmul.mubr.msk.bf16.gmra.mrb[192].mxu0 %vm2352_vm2, %v7113_v39  ;;  %v4619_v47 = vpop.f32.mrb[88].mxu1  ;;  %v13346_v39 = vld [vmem:[#allocation236_spill] sm:$0xff] }
 0x20f   : > { %8546 = vmatprep.mubr.msk.bf16.mxu0 %vm8647_vm3, %v12741_v10  ;;  %v4703_v55 = vadd.f32 %v4619_v47, %v11572_v4  ;;  %v8278_v38 = vpop.f32.mrb[89].mxu1  ;;  %v13347_v4 = vld [vmem:[#allocation233_spill] sm:$0xff] }
 0x210   : > { %v4622_v45 = vpop.f32.mrb[90].mxu1  ;;  %v7123_v51 = vcombine.low %v13347_v4, %v13346_v39  ;;  %v13349_v47 = vld [vmem:[#allocation25_spill] sm:$0xff] }
 0x211   : > { %v5475_v56 = vpop.f32.mrb[88].mxu0  ;;  %v4704_v28 = vadd.f32 %v4622_v45, %v11579_v19  ;;  %v8279_v41 = vpop.f32.mrb[91].mxu1  ;;  %v6715_v38 = vcombine.low %v13349_v47, %v13348_v43  ;;  %v13352_v45 = vld [vmem:[#allocation61_spill] sm:$0xff]  ;;  %v13358_v43 = vld [vmem:[#allocation88_spill] sm:$0xff] }
 0x212   : > { %v11892_v59 = vadd.f32 %v5475_v56, %v4701_v54  ;;  %v8328_v35 = vpop.f32.mrb[89].mxu0  ;;  %v6713_v54 = vrot.slane %v6699_v60, %v8707_v11  ;;  %v7130_v19 = vrot.slane %v7123_v51, %v8707_v11 }
 0x213   : > { %v5478_v0 = vpop.f32.mrb[90].mxu0  ;;  %8497 = vmatmul.mubr.msk.bf16.gmra.mrb[196].mxu1 %vm2352_vm2, %v6697_v44  ;;  %v13350_v44 = vld [vmem:[#allocation55_spill] sm:$0xff] }
 0x214   : > { %v11898_v53 = vadd.f32 %v5478_v0, %v4702_v18  ;;  %v8329_v36 = vpop.f32.mrb[91].mxu0  ;;  %8500 = vmatprep.mubr.msk.bf16.mxu1 %vm8647_vm3, %v12741_v10  ;;  %v6714_v27 = vcombine.low %v6706_v14, %v6713_v54  ;;  %v6716_v58 = vcombine.low %v13351_v3, %v13350_v44  ;;  %v7131_v35 = vcombine.low %v7130_v19, %v13352_v45  ;;  %v13355_v19 = vld [vmem:[#allocation87_spill] sm:$0xff]  ;;  %v13359_v3 = vld [vmem:[#allocation42_spill] sm:$0xff] }
 0x215   : > { %v6723_v0 = vrot.slane %v6715_v38, %v8707_v11 }
 0x216   : > { %8547 = vmatmul.mubr.msk.bf16.gmra.mrb[196].mxu0 %vm2352_vm2, %v7122_v40  ;;  %v4627_v61 = vpop.f32.mrb[92].mxu1  ;;  %v13353_v40 = vld [vmem:[#allocation9_spill] sm:$0xff] }
 0x217   : > { %8550 = vmatprep.mubr.msk.bf16.mxu0 %vm8647_vm3, %v12741_v10  ;;  %v4705_v18 = vadd.f32 %v4627_v61, %v11603_v52  ;;  %v8282_v9 = vpop.f32.mrb[93].mxu1  ;;  %v13354_v52 = vld [vmem:[#allocation34_spill] sm:$0xff]  ;;  %v13356_v61 = vld [vmem:[#allocation57_spill] sm:$0xff] }
 0x218   : > { %v4630_v1 = vpop.f32.mrb[94].mxu1  ;;  %v7132_v41 = vcombine.low %v13354_v52, %v13353_v40  ;;  %v6732_v9 = vcombine.low %v13356_v61, %v13355_v19  ;;  %v13363_v40 = vld [vmem:[#allocation63_spill] sm:$0xff]  ;;  %v13366_v19 = vld [vmem:[#allocation128_spill] sm:$0xff] }
 0x219   : > { %v5483_v5 = vpop.f32.mrb[92].mxu0  ;;  %v4706_v56 = vadd.f32 %v4630_v1, %v11608_v7  ;;  %v8283_v34 = vpop.f32.mrb[95].mxu1  ;;  %v13361_v1 = vld [vmem:[#allocation241_spill] sm:$0xff]  ;;  %v13367_v61 = vld [vmem:[#allocation127_spill] sm:$0xff] }
 0x21a   : > { %v11914_v2 = vadd.f32 %v5483_v5, %v4703_v55  ;;  %v8332_v60 = vpop.f32.mrb[93].mxu0  ;;  %v6730_v55 = vrot.slane %v6716_v58, %v8707_v11  ;;  %v7139_v7 = vrot.slane %v7132_v41, %v8707_v11  ;;  %v13360_v58 = vld [vmem:[#allocation13_spill] sm:$0xff] }
 0x21b   : > { %v5486_v39 = vpop.f32.mrb[94].mxu0  ;;  %8501 = vmatmul.mubr.msk.bf16.gmra.mrb[200].mxu1 %vm2352_vm2, %v6714_v27  ;;  %v13357_v27 = vld [vmem:[#allocation89_spill] sm:$0xff]  ;;  %v7141_v5 = vcombine.low %v13360_v58, %v13359_v3  ;;  %v13362_v60 = vld [vmem:[#allocation240_spill] sm:$0xff]  ;;  %v13368_v58 = vld [vmem:[#allocation243_spill] sm:$0xff] }
 0x21c   : > { %v11920_v4 = vadd.f32 %v5486_v39, %v4704_v28  ;;  %v8333_v51 = vpop.f32.mrb[95].mxu0  ;;  %8504 = vmatprep.mubr.msk.bf16.mxu1 %vm8647_vm3, %v12741_v10  ;;  %v6731_v54 = vcombine.low %v6723_v0, %v6730_v55  ;;  %v6733_v47 = vcombine.low %v13358_v43, %v13357_v27  ;;  %v7142_v45 = vcombine.low %v13362_v60, %v13361_v1 }
 0x21d   : > { %v7140_v52 = vcombine.low %v7139_v7, %v13363_v40  ;;  %v6740_v55 = vrot.slane %v6732_v9, %v8707_v11  ;;  %v13364_v7 = vld [vmem:[#allocation125_spill] sm:$0xff]  ;;  %v6750_v27 = vcombine.low %v13367_v61, %v13366_v19  ;;  %v13375_v19 = vld [vmem:[#allocation100_spill] sm:$0xff] }
 0x21e   : > { %8551 = vmatmul.mubr.msk.bf16.gmra.mrb[200].mxu0 %vm2352_vm2, %v7131_v35  ;;  %v4635_v36 = vpop.f32.mrb[96].mxu1 }
 0x21f   : > { %8554 = vmatprep.mubr.msk.bf16.mxu0 %vm8647_vm3, %v12741_v10  ;;  %v4707_v28 = vadd.f32 %v4635_v36, %v11630_v33  ;;  %v8286_v14 = vpop.f32.mrb[97].mxu1  ;;  %v6747_v36 = vrot.slane %v6733_v47, %v8707_v11 }
 0x220   : > { %v4638_v44 = vpop.f32.mrb[98].mxu1  ;;  %v13365_v14 = vld [vmem:[#allocation91_spill] sm:$0xff] }
 0x221   : > { %v5491_v38 = vpop.f32.mrb[96].mxu0  ;;  %v4708_v33 = vadd.f32 %v4638_v44, %v11635_v13  ;;  %v8287_v41 = vpop.f32.mrb[99].mxu1  ;;  %v7156_v13 = vrot.slane %v7142_v45, %v8707_v11  ;;  %v6748_v47 = vcombine.low %v6740_v55, %v6747_v36 }
 0x222   : > { %v11940_v35 = vadd.f32 %v5491_v38, %v4705_v18  ;;  %v8336_v34 = vpop.f32.mrb[97].mxu0  ;;  %v7149_v18 = vrot.slane %v7141_v5, %v8707_v11  ;;  %v7158_v5 = vcombine.low %v13192_v6, %v13368_v58 }
 0x223   : > { %v5494_v39 = vpop.f32.mrb[98].mxu0  ;;  %8505 = vmatmul.mubr.msk.bf16.gmra.mrb[204].mxu1 %vm2352_vm2, %v6731_v54 }
 0x224   : > { %v11944_v51 = vadd.f32 %v5494_v39, %v4706_v56  ;;  %v8337_v0 = vpop.f32.mrb[99].mxu0  ;;  %8508 = vmatprep.mubr.msk.bf16.mxu1 %vm8647_vm3, %v12741_v10  ;;  %v6749_v56 = vcombine.low %v13365_v14, %v13364_v7  ;;  %v7157_v3 = vcombine.low %v7149_v18, %v7156_v13  ;;  %v13372_v18 = vld [vmem:[#allocation168_spill] sm:$0xff]  ;;  %v13373_v7 = vld [vmem:[#allocation59_spill] sm:$0xff] }
 0x225   : > { %v13370_v0 = vld [vmem:[#allocation133_spill] sm:$0xff]  ;;  %v6783_v14 = vcombine.low %v13373_v7, %v11355_v17  ;;  %v6586_v17 = vshll.u32 %v11723_v26, 16 }
 0x226   : > { %8555 = vmatmul.mubr.msk.bf16.gmra.mrb[204].mxu0 %vm2352_vm2, %v7140_v52  ;;  %v4643_v54 = vpop.f32.mrb[100].mxu1  ;;  %v6757_v40 = vrot.slane %v6749_v56, %v8707_v11  ;;  %v6764_v52 = vrot.slane %v6750_v27, %v8707_v11  ;;  %v13374_v56 = vld [vmem:[#allocation99_spill] sm:$0xff]  ;;  %v6565_v27 = vshrl.u32 %v11591_v25, 16 }
 0x227   : > { %8558 = vmatprep.mubr.msk.bf16.mxu0 %vm8647_vm3, %v12741_v10  ;;  %v4709_v9 = vadd.f32 %v4643_v54, %v11665_v16  ;;  %v8290_v43 = vpop.f32.mrb[101].mxu1  ;;  %v6784_v61 = vcombine.low %v13375_v19, %v13374_v56 }
 0x228   : > { %v4646_v44 = vpop.f32.mrb[102].mxu1  ;;  %v6765_v6 = vcombine.low %v6757_v40, %v6764_v52 }
 0x229   : > { %v5499_v38 = vpop.f32.mrb[100].mxu0  ;;  %v4710_v45 = vadd.f32 %v4646_v44, %v11670_v57  ;;  %v8291_v34 = vpop.f32.mrb[103].mxu1  ;;  %v13369_v57 = vld [vmem:[#allocation167_spill] sm:$0xff]  ;;  %v6578_v44 = vshll.u32 %v11719_v63, 16 }
 0x22a   : > { %v11963_v1 = vadd.f32 %v5499_v38, %v4707_v28  ;;  %v8340_v60 = vpop.f32.mrb[101].mxu0  ;;  %v7165_v28 = vrot.slane %v7158_v5, %v8707_v11  ;;  %v6766_v55 = vcombine.low %v13370_v0, %v13369_v57  ;;  %v6573_v38 = vshrl.u32 %v11715_v48, 16  ;;  %v13377_v57 = vld [vmem:[#allocation116_spill] sm:$0xff] }
 0x22b   : > { %v5502_v41 = vpop.f32.mrb[102].mxu0  ;;  %8509 = vmatmul.mubr.msk.bf16.gmra.mrb[208].mxu1 %vm2352_vm2, %v6748_v47  ;;  %v6570_v47 = vshll.u32 %v11715_v48, 16  ;;  %v6581_v5 = vshrl.u32 %v11719_v63, 16  ;;  %v6589_v60 = vshrl.u32 %v11723_v26, 16  ;;  %v6594_v34 = vshll.u32 %v11776_v32, 16  ;;  %v13378_v0 = vld [vmem:[#allocation156_spill] sm:$0xff] }
 0x22c   : > { %v11968_v16 = vadd.f32 %v5502_v41, %v4708_v33  ;;  %v8341_v39 = vpop.f32.mrb[103].mxu0  ;;  %8512 = vmatprep.mubr.msk.bf16.mxu1 %vm8647_vm3, %v12741_v10  ;;  %v13371_v33 = vld [vmem:[#allocation170_spill] sm:$0xff]  ;;  %v13376_v41 = vld [vmem:[#allocation96_spill] sm:$0xff]  ;;  %v6791_v63 = vrot.slane %v6783_v14, %v8707_v11  ;;  %v6580_v14 = vsel %vm8739_vm1, %v6573_v38, %v6578_v44 }
 0x22d   : > { %v6767_v13 = vcombine.low %v13372_v18, %v13371_v33  ;;  %v7166_v39 = vcombine.low %v13376_v41, %v7165_v28  ;;  %v6798_v18 = vrot.slane %v6784_v61, %v8707_v11  ;;  %v6572_v28 = vsel %vm8739_vm1, %v6565_v27, %v6570_v47  ;;  %v13380_v61 = vld [vmem:[#allocation173_spill] sm:$0xff]  ;;  %v13382_v38 = vld [vmem:[#allocation28_spill] sm:$0xff] }
 0x22e   : > { %8559 = vmatmul.mubr.msk.bf16.gmra.mrb[208].mxu0 %vm2352_vm2, %v7157_v3  ;;  %v4651_v36 = vpop.f32.mrb[104].mxu1  ;;  %v6596_v19 = vsel %vm8739_vm1, %v6589_v60, %v6594_v34  ;;  %v13381_v47 = vld [vmem:[#allocation29_spill] sm:$0xff] }
 0x22f   : > { %8562 = vmatprep.mubr.msk.bf16.mxu0 %vm8647_vm3, %v12741_v10  ;;  %v4711_v54 = vadd.f32 %v4651_v36, %v11695_v37  ;;  %v8294_v43 = vpop.f32.mrb[105].mxu1  ;;  %v7167_v36 = vcombine.low %v13378_v0, %v13377_v57  ;;  %v7176_v44 = vcombine.low %v13382_v38, %v13381_v47  ;;  %v13383_v57 = vld [vmem:[#allocation66_spill] sm:$0xff] }
 0x230   : > { %v4654_v58 = vpop.f32.mrb[106].mxu1  ;;  %v6800_v43 = vcombine.low %v6791_v63, %v6798_v18 }
 0x231   : > { %v5507_v3 = vpop.f32.mrb[104].mxu0  ;;  %v4712_v52 = vadd.f32 %v4654_v58, %v11701_v20  ;;  %v8295_v48 = vpop.f32.mrb[107].mxu1  ;;  %v6781_v20 = vrot.slane %v6767_v13, %v8707_v11  ;;  %v13379_v13 = vld [vmem:[#allocation196_spill] sm:$0xff] }
 0x232   : > { %v11994_v40 = vadd.f32 %v5507_v3, %v4709_v9  ;;  %v8344_v37 = vpop.f32.mrb[105].mxu0  ;;  %v6774_v9 = vrot.slane %v6766_v55, %v8707_v11  ;;  %v6799_v27 = vcombine.low %v13380_v61, %v13379_v13  ;;  %v6814_v18 = vrot.slane %v6800_v43, %v8707_v11  ;;  %v13385_v13 = vld [vmem:[#allocation158_spill] sm:$0xff]  ;;  %v13387_v43 = vld [vmem:[#allocation101_spill] sm:$0xff] }
 0x233   : > { %v5510_v33 = vpop.f32.mrb[106].mxu0  ;;  %8513 = vmatmul.mubr.msk.bf16.gmra.mrb[212].mxu1 %vm2352_vm2, %v6765_v6  ;;  %v7174_v6 = vrot.slane %v7167_v36, %v8707_v11  ;;  %v13386_v61 = vld [vmem:[#allocation30_spill] sm:$0xff]  ;;  %v7194_v47 = vcombine.low %v13387_v43, %v11591_v25 }
 0x234   : > { %v12002_v7 = vadd.f32 %v5510_v33, %v4710_v45  ;;  %v8345_v56 = vpop.f32.mrb[107].mxu0  ;;  %8516 = vmatprep.mubr.msk.bf16.mxu1 %vm8647_vm3, %v12741_v10  ;;  %v6588_v45 = vsel %vm8739_vm1, %v6581_v5, %v6586_v17  ;;  %v6782_v5 = vcombine.low %v6774_v9, %v6781_v20  ;;  %v6818_v17 = vcombine.low %v6572_v28, %v6580_v14  ;;  %v13384_v14 = vld [vmem:[#allocation98_spill] sm:$0xff] }
 0x235   : > { %v6819_v60 = vcombine.low %v6588_v45, %v6596_v19  ;;  %v7175_v0 = vcombine.low %v13383_v57, %v7174_v6  ;;  %v6807_v63 = vrot.slane %v6799_v27, %v8707_v11  ;;  %v7185_v27 = vcombine.low %v13386_v61, %v13385_v13  ;;  %v13388_v57 = vld [vmem:[#allocation97_spill] sm:$0xff] }
 0x236   : > { %8563 = vmatmul.mubr.msk.bf16.gmra.mrb[212].mxu0 %vm2352_vm2, %v7166_v39  ;;  %v4659_v55 = vpop.f32.mrb[108].mxu1 }
 0x237   : > { %8566 = vmatprep.mubr.msk.bf16.mxu0 %vm8647_vm3, %v12741_v10  ;;  %v4713_v3 = vadd.f32 %v4659_v55, %v11733_v22  ;;  %v8298_v58 = vpop.f32.mrb[109].mxu1  ;;  %v7183_v22 = vrot.slane %v7176_v44, %v8707_v11  ;;  %v6847_v20 = vrot.slane %v6819_v60, %v8707_v11 }
 0x238   : > { %v4662_v37 = vpop.f32.mrb[110].mxu1  ;;  %v6597_v58 = vshrl.u32 %v11776_v32, 16 }
 0x239   : > { %v5515_v34 = vpop.f32.mrb[108].mxu0  ;;  %v4714_v48 = vadd.f32 %v4662_v37, %v11740_v29  ;;  %v8299_v36 = vpop.f32.mrb[111].mxu1  ;;  %v6555_v29 = vcombine.high %v11776_v32, %v11776_v32  ;;  %v7184_v45 = vcombine.low %v13384_v14, %v7183_v22 }
 0x23a   : > { %v12026_v41 = vadd.f32 %v5515_v34, %v4711_v54  ;;  %v8348_v39 = vpop.f32.mrb[109].mxu0  ;;  %v6840_v54 = vrot.slane %v6818_v17, %v8707_v11  ;;  %v6605_v17 = vshrl.u32 %v11780_v15, 16  ;;  %v7196_v36 = vcombine.low %v11723_v26, %v11776_v32 }
 0x23b   : > { %v5518_v33 = vpop.f32.mrb[110].mxu0  ;;  %8517 = vmatmul.mubr.msk.bf16.gmra.mrb[216].mxu1 %vm2352_vm2, %v6782_v5  ;;  %v6602_v5 = vshll.u32 %v11780_v15, 16  ;;  %v6610_v60 = vshll.u32 %v6555_v29, 16  ;;  %v13389_v15 = vld [vmem:[#allocation138_spill] sm:$0xff] }
 0x23c   : > { %v12033_v56 = vadd.f32 %v5518_v33, %v4712_v52  ;;  %v8349_v9 = vpop.f32.mrb[111].mxu0  ;;  %8520 = vmatprep.mubr.msk.bf16.mxu1 %vm8647_vm3, %v12741_v10  ;;  %v6815_v52 = vcombine.low %v6807_v63, %v6814_v18  ;;  %v6849_v55 = vcombine.low %v6840_v54, %v6847_v20  ;;  %v7203_v20 = vrot.slane %v7194_v47, %v8707_v11 }
 0x23d   : > { %v6604_v54 = vsel %vm8739_vm1, %v6597_v58, %v6602_v5  ;;  %v13393_v58 = vld [vmem:[#allocation244_spill] sm:$0xff] }
 0x23e   : > { %8567 = vmatmul.mubr.msk.bf16.gmra.mrb[216].mxu0 %vm2352_vm2, %v7175_v0  ;;  %v4667_v28 = vpop.f32.mrb[112].mxu1  ;;  %v7955_v0 = vcombine.high %v13388_v57, %v11591_v25  ;;  %v7192_v25 = vrot.slane %v7185_v27, %v8707_v11  ;;  %v13392_v27 = vld [vmem:[#allocation102_spill] sm:$0xff]  ;;  %v7218_v5 = vcombine.low %v13393_v58, %v7203_v20 }
 0x23f   : > { %8570 = vmatprep.mubr.msk.bf16.mxu0 %vm8647_vm3, %v12741_v10  ;;  %v4715_v19 = vadd.f32 %v4667_v28, %v11757_v46  ;;  %v8302_v6 = vpop.f32.mrb[113].mxu1  ;;  %v7217_v28 = vrot.slane %v7196_v36, %v8707_v11 }
 0x240   : > { %v4670_v44 = vpop.f32.mrb[114].mxu1  ;;  %v7210_v29 = vrot.slane %v7955_v0, %v8707_v11  ;;  %v7193_v43 = vcombine.low %v7192_v25, %v13392_v27  ;;  %v7956_v25 = vcombine.high %v11723_v26, %v11776_v32 }
 0x241   : > { %v5523_v38 = vpop.f32.mrb[112].mxu0  ;;  %v4716_v37 = vadd.f32 %v4670_v44, %v11760_v12  ;;  %v8303_v39 = vpop.f32.mrb[115].mxu1  ;;  %v6863_v12 = vrot.slane %v6849_v55, %v8707_v11 }
 0x242   : > { %v12054_v34 = vadd.f32 %v5523_v38, %v4713_v3  ;;  %v8352_v46 = vpop.f32.mrb[113].mxu0  ;;  %v13390_v3 = vld [vmem:[#allocation103_spill] sm:$0xff] }
 0x243   : > { %v5526_v33 = vpop.f32.mrb[114].mxu0  ;;  %8521 = vmatmul.mubr.msk.bf16.gmra.mrb[220].mxu1 %vm2352_vm2, %v6815_v52  ;;  %v13391_v22 = vcombine.low %v13389_v15, %v13390_v3 }
 0x244   : > { %v12061_v63 = vadd.f32 %v5526_v33, %v4714_v48  ;;  %v8353_v18 = vpop.f32.mrb[115].mxu0  ;;  %8524 = vmatprep.mubr.msk.bf16.mxu1 %vm8647_vm3, %v12741_v10  ;;  %v6612_v48 = vsel %vm8739_vm1, %v6605_v17, %v6610_v60  ;;  %v7219_v17 = vcombine.low %v7210_v29, %v7217_v28 }
 0x245   : > { %v6856_v9 = vrot.slane %v13391_v22, %v8707_v11  ;;  %v6865_v13 = vcombine.low %v6604_v54, %v6612_v48 }
 0x246   : > { %8571 = vmatmul.mubr.msk.bf16.gmra.mrb[220].mxu0 %vm2352_vm2, %v7184_v45  ;;  %v4675_v52 = vpop.f32.mrb[116].mxu1 }
 0x247   : > { %8574 = vmatprep.mubr.msk.bf16.mxu0 %vm8647_vm3, %v12741_v10  ;;  %v4717_v14 = vadd.f32 %v4675_v52, %v11786_v24  ;;  %v8306_v6 = vpop.f32.mrb[117].mxu1  ;;  %v6864_v55 = vcombine.low %v6856_v9, %v6863_v12  ;;  %v6872_v39 = vrot.slane %v6865_v13, %v8707_v11 }
 0x248   : > { %v4678_v23 = vpop.f32.mrb[118].mxu1 }
 0x249   : > { %v5531_v61 = vpop.f32.mrb[116].mxu0  ;;  %v4718_v38 = vadd.f32 %v4678_v23, %v11791_v31  ;;  %v8307_v44 = vpop.f32.mrb[119].mxu1  ;;  %v7233_v31 = vrot.slane %v7219_v17, %v8707_v11  ;;  %v6879_v36 = vrot.slane %v6872_v39, %v8707_v11 }
 0x24a   : > { %v12084_v45 = vadd.f32 %v5531_v61, %v4715_v19  ;;  %v8356_v47 = vpop.f32.mrb[117].mxu0  ;;  %v7226_v19 = vrot.slane %v7218_v5, %v8707_v11 }
 0x24b   : > { %v5534_v60 = vpop.f32.mrb[118].mxu0  ;;  %8525 = vmatmul.mubr.msk.bf16.gmra.mrb[224].mxu1 %vm2352_vm2, %v6864_v55 }
 0x24c   : > { %v12088_v46 = vadd.f32 %v5534_v60, %v4716_v37  ;;  %v8357_v24 = vpop.f32.mrb[119].mxu0  ;;  %8528 = vmatprep.mubr.msk.bf16.mxu1 %vm8647_vm3, %v12741_v10  ;;  %v7234_v9 = vcombine.low %v7226_v19, %v7233_v31 }
 0x24e   : > { %8575 = vmatmul.mubr.msk.bf16.gmra.mrb[224].mxu0 %vm2352_vm2, %v7193_v43  ;;  %v4683_v57 = vpop.f32.mrb[120].mxu1 }
 0x24f   : > { %8578 = vmatprep.mubr.msk.bf16.mxu0 %vm8647_vm3, %v12741_v10  ;;  %v4719_v37 = vadd.f32 %v4683_v57, %v11805_v62  ;;  %v8310_v0 = vpop.f32.mrb[121].mxu1  ;;  %v7242_v62 = vrot.slane %v7956_v25, %v8707_v11 }
 0x250   : > { %v4686_v18 = vpop.f32.mrb[122].mxu1 }
 0x251   : > { %v5539_v33 = vpop.f32.mrb[120].mxu0  ;;  %v4720_v22 = vadd.f32 %v4686_v18, %v11808_v50  ;;  %v8311_v12 = vpop.f32.mrb[123].mxu1  ;;  %v7249_v6 = vrot.slane %v7242_v62, %v8707_v11 }
 0x252   : > { %v12101_v15 = vadd.f32 %v5539_v33, %v4717_v14  ;;  %v8360_v3 = vpop.f32.mrb[121].mxu0 }
 0x253   : > { %v5542_v54 = vpop.f32.mrb[122].mxu0  ;;  %8529 = vmatmul.mubr.msk.bf16.gmra.mrb[228].mxu1 %vm2352_vm2, %v6879_v36 }
 0x254   : > { %v12106_v48 = vadd.f32 %v5542_v54, %v4718_v38  ;;  %v8361_v20 = vpop.f32.mrb[123].mxu0 }
 0x256   : > { %8579 = vmatmul.mubr.msk.bf16.gmra.mrb[228].mxu0 %vm2352_vm2, %v7234_v9  ;;  %v4691_v29 = vpop.f32.mrb[124].mxu1 }
 0x257   : > { %8582 = vmatprep.mubr.msk.bf16.mxu0 %vm8647_vm3, %v12741_v10  ;;  %v4721_v50 = vadd.f32 %v4691_v29, %v11826_v21  ;;  %v8314_v28 = vpop.f32.mrb[125].mxu1 }
 0x258   : > { %v4694_v14 = vpop.f32.mrb[126].mxu1 }
 0x259   : > { %v5547_v52 = vpop.f32.mrb[124].mxu0  ;;  %v8315_v55 = vpop.f32.mrb[127].mxu1 }
 0x25a   : > { %v12114_v26 = vadd.f32 %v5547_v52, %v4719_v37  ;;  %v8364_v32 = vpop.f32.mrb[125].mxu0 }
 0x25b   : > { %v5550_v13 = vpop.f32.mrb[126].mxu0 }
 0x25c   : > { %v12117_v61 = vadd.f32 %v5550_v13, %v4720_v22  ;;  %v8365_v23 = vpop.f32.mrb[127].mxu0 }
 0x25e   : > { %8583 = vmatmul.mubr.msk.bf16.gmra.mrb[232].mxu0 %vm2352_vm2, %v7249_v6  ;;  %v5925_v27 = vpop.f32.mrb[128].mxu1 }
 0x25f   : > { %v6027_v10 = vadd.f32 %v5925_v27, %v11848_v49  ;;  %v8374_v43 = vpop.f32.mrb[129].mxu1 }
 0x260   : > { %v5928_v47 = vpop.f32.mrb[130].mxu1 }
 0x261   : > { %v5555_v21 = vpop.f32.mrb[128].mxu0  ;;  %v6028_v58 = vadd.f32 %v5928_v47, %v11854_v30  ;;  %v8375_v5 = vpop.f32.mrb[131].mxu1 }
 0x262   : > { %v12121_v38 = vadd.f32 %v5555_v21, %v4721_v50  ;;  %v8368_v44 = vpop.f32.mrb[129].mxu0 }
 0x263   : > { %v5558_v11 = vpop.f32.mrb[130].mxu0 }
 0x264   : > { %v8369_v17 = vpop.f32.mrb[131].mxu0 }
 0x266   : > { %v5933_v60 = vpop.f32.mrb[132].mxu1 }
 0x267   : > { %v6029_v24 = vadd.f32 %v5933_v60, %v11870_v8  ;;  %v8378_v39 = vpop.f32.mrb[133].mxu1 }
 0x268   : > { %v5936_v31 = vpop.f32.mrb[134].mxu1 }
 0x269   : > { %v6428_v19 = vpop.f32.mrb[132].mxu0  ;;  %v6030_v37 = vadd.f32 %v5936_v31, %v11876_v42  ;;  %v8379_v0 = vpop.f32.mrb[135].mxu1 }
 0x26a   : > { %v12125_v57 = vadd.f32 %v6428_v19, %v6027_v10  ;;  %v8428_v49 = vpop.f32.mrb[133].mxu0 }
 0x26b   : > { %v6431_v36 = vpop.f32.mrb[134].mxu0 }
 0x26c   : > { %v12128_v33 = vadd.f32 %v6431_v36, %v6028_v58  ;;  %v8429_v18 = vpop.f32.mrb[135].mxu0 }
 0x26e   : > { %v5941_v30 = vpop.f32.mrb[136].mxu1 }
 0x26f   : > { %v6031_v3 = vadd.f32 %v5941_v30, %v11892_v59  ;;  %v8382_v22 = vpop.f32.mrb[137].mxu1 }
 0x270   : > { %v5944_v12 = vpop.f32.mrb[138].mxu1 }
 0x271   : > { %v6436_v9 = vpop.f32.mrb[136].mxu0  ;;  %v6032_v54 = vadd.f32 %v5944_v12, %v11898_v53  ;;  %v8383_v20 = vpop.f32.mrb[139].mxu1 }
 0x272   : > { %v12131_v8 = vadd.f32 %v6436_v9, %v6029_v24  ;;  %v8432_v25 = vpop.f32.mrb[137].mxu0 }
 0x273   : > { %v6439_v62 = vpop.f32.mrb[138].mxu0 }
 0x274   : > { %v12134_v29 = vadd.f32 %v6439_v62, %v6030_v37  ;;  %v8433_v42 = vpop.f32.mrb[139].mxu0 }
 0x276   : > { %v5949_v50 = vpop.f32.mrb[140].mxu1 }
 0x277   : > { %v6033_v28 = vadd.f32 %v5949_v50, %v11914_v2  ;;  %v8386_v52 = vpop.f32.mrb[141].mxu1 }
 0x278   : > { %v5952_v32 = vpop.f32.mrb[142].mxu1 }
 0x279   : > { %v6444_v14 = vpop.f32.mrb[140].mxu0  ;;  %v6034_v55 = vadd.f32 %v5952_v32, %v11920_v4  ;;  %v8387_v13 = vpop.f32.mrb[143].mxu1 }
 0x27a   : > { %v12137_v59 = vadd.f32 %v6444_v14, %v6031_v3  ;;  %v8436_v6 = vpop.f32.mrb[141].mxu0 }
 0x27b   : > { %v6447_v23 = vpop.f32.mrb[142].mxu0 }
 0x27c   : > { %v12140_v27 = vadd.f32 %v6447_v23, %v6032_v54  ;;  %v8437_v53 = vpop.f32.mrb[143].mxu0 }
 0x27e   : > { %v5957_v10 = vpop.f32.mrb[144].mxu1 }
 0x27f   : > { %v6035_v43 = vadd.f32 %v5957_v10, %v11940_v35  ;;  %v8390_v21 = vpop.f32.mrb[145].mxu1 }
 0x280   : > { %v5960_v44 = vpop.f32.mrb[146].mxu1 }
 0x281   : > { %v6452_v47 = vpop.f32.mrb[144].mxu0  ;;  %v6036_v5 = vadd.f32 %v5960_v44, %v11944_v51  ;;  %v8391_v11 = vpop.f32.mrb[147].mxu1 }
 0x282   : > { %v12143_v2 = vadd.f32 %v6452_v47, %v6033_v28  ;;  %v8440_v58 = vpop.f32.mrb[145].mxu0 }
 0x283   : > { %v6455_v17 = vpop.f32.mrb[146].mxu0 }
 0x284   : > { %v12146_v60 = vadd.f32 %v6455_v17, %v6034_v55  ;;  %v8441_v4 = vpop.f32.mrb[147].mxu0 }
 0x286   : > { %v5965_v24 = vpop.f32.mrb[148].mxu1 }
 0x287   : > { %v6037_v39 = vadd.f32 %v5965_v24, %v11963_v1  ;;  %v8394_v19 = vpop.f32.mrb[149].mxu1 }
 0x288   : > { %v5968_v49 = vpop.f32.mrb[150].mxu1 }
 0x289   : > { %v6460_v31 = vpop.f32.mrb[148].mxu0  ;;  %v6038_v0 = vadd.f32 %v5968_v49, %v11968_v16  ;;  %v8395_v36 = vpop.f32.mrb[151].mxu1 }
 0x28a   : > { %v12149_v35 = vadd.f32 %v6460_v31, %v6035_v43  ;;  %v8444_v37 = vpop.f32.mrb[149].mxu0 }
 0x28b   : > { %v6463_v18 = vpop.f32.mrb[150].mxu0 }
 0x28c   : > { %v12152_v30 = vadd.f32 %v6463_v18, %v6036_v5  ;;  %v8445_v51 = vpop.f32.mrb[151].mxu0 }
 0x28e   : > { %v5973_v3 = vpop.f32.mrb[152].mxu1 }
 0x28f   : > { %v6039_v22 = vadd.f32 %v5973_v3, %v11994_v40  ;;  %v8398_v9 = vpop.f32.mrb[153].mxu1 }
 0x290   : > { %v5976_v25 = vpop.f32.mrb[154].mxu1 }
 0x291   : > { %v6468_v12 = vpop.f32.mrb[152].mxu0  ;;  %v6040_v20 = vadd.f32 %v5976_v25, %v12002_v7  ;;  %v8399_v62 = vpop.f32.mrb[155].mxu1 }
 0x292   : > { %v12155_v1 = vadd.f32 %v6468_v12, %v6037_v39  ;;  %v8448_v54 = vpop.f32.mrb[153].mxu0 }
 0x293   : > { %v6471_v42 = vpop.f32.mrb[154].mxu0 }
 0x294   : > { %v12158_v50 = vadd.f32 %v6471_v42, %v6038_v0  ;;  %v8449_v16 = vpop.f32.mrb[155].mxu0 }
 0x296   : > { %v5981_v28 = vpop.f32.mrb[156].mxu1 }
 0x297   : > { %v6041_v52 = vadd.f32 %v5981_v28, %v12026_v41  ;;  %v8402_v14 = vpop.f32.mrb[157].mxu1 }
 0x298   : > { %v5984_v6 = vpop.f32.mrb[158].mxu1 }
 0x299   : > { %v6476_v32 = vpop.f32.mrb[156].mxu0  ;;  %v6042_v13 = vadd.f32 %v5984_v6, %v12033_v56  ;;  %v8403_v23 = vpop.f32.mrb[159].mxu1 }
 0x29a   : > { %v12161_v40 = vadd.f32 %v6476_v32, %v6039_v22  ;;  %v8452_v55 = vpop.f32.mrb[157].mxu0 }
 0x29b   : > { %v6479_v53 = vpop.f32.mrb[158].mxu0 }
 0x29c   : > { %v12164_v10 = vadd.f32 %v6479_v53, %v6040_v20  ;;  %v8453_v7 = vpop.f32.mrb[159].mxu0 }
 0x29e   : > { %v5989_v43 = vpop.f32.mrb[160].mxu1 }
 0x29f   : > { %v6043_v21 = vadd.f32 %v5989_v43, %v12054_v34  ;;  %v8406_v47 = vpop.f32.mrb[161].mxu1 }
 0x2a0   : > { %v5992_v58 = vpop.f32.mrb[162].mxu1 }
 0x2a1   : > { %v6484_v44 = vpop.f32.mrb[160].mxu0  ;;  %v6044_v11 = vadd.f32 %v5992_v58, %v12061_v63  ;;  %v8407_v17 = vpop.f32.mrb[163].mxu1 }
 0x2a2   : > { %v12167_v41 = vadd.f32 %v6484_v44, %v6041_v52  ;;  %v8456_v5 = vpop.f32.mrb[161].mxu0 }
 0x2a3   : > { %v6487_v4 = vpop.f32.mrb[162].mxu0 }
 0x2a4   : > { %v12170_v24 = vadd.f32 %v6487_v4, %v6042_v13  ;;  %v8457_v56 = vpop.f32.mrb[163].mxu0 }
 0x2a6   : > { %v5997_v39 = vpop.f32.mrb[164].mxu1 }
 0x2a7   : > { %v6045_v19 = vadd.f32 %v5997_v39, %v12084_v45  ;;  %v8410_v31 = vpop.f32.mrb[165].mxu1 }
 0x2a8   : > { %v6000_v37 = vpop.f32.mrb[166].mxu1 }
 0x2a9   : > { %v6492_v49 = vpop.f32.mrb[164].mxu0  ;;  %v6046_v36 = vadd.f32 %v6000_v37, %v12088_v46  ;;  %v8411_v18 = vpop.f32.mrb[167].mxu1 }
 0x2aa   : > { %v12173_v34 = vadd.f32 %v6492_v49, %v6043_v21  ;;  %v8460_v0 = vpop.f32.mrb[165].mxu0 }
 0x2ab   : > { %v6495_v51 = vpop.f32.mrb[166].mxu0 }
 0x2ac   : > { %v12176_v3 = vadd.f32 %v6495_v51, %v6044_v11  ;;  %v8461_v63 = vpop.f32.mrb[167].mxu0 }
 0x2ae   : > { %v6005_v22 = vpop.f32.mrb[168].mxu1 }
 0x2af   : > { %v6047_v9 = vadd.f32 %v6005_v22, %v12101_v15  ;;  %v8414_v12 = vpop.f32.mrb[169].mxu1 }
 0x2b0   : > { %v6008_v54 = vpop.f32.mrb[170].mxu1 }
 0x2b1   : > { %v6500_v25 = vpop.f32.mrb[168].mxu0  ;;  %v6048_v62 = vadd.f32 %v6008_v54, %v12106_v48  ;;  %v8415_v42 = vpop.f32.mrb[171].mxu1 }
 0x2b2   : > { %v12179_v45 = vadd.f32 %v6500_v25, %v6045_v19  ;;  %v8464_v20 = vpop.f32.mrb[169].mxu0 }
 0x2b3   : > { %v6503_v16 = vpop.f32.mrb[170].mxu0 }
 0x2b4   : > { %v12182_v28 = vadd.f32 %v6503_v16, %v6046_v36  ;;  %v8465_v46 = vpop.f32.mrb[171].mxu0 }
 0x2b6   : > { %v6013_v52 = vpop.f32.mrb[172].mxu1 }
 0x2b7   : > { %v6049_v14 = vadd.f32 %v6013_v52, %v12114_v26  ;;  %v8418_v32 = vpop.f32.mrb[173].mxu1 }
 0x2b8   : > { %v6016_v55 = vpop.f32.mrb[174].mxu1  ;;  %v8649_v32 = vmov 0.28284273  }
 0x2b9   : > { %v6508_v6 = vpop.f32.mrb[172].mxu0  ;;  %v6050_v23 = vadd.f32 %v6016_v55, %v12117_v61  ;;  %v8419_v53 = vpop.f32.mrb[175].mxu1 }
 0x2ba   : > { %v12185_v15 = vadd.f32 %v6508_v6, %v6047_v9  ;;  %v8468_v13 = vpop.f32.mrb[173].mxu0 }
 0x2bb   : > { %v6511_v7 = vpop.f32.mrb[174].mxu0 }
 0x2bc   : > { %v12188_v43 = vadd.f32 %v6511_v7, %v6048_v62  ;;  %v8469_v48 = vpop.f32.mrb[175].mxu0 }
 0x2be   : > { %v6021_v21 = vpop.f32.mrb[176].mxu1 }
 0x2bf   : > { %v6051_v47 = vadd.f32 %v6021_v21, %v12121_v38  ;;  %v8422_v44 = vpop.f32.mrb[177].mxu1 }
 0x2c0   : > { %v6024_v5 = vpop.f32.mrb[178].mxu1 }
 0x2c1   : > { %v6516_v58 = vpop.f32.mrb[176].mxu0  ;;  %v8423_v17 = vpop.f32.mrb[179].mxu1 }
 0x2c2   : > { %v12191_v26 = vadd.f32 %v6516_v58, %v6049_v14  ;;  %v8472_v11 = vpop.f32.mrb[177].mxu0 }
 0x2c3   : > { %v6519_v4 = vpop.f32.mrb[178].mxu0 }
 0x2c4   : > { %v12193_v56 = vadd.f32 %v6519_v4, %v6050_v23  ;;  %v8473_v39 = vpop.f32.mrb[179].mxu0 }
 0x2c6   : > { %v6960_v61 = vpop.f32.mrb[180].mxu1 }
 0x2c7   : > { %v7062_v19 = vadd.f32 %v6960_v61, %v12125_v57  ;;  %v8482_v31 = vpop.f32.mrb[181].mxu1  ;;  %v12203_v57 = vld [vmem:[%s12319_s2] ss:$0 sm:$0xff] }
 0x2c8   : > { %v6963_v37 = vpop.f32.mrb[182].mxu1 }
 0x2c9   : > { %v6524_v49 = vpop.f32.mrb[180].mxu0  ;;  %v7063_v36 = vadd.f32 %v6963_v37, %v12128_v33  ;;  %v8483_v18 = vpop.f32.mrb[183].mxu1 }
 0x2ca   : > { %v12196_v0 = vadd.f32 %v6524_v49, %v6051_v47  ;;  %v8476_v38 = vpop.f32.mrb[181].mxu0 }
 0x2cb   : > { %v6527_v51 = vpop.f32.mrb[182].mxu0 }
 0x2cc   : > { %v8477_v63 = vpop.f32.mrb[183].mxu0 }
 0x2ce   : > { %v6968_v22 = vpop.f32.mrb[184].mxu1 }
 0x2cf   : > { %v7064_v9 = vadd.f32 %v6968_v22, %v12131_v8  ;;  %v8486_v12 = vpop.f32.mrb[185].mxu1 }
 0x2d0   : > { %v6971_v54 = vpop.f32.mrb[186].mxu1 }
 0x2d1   : > { %v7326_v25 = vpop.f32.mrb[184].mxu0  ;;  %v7065_v42 = vadd.f32 %v6971_v54, %v12134_v29  ;;  %v8487_v16 = vpop.f32.mrb[187].mxu1 }
 0x2d2   : > { %v7428_v20 = vadd.f32 %v7326_v25, %v7062_v19  ;;  %v8536_v62 = vpop.f32.mrb[185].mxu0 }
 0x2d3   : > { %v7329_v33 = vpop.f32.mrb[186].mxu0 }
 0x2d4   : > { %v7461_v46 = vadd.f32 %v12203_v57, %v7428_v20  ;;  %v7429_v52 = vadd.f32 %v7329_v33, %v7063_v36  ;;  %v8537_v14 = vpop.f32.mrb[187].mxu0 }
 0x2d6   : > { %vm7486_vm0 = vcmp.ge.f32.partialorder %v7461_v46, 0.0  ;;  %v7462_v8 = vadd.f32 %v12203_v57, %v7429_v52  ;;  %v6976_v29 = vpop.f32.mrb[188].mxu1 }
 0x2d7   : > { %v7511_v6 = vsel %vm7486_vm0, 1.4142135, %v8649_v32  ;;  %v7066_v13 = vadd.f32 %v6976_v29, %v12137_v59  ;;  %v8490_v23 = vpop.f32.mrb[189].mxu1 }
 0x2d8   : > { %v7536_v55 = vmul.f32 %v7511_v6, %v7461_v46  ;;  %vm7487_vm3 = vcmp.ge.f32.partialorder %v7462_v8, 0.0  ;;  %v6979_v48 = vpop.f32.mrb[190].mxu1 }
 0x2d9   : > { %v7512_v53 = vsel %vm7487_vm3, 1.4142135, %v8649_v32  ;;  %v7334_v7 = vpop.f32.mrb[188].mxu0  ;;  %v7067_v58 = vadd.f32 %v6979_v48, %v12140_v27  ;;  %v8491_v5 = vpop.f32.mrb[191].mxu1 }
 0x2da   : > { %7561 = vst [vmem:[%s12212_s10] sm:$0xff] %v7536_v55  ;;  %v7537_v21 = vmul.f32 %v7512_v53, %v7462_v8  ;;  %v7430_v47 = vadd.f32 %v7334_v7, %v7064_v9  ;;  %v8540_v44 = vpop.f32.mrb[189].mxu0 }
 0x2db   : > { %v7337_v11 = vpop.f32.mrb[190].mxu0 }
 0x2dc   : > { %7562 = vst [vmem:[%s12212_s10 + $0x8] sm:$0xff] %v7537_v21  ;;  %v7463_v17 = vadd.f32 %v12203_v57, %v7430_v47  ;;  %v7431_v4 = vadd.f32 %v7337_v11, %v7065_v42  ;;  %v8541_v39 = vpop.f32.mrb[191].mxu0 }
 0x2de   : > { %vm7488_vm4 = vcmp.ge.f32.partialorder %v7463_v17, 0.0  ;;  %v7464_v59 = vadd.f32 %v12203_v57, %v7431_v4  ;;  %v6984_v19 = vpop.f32.mrb[192].mxu1 }
 0x2df   : > { %v7513_v61 = vsel %vm7488_vm4, 1.4142135, %v8649_v32  ;;  %v7068_v49 = vadd.f32 %v6984_v19, %v12143_v2  ;;  %v8494_v27 = vpop.f32.mrb[193].mxu1 }
 0x2e0   : > { %v7538_v31 = vmul.f32 %v7513_v61, %v7463_v17  ;;  %vm7489_vm5 = vcmp.ge.f32.partialorder %v7464_v59, 0.0  ;;  %v6987_v36 = vpop.f32.mrb[194].mxu1 }
 0x2e1   : > { %v7514_v37 = vsel %vm7489_vm5, 1.4142135, %v8649_v32  ;;  %v7342_v38 = vpop.f32.mrb[192].mxu0  ;;  %v7069_v22 = vadd.f32 %v6987_v36, %v12146_v60  ;;  %v8495_v9 = vpop.f32.mrb[195].mxu1 }
 0x2e2   : > { %7563 = vst [vmem:[%s12212_s10 + $0x10] sm:$0xff] %v7538_v31  ;;  %v7539_v18 = vmul.f32 %v7514_v37, %v7464_v59  ;;  %v7432_v51 = vadd.f32 %v7342_v38, %v7066_v13  ;;  %v8544_v63 = vpop.f32.mrb[193].mxu0 }
 0x2e3   : > { %v7345_v12 = vpop.f32.mrb[194].mxu0 }
 0x2e4   : > { %7564 = vst [vmem:[%s12212_s10 + $0x18] sm:$0xff] %v7539_v18  ;;  %v7465_v25 = vadd.f32 %v12203_v57, %v7432_v51  ;;  %v7433_v54 = vadd.f32 %v7345_v12, %v7067_v58  ;;  %v8545_v20 = vpop.f32.mrb[195].mxu0 }
 0x2e6   : > { %vm7490_vm6 = vcmp.ge.f32.partialorder %v7465_v25, 0.0  ;;  %v7466_v2 = vadd.f32 %v12203_v57, %v7433_v54  ;;  %v6992_v42 = vpop.f32.mrb[196].mxu1 }
 0x2e7   : > { %v7515_v62 = vsel %vm7490_vm6, 1.4142135, %v8649_v32  ;;  %v7070_v33 = vadd.f32 %v6992_v42, %v12149_v35  ;;  %v8498_v60 = vpop.f32.mrb[197].mxu1 }
 0x2e8   : > { %v7540_v16 = vmul.f32 %v7515_v62, %v7465_v25  ;;  %vm7491_vm7 = vcmp.ge.f32.partialorder %v7466_v2, 0.0  ;;  %v6995_v14 = vpop.f32.mrb[198].mxu1 }
 0x2e9   : > { %v7516_v46 = vsel %vm7491_vm7, 1.4142135, %v8649_v32  ;;  %v7350_v52 = vpop.f32.mrb[196].mxu0  ;;  %v7071_v55 = vadd.f32 %v6995_v14, %v12152_v30  ;;  %v8499_v13 = vpop.f32.mrb[199].mxu1 }
 0x2ea   : > { %7565 = vst [vmem:[%s12212_s10 + $0x20] sm:$0xff] %v7540_v16  ;;  %v7541_v8 = vmul.f32 %v7516_v46, %v7466_v2  ;;  %v7434_v6 = vadd.f32 %v7350_v52, %v7068_v49  ;;  %v8548_v29 = vpop.f32.mrb[197].mxu0 }
 0x2eb   : > { %v7353_v23 = vpop.f32.mrb[198].mxu0 }
 0x2ec   : > { %7566 = vst [vmem:[%s12212_s10 + $0x28] sm:$0xff] %v7541_v8  ;;  %v7467_v53 = vadd.f32 %v12203_v57, %v7434_v6  ;;  %v7435_v7 = vadd.f32 %v7353_v23, %v7069_v22  ;;  %v8549_v48 = vpop.f32.mrb[199].mxu0 }
 0x2ee   : > { %vm7492_vm8 = vcmp.ge.f32.partialorder %v7467_v53, 0.0  ;;  %v7468_v35 = vadd.f32 %v12203_v57, %v7435_v7  ;;  %v7000_v47 = vpop.f32.mrb[200].mxu1 }
 0x2ef   : > { %v7517_v21 = vsel %vm7492_vm8, 1.4142135, %v8649_v32  ;;  %v7072_v58 = vadd.f32 %v7000_v47, %v12155_v1  ;;  %v8502_v30 = vpop.f32.mrb[201].mxu1 }
 0x2f0   : > { %v7542_v44 = vmul.f32 %v7517_v21, %v7467_v53  ;;  %vm7493_vm9 = vcmp.ge.f32.partialorder %v7468_v35, 0.0  ;;  %v7003_v17 = vpop.f32.mrb[202].mxu1 }
 0x2f1   : > { %v7518_v5 = vsel %vm7493_vm9, 1.4142135, %v8649_v32  ;;  %v7358_v11 = vpop.f32.mrb[200].mxu0  ;;  %v7073_v61 = vadd.f32 %v7003_v17, %v12158_v50  ;;  %v8503_v19 = vpop.f32.mrb[203].mxu1 }
 0x2f2   : > { %7567 = vst [vmem:[%s12212_s10 + $0x30] sm:$0xff] %v7542_v44  ;;  %v7543_v4 = vmul.f32 %v7518_v5, %v7468_v35  ;;  %v7436_v39 = vadd.f32 %v7358_v11, %v7070_v33  ;;  %v8552_v59 = vpop.f32.mrb[201].mxu0 }
 0x2f3   : > { %v7361_v31 = vpop.f32.mrb[202].mxu0 }
 0x2f4   : > { %7568 = vst [vmem:[%s12212_s10 + $0x38] sm:$0xff] %v7543_v4  ;;  %v7469_v49 = vadd.f32 %v12203_v57, %v7436_v39  ;;  %v7437_v27 = vadd.f32 %v7361_v31, %v7071_v55  ;;  %v8553_v37 = vpop.f32.mrb[203].mxu0 }
 0x2f6   : > { %vm7494_vm10 = vcmp.ge.f32.partialorder %v7469_v49, 0.0  ;;  %v7470_v1 = vadd.f32 %v12203_v57, %v7437_v27  ;;  %v7008_v36 = vpop.f32.mrb[204].mxu1 }
 0x2f7   : > { %v7519_v38 = vsel %vm7494_vm10, 1.4142135, %v8649_v32  ;;  %v7074_v51 = vadd.f32 %v7008_v36, %v12161_v40  ;;  %v8506_v50 = vpop.f32.mrb[205].mxu1 }
 0x2f8   : > { %v7544_v18 = vmul.f32 %v7519_v38, %v7469_v49  ;;  %vm7495_vm11 = vcmp.ge.f32.partialorder %v7470_v1, 0.0  ;;  %v7011_v9 = vpop.f32.mrb[206].mxu1 }
 0x2f9   : > { %v7520_v63 = vsel %vm7495_vm11, 1.4142135, %v8649_v32  ;;  %v7366_v22 = vpop.f32.mrb[204].mxu0  ;;  %v7075_v20 = vadd.f32 %v7011_v9, %v12164_v10  ;;  %v8507_v2 = vpop.f32.mrb[207].mxu1 }
 0x2fa   : > { %7569 = vst [vmem:[%s12212_s10 + $0x40] sm:$0xff] %v7544_v18  ;;  %v7545_v12 = vmul.f32 %v7520_v63, %v7470_v1  ;;  %v7438_v25 = vadd.f32 %v7366_v22, %v7072_v58  ;;  %v8556_v54 = vpop.f32.mrb[205].mxu0 }
 0x2fb   : > { %v7369_v62 = vpop.f32.mrb[206].mxu0 }
 0x2fc   : > { %7570 = vst [vmem:[%s12212_s10 + $0x48] sm:$0xff] %v7545_v12  ;;  %v7471_v42 = vadd.f32 %v12203_v57, %v7438_v25  ;;  %v7439_v16 = vadd.f32 %v7369_v62, %v7073_v61  ;;  %v8557_v33 = vpop.f32.mrb[207].mxu0 }
 0x2fe   : > { %vm7496_vm12 = vcmp.ge.f32.partialorder %v7471_v42, 0.0  ;;  %v7472_v40 = vadd.f32 %v12203_v57, %v7439_v16  ;;  %v7016_v46 = vpop.f32.mrb[208].mxu1 }
 0x2ff   : > { %v7521_v60 = vsel %vm7496_vm12, 1.4142135, %v8649_v32  ;;  %v7076_v14 = vadd.f32 %v7016_v46, %v12167_v41  ;;  %v8510_v10 = vpop.f32.mrb[209].mxu1 }
 0x300   : > { %v7546_v52 = vmul.f32 %v7521_v60, %v7471_v42  ;;  %vm7497_vm13 = vcmp.ge.f32.partialorder %v7472_v40, 0.0  ;;  %v7019_v29 = vpop.f32.mrb[210].mxu1 }
 0x301   : > { %v7522_v8 = vsel %vm7497_vm13, 1.4142135, %v8649_v32  ;;  %v7374_v6 = vpop.f32.mrb[208].mxu0  ;;  %v7077_v53 = vadd.f32 %v7019_v29, %v12170_v24  ;;  %v8511_v7 = vpop.f32.mrb[211].mxu1 }
 0x302   : > { %7571 = vst [vmem:[%s12212_s10 + $0x50] sm:$0xff] %v7546_v52  ;;  %v7547_v55 = vmul.f32 %v7522_v8, %v7472_v40  ;;  %v7440_v13 = vadd.f32 %v7374_v6, %v7074_v51  ;;  %v8560_v23 = vpop.f32.mrb[209].mxu0 }
 0x303   : > { %v7377_v48 = vpop.f32.mrb[210].mxu0 }
 0x304   : > { %7572 = vst [vmem:[%s12212_s10 + $0x58] sm:$0xff] %v7547_v55  ;;  %v7473_v35 = vadd.f32 %v12203_v57, %v7440_v13  ;;  %v7441_v21 = vadd.f32 %v7377_v48, %v7075_v20  ;;  %v8561_v47 = vpop.f32.mrb[211].mxu0 }
 0x306   : > { %vm7498_vm14 = vcmp.ge.f32.partialorder %v7473_v35, 0.0  ;;  %v7474_v41 = vadd.f32 %v12203_v57, %v7441_v21  ;;  %v7024_v58 = vpop.f32.mrb[212].mxu1 }
 0x307   : > { %v7523_v44 = vsel %vm7498_vm14, 1.4142135, %v8649_v32  ;;  %v7078_v5 = vadd.f32 %v7024_v58, %v12173_v34  ;;  %v8514_v24 = vpop.f32.mrb[213].mxu1 }
 0x308   : > { %v7548_v30 = vmul.f32 %v7523_v44, %v7473_v35  ;;  %vm7499_vm15 = vcmp.ge.f32.partialorder %v7474_v41, 0.0  ;;  %v7027_v4 = vpop.f32.mrb[214].mxu1 }
 0x309   : > { %v7524_v11 = vsel %vm7499_vm15, 1.4142135, %v8649_v32  ;;  %v7382_v17 = vpop.f32.mrb[212].mxu0  ;;  %v7079_v19 = vadd.f32 %v7027_v4, %v12176_v3  ;;  %v8515_v31 = vpop.f32.mrb[215].mxu1 }
 0x30a   : > { %7573 = vst [vmem:[%s12212_s10 + $0x60] sm:$0xff] %v7548_v30  ;;  %v7549_v39 = vmul.f32 %v7524_v11, %v7474_v41  ;;  %v7442_v59 = vadd.f32 %v7382_v17, %v7076_v14  ;;  %v8564_v61 = vpop.f32.mrb[213].mxu0 }
 0x30b   : > { %v7385_v49 = vpop.f32.mrb[214].mxu0 }
 0x30c   : > { %7574 = vst [vmem:[%s12212_s10 + $0x68] sm:$0xff] %v7549_v39  ;;  %v7475_v27 = vadd.f32 %v12203_v57, %v7442_v59  ;;  %v7443_v37 = vadd.f32 %v7385_v49, %v7077_v53  ;;  %v8565_v1 = vpop.f32.mrb[215].mxu0 }
 0x30e   : > { %vm7500_vm1 = vcmp.ge.f32.partialorder %v7475_v27, 0.0  ;;  %v7476_v34 = vadd.f32 %v12203_v57, %v7443_v37  ;;  %v7032_v36 = vpop.f32.mrb[216].mxu1 }
 0x30f   : > { %v7525_v38 = vsel %vm7500_vm1, 1.4142135, %v8649_v32  ;;  %v7080_v51 = vadd.f32 %v7032_v36, %v12179_v45  ;;  %v8518_v3 = vpop.f32.mrb[217].mxu1 }
 0x310   : > { %v7550_v18 = vmul.f32 %v7525_v38, %v7475_v27  ;;  %vm7501_vm2 = vcmp.ge.f32.partialorder %v7476_v34, 0.0  ;;  %v7035_v22 = vpop.f32.mrb[218].mxu1 }
 0x311   : > { %v7526_v50 = vsel %vm7501_vm2, 1.4142135, %v8649_v32  ;;  %v7390_v63 = vpop.f32.mrb[216].mxu0  ;;  %v7081_v54 = vadd.f32 %v7035_v22, %v12182_v28  ;;  %v8519_v20 = vpop.f32.mrb[219].mxu1 }
 0x312   : > { %7575 = vst [vmem:[%s12212_s10 + $0x70] sm:$0xff] %v7550_v18  ;;  %v7551_v9 = vmul.f32 %v7526_v50, %v7476_v34  ;;  %v7444_v12 = vadd.f32 %v7390_v63, %v7078_v5  ;;  %v8568_v25 = vpop.f32.mrb[217].mxu0 }
 0x313   : > { %v7393_v2 = vpop.f32.mrb[218].mxu0 }
 0x314   : > { %7576 = vst [vmem:[%s12212_s10 + $0x78] sm:$0xff] %v7551_v9  ;;  %v7477_v62 = vadd.f32 %v12203_v57, %v7444_v12  ;;  %v7445_v42 = vadd.f32 %v7393_v2, %v7079_v19  ;;  %v8569_v16 = vpop.f32.mrb[219].mxu0 }
 0x316   : > { %vm7502_vm0 = vcmp.ge.f32.partialorder %v7477_v62, 0.0  ;;  %v7478_v45 = vadd.f32 %v12203_v57, %v7445_v42  ;;  %v7040_v40 = vpop.f32.mrb[220].mxu1 }
 0x317   : > { %v7527_v33 = vsel %vm7502_vm0, 1.4142135, %v8649_v32  ;;  %v7082_v46 = vadd.f32 %v7040_v40, %v12185_v15  ;;  %v8522_v28 = vpop.f32.mrb[221].mxu1 }
 0x318   : > { %v7552_v60 = vmul.f32 %v7527_v33, %v7477_v62  ;;  %vm7503_vm3 = vcmp.ge.f32.partialorder %v7478_v45, 0.0  ;;  %v7043_v10 = vpop.f32.mrb[222].mxu1 }
 0x319   : > { %v7528_v52 = vsel %vm7503_vm3, 1.4142135, %v8649_v32  ;;  %v7398_v14 = vpop.f32.mrb[220].mxu0  ;;  %v7083_v55 = vadd.f32 %v7043_v10, %v12188_v43  ;;  %v8523_v13 = vpop.f32.mrb[223].mxu1 }
 0x31a   : > { %7577 = vst [vmem:[%s12212_s10 + $0x80] sm:$0xff] %v7552_v60  ;;  %v7553_v8 = vmul.f32 %v7528_v52, %v7478_v45  ;;  %v7446_v6 = vadd.f32 %v7398_v14, %v7080_v51  ;;  %v8572_v29 = vpop.f32.mrb[221].mxu0 }
 0x31b   : > { %v7401_v23 = vpop.f32.mrb[222].mxu0 }
 0x31c   : > { %7578 = vst [vmem:[%s12212_s10 + $0x88] sm:$0xff] %v7553_v8  ;;  %v7479_v53 = vadd.f32 %v12203_v57, %v7446_v6  ;;  %v7447_v7 = vadd.f32 %v7401_v23, %v7081_v54  ;;  %v8573_v48 = vpop.f32.mrb[223].mxu0 }
 0x31e   : > { %vm7504_vm4 = vcmp.ge.f32.partialorder %v7479_v53, 0.0  ;;  %v7480_v15 = vadd.f32 %v12203_v57, %v7447_v7  ;;  %v7048_v21 = vpop.f32.mrb[224].mxu1 }
 0x31f   : > { %v7529_v35 = vsel %vm7504_vm4, 1.4142135, %v8649_v32  ;;  %v7084_v41 = vadd.f32 %v7048_v21, %v12191_v26  ;;  %v8526_v43 = vpop.f32.mrb[225].mxu1 }
 0x320   : > { %v7554_v47 = vmul.f32 %v7529_v35, %v7479_v53  ;;  %vm7505_vm5 = vcmp.ge.f32.partialorder %v7480_v15, 0.0  ;;  %v7051_v30 = vpop.f32.mrb[226].mxu1 }
 0x321   : > { %v7530_v44 = vsel %vm7505_vm5, 1.4142135, %v8649_v32  ;;  %v7406_v58 = vpop.f32.mrb[224].mxu0  ;;  %v7085_v17 = vadd.f32 %v7051_v30, %v12193_v56  ;;  %v8527_v4 = vpop.f32.mrb[227].mxu1 }
 0x322   : > { %7579 = vst [vmem:[%s12212_s10 + $0x90] sm:$0xff] %v7554_v47  ;;  %v7555_v5 = vmul.f32 %v7530_v44, %v7480_v15  ;;  %v7448_v24 = vadd.f32 %v7406_v58, %v7082_v46  ;;  %v8576_v11 = vpop.f32.mrb[225].mxu0 }
 0x323   : > { %v7409_v39 = vpop.f32.mrb[226].mxu0 }
 0x324   : > { %7580 = vst [vmem:[%s12212_s10 + $0x98] sm:$0xff] %v7555_v5  ;;  %v7481_v59 = vadd.f32 %v12203_v57, %v7448_v24  ;;  %v7449_v61 = vadd.f32 %v7409_v39, %v7083_v55  ;;  %v8577_v19 = vpop.f32.mrb[227].mxu0 }
 0x326   : > { %vm7506_vm6 = vcmp.ge.f32.partialorder %v7481_v59, 0.0  ;;  %v7482_v26 = vadd.f32 %v12203_v57, %v7449_v61  ;;  %v7056_v49 = vpop.f32.mrb[228].mxu1 }
 0x327   : > { %v7531_v31 = vsel %vm7506_vm6, 1.4142135, %v8649_v32  ;;  %v7086_v37 = vadd.f32 %v7056_v49, %v12196_v0  ;;  %v8530_v56 = vpop.f32.mrb[229].mxu1 }
 0x328   : > { %v7556_v27 = vmul.f32 %v7531_v31, %v7481_v59  ;;  %vm7507_vm7 = vcmp.ge.f32.partialorder %v7482_v26, 0.0  ;;  %v7059_v38 = vpop.f32.mrb[230].mxu1 }
 0x329   : > { %v7532_v1 = vsel %vm7507_vm7, 1.4142135, %v8649_v32  ;;  %v7414_v34 = vpop.f32.mrb[228].mxu0  ;;  %v8531_v3 = vpop.f32.mrb[231].mxu1 }
 0x32a   : > { %7581 = vst [vmem:[%s12212_s10 + $0xa0] sm:$0xff] %v7556_v27  ;;  %v7557_v36 = vmul.f32 %v7532_v1, %v7482_v26  ;;  %v7450_v18 = vadd.f32 %v7414_v34, %v7084_v41  ;;  %v8580_v51 = vpop.f32.mrb[229].mxu0 }
 0x32b   : > { %v7417_v50 = vpop.f32.mrb[230].mxu0 }
 0x32c   : > { %7582 = vst [vmem:[%s12212_s10 + $0xa8] sm:$0xff] %v7557_v36  ;;  %v7483_v63 = vadd.f32 %v12203_v57, %v7450_v18  ;;  %v7451_v22 = vadd.f32 %v7417_v50, %v7085_v17  ;;  %v8581_v9 = vpop.f32.mrb[231].mxu0 }
 0x32e   : > { %vm7508_vm8 = vcmp.ge.f32.partialorder %v7483_v63, 0.0  ;;  %v7484_v0 = vadd.f32 %v12203_v57, %v7451_v22 }
 0x32f   : > { %v7533_v12 = vsel %vm7508_vm8, 1.4142135, %v8649_v32 }
 0x330   : > { %v7558_v25 = vmul.f32 %v7533_v12, %v7483_v63  ;;  %vm7509_vm9 = vcmp.ge.f32.partialorder %v7484_v0, 0.0 }
 0x331   : > { %v7534_v54 = vsel %vm7509_vm9, 1.4142135, %v8649_v32  ;;  %v7422_v20 = vpop.f32.mrb[232].mxu0 }
 0x332   : > { %7583 = vst [vmem:[%s12212_s10 + $0xb0] sm:$0xff] %v7558_v25  ;;  %v7559_v2 = vmul.f32 %v7534_v54, %v7484_v0  ;;  %v7452_v62 = vadd.f32 %v7422_v20, %v7086_v37  ;;  %v8584_v42 = vpop.f32.mrb[233].mxu0 }
 0x333   : > { %v7425_v16 = vpop.f32.mrb[234].mxu0 }
 0x334   : > { %7584 = vst [vmem:[%s12212_s10 + $0xb8] sm:$0xff] %v7559_v2  ;;  %v7485_v45 = vadd.f32 %v12203_v57, %v7452_v62  ;;  %v8585_v33 = vpop.f32.mrb[235].mxu0 }
 0x336   : > { %vm7510_vm10 = vcmp.ge.f32.partialorder %v7485_v45, 0.0 }
 0x337   : > { %v7535_v40 = vsel %vm7510_vm10, 1.4142135, %v8649_v32 }
 0x338   : > { %v7560_v60 = vmul.f32 %v7535_v40, %v7485_v45 }
 0x33a   : > { %7585 = vst [vmem:[%s12212_s10 + $0xc0] sm:$0xf] %v7560_v60 }
 0x33b PF: > { %s13_s14 = sadd.s32 1, %s8644_s14   ;;  %s13394_s12 = smov %s8640_s13 }
 0x33c   : > { %p10_p5 = scmp.ge.s32.totalorder %s13_s14, 4   ;;  %s13395_s13 = smov %s13397_s15 }
 0x33e   :  { %12 = sbr.rel (!%p10_p5) target bundleno = 2 (0x2), region = 64 }

</bundles_post_ra>
